<compile_context>
chip_gen: v6e
topology: v6e:2x2x1
jax: 0.10.0
libtpu: 0.0.40
codegen_flags: <defaults>
</compile_context>

<pallas_src>
import jax
import jax.numpy as jnp
from jax.experimental import pallas as pl
from jax.experimental.pallas import tpu as pltpu

MULT = 20.0
PSI = 1.0

_MIN_TILE = 256                    # multiple of 128 (lane-dense out) and 16 (bf16 sublanes)
_MAX_TILE = 4096
_VMEM_BUDGET = 24 * 1024 * 1024    # double-buffered bf16 streams + f32 temporaries
_VMEM_LIMIT = 40 * 1024 * 1024     # explicit scoped-VMEM limit, safe on v5e/v6e/v7x


def _round_up(x, m):
    return (x + m - 1) // m * m


def _cdiv(a, b):
    return -(-a // b)


def _pick_batch_tile(batch, dim):
    # Per row: 7*D bf16 across the 3 streams (double-buffered by BlockSpec)
    # plus roughly 7*D f32 worth of in-kernel upcast/product temporaries.
    vmem_per_row = 2 * (7 * dim * 2) + 7 * dim * 4
    tb = _VMEM_BUDGET // vmem_per_row
    tb = max(_MIN_TILE, min(_MAX_TILE, (tb // _MIN_TILE) * _MIN_TILE))
    tb = min(tb, _round_up(batch, _MIN_TILE))      # don't over-pad tiny batches
    if batch > 2 * _MIN_TILE:                      # keep >= 2 tiles so both v7x TCs get work
        tb = min(tb, _round_up(_cdiv(batch, 2), _MIN_TILE))
    return int(tb)


def _typed_model_kernel(s_ref, r_ref, o_ref, out_ref):
    f32 = jnp.float32
    dim = s_ref.shape[1] // 2
    tb = out_ref.shape[-1]

    # Static lane slices on the refs; upcast right after load, keep compute f32.
    s_e = s_ref[:, :dim].astype(f32)
    s_t = s_ref[:, dim:].astype(f32)
    r_e = r_ref[:, :dim].astype(f32)
    r_ht = r_ref[:, dim:2 * dim].astype(f32)
    r_tt = r_ref[:, 2 * dim:].astype(f32)
    o_e = o_ref[:, :dim].astype(f32)
    o_t = o_ref[:, dim:].astype(f32)

    # Reduce along lanes, then relayout each per-row sum to a lane-dense
    # (1, tb) row so the sigmoids/scale and the store run ~128x denser.
    base = jnp.reshape(jnp.sum(s_e * r_e * o_e, axis=-1), (1, tb))
    head = jnp.reshape(jnp.sum(s_t * r_ht, axis=-1), (1, tb))
    tail = jnp.reshape(jnp.sum(o_t * r_tt, axis=-1), (1, tb))
    if PSI != 1.0:  # psi == 1.0 is a no-op; dropped at trace time
        base, head, tail = PSI * base, PSI * head, PSI * tail
    out_ref[...] = MULT * (jax.nn.sigmoid(base)
                           * jax.nn.sigmoid(head)
                           * jax.nn.sigmoid(tail))


def pack_params(params):
    """One-time pre-concat so the forward does 3 gathers instead of 7."""
    return {
        "E_cat": jnp.concatenate([params["E"], params["E_t"]], axis=1),
        "R_cat": jnp.concatenate(
            [params["R"], params["R_ht"], params["R_tt"]], axis=1),
    }


@jax.jit
def typed_model_forward(packed, s, r, o):
    """s, r, o: int index arrays of shape (B,).  Returns (B,) f32 scores."""
    E_cat, R_cat = packed["E_cat"], packed["R_cat"]
    B = s.shape[0]
    D = E_cat.shape[1] // 2

    tb = _pick_batch_tile(B, D)
    b_pad = _round_up(B, tb)
    nb = b_pad // tb

    s = s.astype(jnp.int32)
    r = r.astype(jnp.int32)
    o = o.astype(jnp.int32)
    if b_pad != B:
        pad = [(0, b_pad - B)]
        s = jnp.pad(s, pad)     # pad with index 0 (valid row); rows sliced off
        r = jnp.pad(r, pad)
        o = jnp.pad(o, pad)

    # --- glue: one embedding gather per index stream, kept in bf16 ---
    s_cat = jnp.take(E_cat, s, axis=0)   # (b_pad, 2D)
    r_cat = jnp.take(R_cat, r, axis=0)   # (b_pad, 3D)
    o_cat = jnp.take(E_cat, o, axis=0)   # (b_pad, 2D)

    itemsize = jnp.dtype(E_cat.dtype).itemsize
    cost = pl.CostEstimate(
        flops=int(7 * b_pad * D),
        transcendentals=int(3 * b_pad),
        bytes_accessed=int(b_pad * (7 * D * itemsize + 4)),
    )

    out = pl.pallas_call(
        _typed_model_kernel,
        out_shape=jax.ShapeDtypeStruct((nb, tb), jnp.float32),
        grid=(nb,),
        in_specs=[
            pl.BlockSpec((tb, 2 * D), lambda i: (i, 0)),
            pl.BlockSpec((tb, 3 * D), lambda i: (i, 0)),
            pl.BlockSpec((tb, 2 * D), lambda i: (i, 0)),
        ],
        out_specs=pl.BlockSpec((1, tb), lambda i: (i, 0)),
        compiler_params=pltpu.CompilerParams(
            dimension_semantics=("parallel",),
            vmem_limit_bytes=_VMEM_LIMIT,
        ),
        cost_estimate=cost,
    )(s_cat, r_cat, o_cat)
    return out.reshape(b_pad)[:B]


def init_params(key, entity_count, relation_count, embedding_dim,
                dtype=jnp.bfloat16):
    ks = jax.random.split(key, 5)
    std = 0.05

    def emb(k, n):
        return (std * jax.random.normal(k, (n, embedding_dim),
                                        jnp.float32)).astype(dtype)

    return {
        # base model (distmult) embeddings
        "E": emb(ks[0], entity_count),
        "R": emb(ks[1], relation_count),
        # typed_model type embeddings
        "E_t": emb(ks[2], entity_count),
        "R_ht": emb(ks[3], relation_count),
        "R_tt": emb(ks[4], relation_count),
    }


if __name__ == "__main__":
    entity_count = 64
    relation_count = 8
    embedding_dim = 32
    batch = 20  # deliberately not a tile multiple -> exercises padding/slicing

    key = jax.random.PRNGKey(0)
    pkey, skey, rkey, okey = jax.random.split(key, 4)
    params = init_params(pkey, entity_count, relation_count, embedding_dim)
    packed = pack_params(params)

    s = jax.random.randint(skey, (batch,), 0, entity_count, dtype=jnp.int32)
    r = jax.random.randint(rkey, (batch,), 0, relation_count, dtype=jnp.int32)
    o = jax.random.randint(okey, (batch,), 0, entity_count, dtype=jnp.int32)

    scores = jax.block_until_ready(typed_model_forward(packed, s, r, o))

    # reference check in plain JAX (same bf16 tables, f32 compute)
    def ref(params, s, r, o):
        f32 = jnp.float32
        E = params["E"].astype(f32)
        R = params["R"].astype(f32)
        E_t = params["E_t"].astype(f32)
        R_ht = params["R_ht"].astype(f32)
        R_tt = params["R_tt"].astype(f32)
        s_e, r_e, o_e = E[s], R[r], E[o]
        s_t, r_ht, o_t, r_tt = E_t[s], R_ht[r], E_t[o], R_tt[r]
        base = jax.nn.sigmoid(PSI * jnp.sum(s_e * r_e * o_e, -1))
        head = jax.nn.sigmoid(PSI * jnp.sum(s_t * r_ht, -1))
        tail = jax.nn.sigmoid(PSI * jnp.sum(o_t * r_tt, -1))
        return MULT * base * head * tail

    expected = ref(params, s, r, o)
    assert scores.shape == (batch,)
    assert jnp.allclose(scores, expected, atol=1e-4, rtol=1e-4), (
        float(jnp.max(jnp.abs(scores - expected))))
    print("KERNEL_OK")
</pallas_src>

<mosaic_0001>
module attributes {stable_mosaic.version = 11 : i64} {
  func.func @_typed_model_kernel(%arg0: i32, %arg1: memref<256x64xbf16, #tpu.memory_space<vmem>>, %arg2: memref<256x96xbf16, #tpu.memory_space<vmem>>, %arg3: memref<256x64xbf16, #tpu.memory_space<vmem>>, %arg4: memref<1x256xf32, #tpu.memory_space<vmem>>) attributes {dimension_semantics = [#tpu.dimension_semantics<parallel>], iteration_bounds = array<i64: 1>, scalar_prefetch = 0 : i64, scratch_operands = 0 : i64, tpu.core_type = #tpu.core_type<tc>, window_params = [{transform_indices = @transform_0, window_bounds = array<i64: 256, 64>}, {transform_indices = @transform_1, window_bounds = array<i64: 256, 96>}, {transform_indices = @transform_2, window_bounds = array<i64: 256, 64>}, {transform_indices = @transform_3, window_bounds = array<i64: 1, 256>}]} {
    %c0 = arith.constant 0 : index
    %c0_0 = arith.constant 0 : index
    %0 = vector.load %arg1[%c0, %c0_0] : memref<256x64xbf16, #tpu.memory_space<vmem>>, vector<256x32xbf16>
    %1 = arith.extf %0 : vector<256x32xbf16> to vector<256x32xf32>
    %c0_1 = arith.constant 0 : index
    %c32 = arith.constant 32 : index
    %2 = vector.load %arg1[%c0_1, %c32] : memref<256x64xbf16, #tpu.memory_space<vmem>>, vector<256x32xbf16>
    %3 = arith.extf %2 : vector<256x32xbf16> to vector<256x32xf32>
    %c0_2 = arith.constant 0 : index
    %c0_3 = arith.constant 0 : index
    %4 = vector.load %arg2[%c0_2, %c0_3] : memref<256x96xbf16, #tpu.memory_space<vmem>>, vector<256x32xbf16>
    %5 = arith.extf %4 : vector<256x32xbf16> to vector<256x32xf32>
    %c0_4 = arith.constant 0 : index
    %c32_5 = arith.constant 32 : index
    %6 = vector.load %arg2[%c0_4, %c32_5] : memref<256x96xbf16, #tpu.memory_space<vmem>>, vector<256x32xbf16>
    %7 = arith.extf %6 : vector<256x32xbf16> to vector<256x32xf32>
    %c0_6 = arith.constant 0 : index
    %c64 = arith.constant 64 : index
    %8 = vector.load %arg2[%c0_6, %c64] : memref<256x96xbf16, #tpu.memory_space<vmem>>, vector<256x32xbf16>
    %9 = arith.extf %8 : vector<256x32xbf16> to vector<256x32xf32>
    %c0_7 = arith.constant 0 : index
    %c0_8 = arith.constant 0 : index
    %10 = vector.load %arg3[%c0_7, %c0_8] : memref<256x64xbf16, #tpu.memory_space<vmem>>, vector<256x32xbf16>
    %11 = arith.extf %10 : vector<256x32xbf16> to vector<256x32xf32>
    %c0_9 = arith.constant 0 : index
    %c32_10 = arith.constant 32 : index
    %12 = vector.load %arg3[%c0_9, %c32_10] : memref<256x64xbf16, #tpu.memory_space<vmem>>, vector<256x32xbf16>
    %13 = arith.extf %12 : vector<256x32xbf16> to vector<256x32xf32>
    %14 = arith.mulf %1, %5 : vector<256x32xf32>
    %15 = arith.mulf %14, %11 : vector<256x32xf32>
    %cst = arith.constant dense<0.000000e+00> : vector<256xf32>
    %16 = vector.multi_reduction <add>, %15, %cst [1] : vector<256x32xf32> to vector<256xf32>
    %17 = vector.shape_cast %16 : vector<256xf32> to vector<1x256xf32>
    %18 = arith.mulf %3, %7 : vector<256x32xf32>
    %cst_11 = arith.constant dense<0.000000e+00> : vector<256xf32>
    %19 = vector.multi_reduction <add>, %18, %cst_11 [1] : vector<256x32xf32> to vector<256xf32>
    %20 = vector.shape_cast %19 : vector<256xf32> to vector<1x256xf32>
    %21 = arith.mulf %13, %9 : vector<256x32xf32>
    %cst_12 = arith.constant dense<0.000000e+00> : vector<256xf32>
    %22 = vector.multi_reduction <add>, %21, %cst_12 [1] : vector<256x32xf32> to vector<256xf32>
    %23 = vector.shape_cast %22 : vector<256xf32> to vector<1x256xf32>
    %24 = arith.negf %17 : vector<1x256xf32>
    %25 = math.exp %24 : vector<1x256xf32>
    %cst_13 = arith.constant 1.000000e+00 : f32
    %26 = vector.broadcast %cst_13 : f32 to vector<1x256xf32>
    %27 = arith.addf %26, %25 : vector<1x256xf32>
    %28 = arith.divf %26, %27 : vector<1x256xf32>
    %29 = arith.negf %20 : vector<1x256xf32>
    %30 = math.exp %29 : vector<1x256xf32>
    %cst_14 = arith.constant 1.000000e+00 : f32
    %31 = vector.broadcast %cst_14 : f32 to vector<1x256xf32>
    %32 = arith.addf %31, %30 : vector<1x256xf32>
    %33 = arith.divf %31, %32 : vector<1x256xf32>
    %34 = arith.mulf %28, %33 : vector<1x256xf32>
    %35 = arith.negf %23 : vector<1x256xf32>
    %36 = math.exp %35 : vector<1x256xf32>
    %cst_15 = arith.constant 1.000000e+00 : f32
    %37 = vector.broadcast %cst_15 : f32 to vector<1x256xf32>
    %38 = arith.addf %37, %36 : vector<1x256xf32>
    %39 = arith.divf %37, %38 : vector<1x256xf32>
    %40 = arith.mulf %34, %39 : vector<1x256xf32>
    %cst_16 = arith.constant 2.000000e+01 : f32
    %41 = vector.broadcast %cst_16 : f32 to vector<1x256xf32>
    %42 = arith.mulf %41, %40 : vector<1x256xf32>
    %c0_17 = arith.constant 0 : index
    %c0_18 = arith.constant 0 : index
    %43 = vector.load %arg4[%c0_17, %c0_18] : memref<1x256xf32, #tpu.memory_space<vmem>>, vector<1x256xf32>
    tpu.vector_store %arg4[%c0_17, %c0_18], %42 {strides = array<i32>} : memref<1x256xf32, #tpu.memory_space<vmem>>, vector<1x256xf32>,
    return
  }
  func.func @transform_0(%arg0: i32) -> (i32, i32) {
    %c0_i32 = arith.constant 0 : i32
    %c0_i32_0 = arith.constant 0 : i32
    return %arg0, %c0_i32 : i32, i32
  }
  func.func @transform_1(%arg0: i32) -> (i32, i32) {
    %c0_i32 = arith.constant 0 : i32
    %c0_i32_0 = arith.constant 0 : i32
    return %arg0, %c0_i32 : i32, i32
  }
  func.func @transform_2(%arg0: i32) -> (i32, i32) {
    %c0_i32 = arith.constant 0 : i32
    %c0_i32_0 = arith.constant 0 : i32
    return %arg0, %c0_i32 : i32, i32
  }
  func.func @transform_3(%arg0: i32) -> (i32, i32) {
    %c0_i32 = arith.constant 0 : i32
    %c0_i32_0 = arith.constant 0 : i32
    return %arg0, %c0_i32 : i32, i32
  }
}

</mosaic_0001>

<bundles_post_ra>
// kernel: typed_model_forward.1
= control target key start
LH: loop header
LB: loop body
LE: loop exit
PB: predicated region body
PF: predicated region fallthrough
CT: control target
= control target key end

     0   :  { %vm270_vm0 = vcmask 261120   ;;  %vm4378_vm1 = vcmask 130112   ;;  %vm4385_vm2 = vcmask 195712   ;;  %vm4392_vm3 = vcmask 261312   ;;  %s7598_s0 = inlined_call_operand.vmem [shape: bf16[256,64], index: 0, kind: input, shape index: {}]   ;;  %s7599_s1 = inlined_call_operand.vmem [shape: bf16[256,96], index: 1, kind: input, shape index: {}]   ;;  %s7600_s2 = inlined_call_operand.vmem [shape: bf16[256,64], index: 2, kind: input, shape index: {}]   ;;  %s7601_s3 = inlined_call_operand.vmem [shape: f32[1,256], index: 3, kind: output, shape index: {}]  }
   0x1   :  { %v4870_v0 = vld [vmem:[%s7598_s0 + $0x8] sm:$0xff]   ;;  %v4679_v6 = vld [vmem:[%s7598_s0] sm:$0xff]   ;;  %v4871_v14 = vld [vmem:[%s7598_s0 + $0x10] sm:$0xff]   ;;  %vm4399_vm4 = vcmask 326912   ;;  %vm4406_vm5 = vcmask 392512   ;;  %vm4413_vm6 = vcmask 458112  }
   0x2   :  { %v5413_v1 = vld [vmem:[%s7599_s1 + $0x8] sm:$0xff]   ;;  %v4684_v3 = vunpack.c.l.bf16 %v4870_v0  ;;  %v5428_v7 = vld [vmem:[%s7599_s1] sm:$0xff]   ;;  %v4685_v9 = vunpack.c.h.bf16 %v4870_v0  ;;  %v4680_v10 = vunpack.c.l.bf16 %v4679_v6  ;;  %v5444_v15 = vld [vmem:[%s7599_s1 + $0x10] sm:$0xff]   ;;  %v4681_v19 = vunpack.c.h.bf16 %v4679_v6 }
   0x3   :  { %v5418_v2 = vld [vmem:[%s7600_s2 + $0x8] sm:$0xff]   ;;  %v7641_v4 = vunpack.c.l.bf16 %v5413_v1  ;;  %v5433_v8 = vld [vmem:[%s7600_s2] sm:$0xff]   ;;  %v7635_v11 = vunpack.c.l.bf16 %v5428_v7  ;;  %v7640_v13 = vunpack.c.h.bf16 %v5413_v1  ;;  %v5449_v16 = vld [vmem:[%s7600_s2 + $0x10] sm:$0xff]   ;;  %v7632_v20 = vunpack.c.h.bf16 %v5428_v7 }
   0x4   :  { %7687 = vst [vmem:[#allocation2_spill] sm:$0xff] %v5418_v2  ;;  %v7609_v5 = vunpack.c.l.bf16 %v5418_v2  ;;  %7688 = vst [vmem:[#allocation3_spill] sm:$0xff] %v5433_v8  ;;  %v7611_v12 = vunpack.c.l.bf16 %v5433_v8  ;;  %v7610_v18 = vunpack.c.h.bf16 %v5418_v2  ;;  %v7614_v23 = vunpack.c.h.bf16 %v5433_v8  ;;  %v4872_v29 = vld [vmem:[%s7598_s0 + $0x18] sm:$0xff]   ;;  %v4873_v44 = vld [vmem:[%s7598_s0 + $0x20] sm:$0xff]  }
   0x5   :  { %7689 = vst [vmem:[#allocation4_spill] sm:$0xff] %v5449_v16  ;;  %v5453_v17 = vmul.f32 %v7641_v4, %v4684_v3  ;;  %v5459_v21 = vmul.f32 %v7635_v11, %v4680_v10  ;;  %v5463_v22 = vmul.f32 %v7640_v13, %v4685_v9  ;;  %v4689_v24 = vunpack.c.h.bf16 %v4871_v14  ;;  %v5488_v34 = vld [vmem:[%s7599_s1 + $0x18] sm:$0xff]   ;;  %v5516_v45 = vld [vmem:[%s7599_s1 + $0x20] sm:$0xff]   ;;  %v4874_v58 = vld [vmem:[%s7598_s0 + $0x28] sm:$0xff]  }
   0x6   :  { %v5471_v26 = vmul.f32 %v7632_v20, %v4681_v19  ;;  %v7637_v27 = vunpack.c.h.bf16 %v5444_v15  ;;  %v7608_v28 = vunpack.c.h.bf16 %v5449_v16  ;;  %v4688_v32 = vunpack.c.l.bf16 %v4871_v14  ;;  %v5493_v35 = vld [vmem:[%s7600_s2 + $0x18] sm:$0xff]   ;;  %v5527_v50 = vld [vmem:[%s7600_s2 + $0x20] sm:$0xff]   ;;  %v5545_v59 = vld [vmem:[%s7599_s1 + $0x28] sm:$0xff]  }
   0x7   :  { %v240_v25 = vmul.f32 %v7609_v5, %v5453_v17  ;;  %v238_v30 = vmul.f32 %v7611_v12, %v5459_v21  ;;  %v241_v31 = vmul.f32 %v7610_v18, %v5463_v22  ;;  %v7638_v33 = vunpack.c.l.bf16 %v5444_v15  ;;  %7690 = vst [vmem:[#allocation5_spill] sm:$0xff] %v5493_v35  ;;  %7691 = vst [vmem:[#allocation6_spill] sm:$0xff] %v5527_v50  ;;  %v5565_v10 = vld [vmem:[%s7600_s2 + $0x28] sm:$0xff]  }
   0x8   :  { %v239_v37 = vmul.f32 %v7614_v23, %v5471_v26  ;;  %v5501_v38 = vmul.f32 %v7637_v27, %v4689_v24  ;;  %v7607_v39 = vunpack.c.l.bf16 %v5449_v16  ;;  %v4693_v43 = vunpack.c.h.bf16 %v4872_v29  ;;  %7692 = vst [vmem:[#allocation7_spill] sm:$0xff] %v5565_v10  ;;  %v4878_v23 = vld [vmem:[%s7598_s0 + $0x48] sm:$0xff]  }
   0x9   :  { %v277_v36 = vsel %vm270_vm0, %v240_v25, 0.0  ;;  %v271_v40 = vsel %vm270_vm0, %v238_v30, 0.0  ;;  %v280_v41 = vsel %vm270_vm0, %v241_v31, 0.0  ;;  %v5508_v42 = vmul.f32 %v7638_v33, %v4688_v32  ;;  %v5578_v30 = vld [vmem:[%s7599_s1 + $0x30] sm:$0xff]  }
   0xa   :  { %278 = vadd.xlane.f32.xlu1 %v277_v36  ;;  %272 = vadd.xlane.f32.xlu0 %v271_v40  ;;  %v274_v46 = vsel %vm270_vm0, %v239_v37, 0.0  ;;  %v243_v47 = vmul.f32 %v7608_v28, %v5501_v38  ;;  %v7627_v48 = vunpack.c.h.bf16 %v5488_v34  ;;  %v7606_v49 = vunpack.c.h.bf16 %v5493_v35 }
   0xb   :  { %v242_v51 = vmul.f32 %v7607_v39, %v5508_v42  ;;  %v4692_v52 = vunpack.c.l.bf16 %v4872_v29  ;;  %v7628_v53 = vunpack.c.l.bf16 %v5488_v34  ;;  %v7605_v54 = vunpack.c.l.bf16 %v5493_v35  ;;  %v4875_v29 = vld [vmem:[%s7598_s0 + $0x30] sm:$0xff]  }
   0xc   :  { %v5536_v55 = vmul.f32 %v7627_v48, %v4693_v43  ;;  %v4697_v56 = vunpack.c.h.bf16 %v4873_v44  ;;  %v7625_v57 = vunpack.c.h.bf16 %v5516_v45  ;;  %v286_v60 = vsel %vm270_vm0, %v243_v47, 0.0 }
   0xd   :  { %v5550_v61 = vmul.f32 %v7628_v53, %v4692_v52  ;;  %v7603_v62 = vunpack.c.h.bf16 %v5527_v50  ;;  %v4696_v63 = vunpack.c.l.bf16 %v4873_v44  ;;  %v283_v0 = vsel %vm270_vm0, %v242_v51, 0.0  ;;  %v5599_v51 = vld [vmem:[%s7600_s2 + $0x30] sm:$0xff]  }
   0xe   :  { %281 = vadd.xlane.f32.xlu1 %v280_v41  ;;  %275 = vadd.xlane.f32.xlu0 %v274_v46  ;;  %v245_v3 = vmul.f32 %v7606_v49, %v5536_v55  ;;  %v5559_v6 = vmul.f32 %v7625_v57, %v4697_v56  ;;  %v7626_v9 = vunpack.c.l.bf16 %v5516_v45  ;;  %v7602_v19 = vunpack.c.l.bf16 %v5527_v50  ;;  %7693 = vst [vmem:[#allocation8_spill] sm:$0xff] %v5599_v51 }
   0xf   :  { %v244_v14 = vmul.f32 %v7605_v54, %v5550_v61  ;;  %v4701_v24 = vunpack.c.h.bf16 %v4874_v58  ;;  %v7620_v25 = vunpack.c.h.bf16 %v5545_v59  ;;  %v4700_v36 = vunpack.c.l.bf16 %v4874_v58  ;;  %v5644_v54 = vld [vmem:[%s7600_s2 + $0x38] sm:$0xff]  }
  0x10   :  { %v247_v31 = vmul.f32 %v7603_v62, %v5559_v6  ;;  %v5585_v32 = vmul.f32 %v7626_v9, %v4696_v63  ;;  %v7604_v37 = vunpack.c.h.bf16 %v5565_v10  ;;  %v7621_v41 = vunpack.c.l.bf16 %v5545_v59  ;;  %v4876_v63 = vld [vmem:[%s7598_s0 + $0x38] sm:$0xff]   ;;  %v4877_v62 = vld [vmem:[%s7598_s0 + $0x40] sm:$0xff]   ;;  %7694 = vst [vmem:[#allocation9_spill] sm:$0xff] %v5644_v54 }
  0x11   :  { %v5590_v40 = vmul.f32 %v7620_v25, %v4701_v24  ;;  %v292_v43 = vsel %vm270_vm0, %v245_v3, 0.0  ;;  %v289_v44 = vsel %vm270_vm0, %v244_v14, 0.0  ;;  %v4705_v46 = vunpack.c.h.bf16 %v4875_v29 }
  0x12   :  { %287 = vadd.xlane.f32.xlu1 %v286_v60  ;;  %284 = vadd.xlane.f32.xlu0 %v283_v0  ;;  %v7616_v47 = vunpack.c.h.bf16 %v5578_v30  ;;  %v246_v52 = vmul.f32 %v7602_v19, %v5585_v32  ;;  %v7612_v56 = vunpack.c.l.bf16 %v5565_v10  ;;  %v5607_v58 = vmul.f32 %v7621_v41, %v4700_v36  ;;  %v5615_v0 = vld [vmem:[%s7599_s1 + $0x38] sm:$0xff]  }
  0x13   :  { %v4704_v60 = vunpack.c.l.bf16 %v4875_v29  ;;  %v298_v3 = vsel %vm270_vm0, %v247_v31, 0.0  ;;  %v7619_v14 = vunpack.c.l.bf16 %v5578_v30  ;;  %v249_v24 = vmul.f32 %v7604_v37, %v5590_v40  ;;  %v5634_v31 = vld [vmem:[%s7599_s1 + $0x40] sm:$0xff]  }
  0x14   :  { %v7613_v29 = vunpack.c.h.bf16 %v5599_v51  ;;  %v5625_v36 = vmul.f32 %v7616_v47, %v4705_v46  ;;  %v7615_v19 = vunpack.c.l.bf16 %v5599_v51  ;;  %v4709_v37 = vunpack.c.h.bf16 %v4876_v63 }
  0x15   :  { %v7617_v46 = vunpack.c.h.bf16 %v5615_v0  ;;  %v4708_v49 = vunpack.c.l.bf16 %v4876_v63  ;;  %v295_v39 = vsel %vm270_vm0, %v246_v52, 0.0  ;;  %v248_v28 = vmul.f32 %v7612_v56, %v5607_v58  ;;  %v5660_v52 = vld [vmem:[%s7600_s2 + $0x40] sm:$0xff]  }
  0x16   :  { %293 = vadd.xlane.f32.xlu1 %v292_v43  ;;  %290 = vadd.xlane.f32.xlu0 %v289_v44  ;;  %v5638_v43 = vmul.f32 %v7619_v14, %v4704_v60  ;;  %v7618_v44 = vunpack.c.l.bf16 %v5615_v0  ;;  %v4713_v5 = vunpack.c.h.bf16 %v4877_v62  ;;  %v7624_v60 = vunpack.c.h.bf16 %v5634_v31  ;;  %7695 = vst [vmem:[#allocation10_spill] sm:$0xff] %v5660_v52 }
  0x17   :  { %v304_v18 = vsel %vm270_vm0, %v249_v24, 0.0  ;;  %v251_v12 = vmul.f32 %v7613_v29, %v5625_v36  ;;  %v7622_v63 = vunpack.c.h.bf16 %v5644_v54  ;;  %v7623_v24 = vunpack.c.l.bf16 %v5644_v54  ;;  %v4882_v54 = vld [vmem:[%s7598_s0 + $0x68] sm:$0xff]  }
  0x18   :  { %v250_v56 = vmul.f32 %v7615_v19, %v5638_v43  ;;  %v5672_v29 = vmul.f32 %v7618_v44, %v4708_v49  ;;  %v301_v19 = vsel %vm270_vm0, %v248_v28, 0.0  ;;  %v4712_v47 = vunpack.c.l.bf16 %v4877_v62 }
  0x19   :  { %v5687_v49 = vmul.f32 %v7624_v60, %v4713_v5  ;;  %v4717_v44 = vunpack.c.h.bf16 %v4878_v23  ;;  %v310_v25 = vsel %vm270_vm0, %v251_v12, 0.0  ;;  %v5701_v5 = vld [vmem:[%s7600_s2 + $0x48] sm:$0xff]   ;;  %v5709_v12 = vld [vmem:[%s7599_s1 + $0x50] sm:$0xff]   ;;  %v4733_v51 = vunpack.c.h.bf16 %v4882_v54 }
  0x1a   :  { %299 = vadd.xlane.f32.xlu1 %v298_v3  ;;  %296 = vadd.xlane.f32.xlu0 %v295_v39  ;;  %v5667_v3 = vmul.f32 %v7617_v46, %v4709_v37  ;;  %v5680_v39 = vld [vmem:[%s7599_s1 + $0x48] sm:$0xff]   ;;  %v7629_v37 = vunpack.c.l.bf16 %v5634_v31  ;;  %v7630_v46 = vunpack.c.h.bf16 %v5660_v52  ;;  %v307_v41 = vsel %vm270_vm0, %v250_v56, 0.0  ;;  %7696 = vst [vmem:[#allocation11_spill] sm:$0xff] %v5701_v5 }
  0x1b   :  { %v7631_v14 = vunpack.c.h.bf16 %v5680_v39  ;;  %v252_v62 = vmul.f32 %v7623_v24, %v5672_v29  ;;  %v7634_v24 = vunpack.c.l.bf16 %v5680_v39  ;;  %v7636_v57 = vunpack.c.h.bf16 %v5701_v5 }
  0x1c   :  { %v253_v28 = vmul.f32 %v7622_v63, %v5667_v3  ;;  %v5714_v56 = vmul.f32 %v7629_v37, %v4712_v47  ;;  %v4716_v63 = vunpack.c.l.bf16 %v4878_v23  ;;  %v255_v60 = vmul.f32 %v7630_v46, %v5687_v49 }
  0x1d   :  { %v5723_v9 = vmul.f32 %v7631_v14, %v4717_v44  ;;  %v7639_v53 = vunpack.c.h.bf16 %v5709_v12  ;;  %v313_v23 = vsel %vm270_vm0, %v252_v62, 0.0  ;;  %v7642_v37 = vunpack.c.l.bf16 %v5701_v5  ;;  %v4880_v62 = vld [vmem:[%s7598_s0 + $0x58] sm:$0xff]  }
  0x1e   :  { %305 = vadd.xlane.f32.xlu1 %v304_v18  ;;  %302 = vadd.xlane.f32.xlu0 %v301_v19  ;;  %v4879_v18 = vld [vmem:[%s7598_s0 + $0x50] sm:$0xff]   ;;  %v7633_v19 = vunpack.c.l.bf16 %v5660_v52  ;;  %v316_v47 = vsel %vm270_vm0, %v253_v28, 0.0  ;;  %v5739_v46 = vmul.f32 %v7634_v24, %v4716_v63  ;;  %v7643_v28 = vunpack.c.l.bf16 %v5709_v12  ;;  %v5748_v14 = vld [vmem:[%s7599_s1 + $0x58] sm:$0xff]   ;;  %v4881_v24 = vld [vmem:[%s7598_s0 + $0x60] sm:$0xff]  }
  0x1f   :  { %v4721_v48 = vunpack.c.h.bf16 %v4879_v18  ;;  %v322_v20 = vsel %vm270_vm0, %v255_v60, 0.0  ;;  %v257_v63 = vmul.f32 %v7636_v57, %v5723_v9  ;;  %v4725_v60 = vunpack.c.h.bf16 %v4880_v62 }
  0x20   :  { %v254_v44 = vmul.f32 %v7633_v19, %v5714_v56  ;;  %v7647_v11 = vunpack.c.h.bf16 %v5748_v14  ;;  %v4724_v57 = vunpack.c.l.bf16 %v4880_v62  ;;  %v4729_v62 = vunpack.c.h.bf16 %v4881_v24 }
  0x21   :  { %v5757_v19 = vmul.f32 %v7639_v53, %v4721_v48  ;;  %v256_v48 = vmul.f32 %v7642_v37, %v5739_v46  ;;  %v7700_v4 = vunpack.c.l.bf16 %v5748_v14  ;;  %vm4420_vm7 = vcmask 523712  }
  0x22   :  { %311 = vadd.xlane.f32.xlu1 %v310_v25  ;;  %308 = vadd.xlane.f32.xlu0 %v307_v41  ;;  %v5732_v25 = vld [vmem:[%s7600_s2 + $0x50] sm:$0xff]   ;;  %v4720_v41 = vunpack.c.l.bf16 %v4879_v18  ;;  %v319_v33 = vsel %vm270_vm0, %v254_v44, 0.0  ;;  %v328_v44 = vsel %vm270_vm0, %v257_v63, 0.0  ;;  %vm4427_vm8 = vcmask 589312  }
  0x23   :  { %7697 = vst [vmem:[#allocation12_spill] sm:$0xff] %v5732_v25  ;;  %v7644_v18 = vunpack.c.h.bf16 %v5732_v25  ;;  %vm4434_vm9 = vcmask 654912   ;;  %vm4441_vm10 = vcmask 720512   ;;  %vm4448_vm11 = vcmask 786112  }
  0x24   :  { %v5776_v13 = vmul.f32 %v7643_v28, %v4720_v41  ;;  %v5791_v41 = vld [vmem:[%s7600_s2 + $0x60] sm:$0xff]   ;;  %v4728_v28 = vunpack.c.l.bf16 %v4881_v24  ;;  %v325_v24 = vsel %vm270_vm0, %v256_v48, 0.0  ;;  %vm4455_vm12 = vcmask 851712  }
  0x25   :  { %v259_v37 = vmul.f32 %v7644_v18, %v5757_v19  ;;  %7699 = vst [vmem:[#allocation14_spill] sm:$0xff] %v5791_v41  ;;  %v5802_v18 = vmul.f32 %v7700_v4, %v4724_v57  ;;  %v7663_v27 = vunpack.c.l.bf16 %v5791_v41  ;;  %vm4462_vm13 = vcmask 917312  }
  0x26   :  { %317 = vadd.xlane.f32.xlu1 %v316_v47  ;;  %v5765_v47 = vld [vmem:[%s7599_s1 + $0x60] sm:$0xff]   ;;  %314 = vadd.xlane.f32.xlu0 %v313_v23  ;;  %v5781_v23 = vld [vmem:[%s7600_s2 + $0x58] sm:$0xff]   ;;  %vm4469_vm14 = vcmask 982912   ;;  %vm4476_vm15 = vcmask 1048512  }
  0x27   :  { %7698 = vst [vmem:[#allocation13_spill] sm:$0xff] %v5781_v23  ;;  %v7654_v53 = vunpack.c.l.bf16 %v5765_v47  ;;  %v7702_v4 = vunpack.c.h.bf16 %v5765_v47 }
  0x29   :  { %v5819_v57 = vmul.f32 %v7702_v4, %v4729_v62  ;;  %v5824_v5 = vmul.f32 %v7654_v53, %v4728_v28  ;;  %v7704_v62 = vunpack.c.l.bf16 %v5781_v23  ;;  %v5837_v4 = vld [vmem:[%s7600_s2 + $0x68] sm:$0xff]   ;;  %v4732_v53 = vunpack.c.l.bf16 %v4882_v54 }
  0x2a   :  { %323 = vadd.xlane.f32.xlu1 %v322_v20  ;;  %320 = vadd.xlane.f32.xlu0 %v319_v33  ;;  %v5797_v20 = vmul.f32 %v7647_v11, %v4725_v60  ;;  %v5810_v33 = vld [vmem:[%s7599_s1 + $0x68] sm:$0xff]   ;;  %v7701_v60 = vunpack.c.l.bf16 %v5732_v25  ;;  %v334_v25 = vsel %vm270_vm0, %v259_v37, 0.0  ;;  %7705 = vst [vmem:[#allocation15_spill] sm:$0xff] %v5837_v4  ;;  %v4883_v37 = vld [vmem:[%s7598_s0 + $0x70] sm:$0xff]  }
  0x2b   :  { %v7709_v54 = vunpack.c.l.bf16 %v5810_v33 }
  0x2c   :  { %v258_v11 = vmul.f32 %v7701_v60, %v5776_v13  ;;  %v7703_v60 = vunpack.c.h.bf16 %v5781_v23 }
  0x2e   :  { %329 = vadd.xlane.f32.xlu1 %v328_v44  ;;  %326 = vadd.xlane.f32.xlu0 %v325_v24  ;;  %v261_v63 = vmul.f32 %v7703_v60, %v5797_v20  ;;  %v260_v44 = vmul.f32 %v7704_v62, %v5802_v18  ;;  %v331_v28 = vsel %vm270_vm0, %v258_v11, 0.0  ;;  %v5847_v60 = vld [vmem:[%s7599_s1 + $0x70] sm:$0xff]   ;;  %v7707_v62 = vunpack.c.h.bf16 %v5791_v41 }
  0x2f   :  { %7706 = vst [vmem:[#allocation16_spill] sm:$0xff] %v5847_v60  ;;  %v262_v11 = vmul.f32 %v7663_v27, %v5824_v5  ;;  %v7708_v24 = vunpack.c.h.bf16 %v5810_v33  ;;  %v7674_v50 = vunpack.c.h.bf16 %v5847_v60  ;;  %v5871_v41 = vmul.f32 %v7709_v54, %v4732_v53 }
  0x30   :  { %v263_v48 = vmul.f32 %v7707_v62, %v5819_v57  ;;  %v340_v52 = vsel %vm270_vm0, %v261_v63, 0.0  ;;  %v337_v10 = vsel %vm270_vm0, %v260_v44, 0.0  ;;  %v5866_v62 = vld [vmem:[%s7600_s2 + $0x70] sm:$0xff]   ;;  %v4884_v63 = vld [vmem:[%s7598_s0 + $0x78] sm:$0xff]   ;;  %v7710_v53 = vunpack.c.h.bf16 %v5837_v4 }
  0x31   :  { %v5858_v23 = vmul.f32 %v7708_v24, %v4733_v51  ;;  %v4736_v51 = vunpack.c.l.bf16 %v4883_v37  ;;  %v5880_v44 = vld [vmem:[%s7599_s1 + $0x78] sm:$0xff]   ;;  %v343_v27 = vsel %vm270_vm0, %v262_v11, 0.0  ;;  %v7679_v54 = vunpack.c.h.bf16 %v5866_v62 }
  0x32   :  { %335 = vadd.xlane.f32.xlu1 %v334_v25  ;;  %332 = vadd.xlane.f32.xlu0 %v331_v28  ;;  %v4737_v25 = vunpack.c.h.bf16 %v4883_v37  ;;  %v346_v24 = vsel %vm270_vm0, %v263_v48, 0.0  ;;  %v4741_v16 = vunpack.c.h.bf16 %v4884_v63  ;;  %v7682_v2 = vunpack.c.h.bf16 %v5880_v44 }
  0x33   :  { %v265_v37 = vmul.f32 %v7710_v53, %v5858_v23  ;;  %v7712_v11 = vunpack.c.l.bf16 %v5847_v60  ;;  %v5900_v53 = vld [vmem:[%s7600_s2 + $0x78] sm:$0xff]   ;;  %s5384_s2 = smov 96  }
  0x34   :  { %v235_v28 = vmul.f32 %v7674_v50, %v4737_v25  ;;  %v4804_v25 = vunpack.c.l.bf16 %v5880_v44 }
  0x35   :  { %v234_v8 = vmul.f32 %v7712_v11, %v4736_v51  ;;  %v352_v50 = vsel %vm270_vm0, %v265_v37, 0.0  ;;  %v237_v51 = vmul.f32 %v7682_v2, %v4741_v16 }
  0x36   :  { %341 = vadd.xlane.f32.xlu1 %v340_v52  ;;  %338 = vadd.xlane.f32.xlu0 %v337_v10  ;;  %v7711_v52 = vunpack.c.l.bf16 %v5837_v4  ;;  %v4740_v10 = vunpack.c.l.bf16 %v4884_v63  ;;  %v267_v35 = vmul.f32 %v7679_v54, %v235_v28  ;;  %v7713_v4 = vunpack.c.l.bf16 %v5866_v62 }
  0x37   :  { %v7681_v63 = vunpack.c.l.bf16 %v5900_v53 }
  0x38   :  { %v264_v48 = vmul.f32 %v7711_v52, %v5871_v41  ;;  %v7680_v52 = vunpack.c.h.bf16 %v5900_v53  ;;  %v266_v60 = vmul.f32 %v7713_v4, %v234_v8 }
  0x3a   :  { %347 = vadd.xlane.f32.xlu1 %v346_v24  ;;  %344 = vadd.xlane.f32.xlu0 %v343_v27  ;;  %v349_v11 = vsel %vm270_vm0, %v264_v48, 0.0  ;;  %v236_v27 = vmul.f32 %v4804_v25, %v4740_v10  ;;  %v358_v24 = vsel %vm270_vm0, %v267_v35, 0.0  ;;  %v269_v37 = vmul.f32 %v7680_v52, %v237_v51 }
  0x3b   :  { %v355_v54 = vsel %vm270_vm0, %v266_v60, 0.0 }
  0x3c   :  { %v268_v16 = vmul.f32 %v7681_v63, %v236_v27  ;;  %v364_v4 = vsel %vm270_vm0, %v269_v37, 0.0 }
  0x3e   :  { %353 = vadd.xlane.f32.xlu1 %v352_v50  ;;  %350 = vadd.xlane.f32.xlu0 %v349_v11  ;;  %v361_v48 = vsel %vm270_vm0, %v268_v16, 0.0 }
  0x42   :  { %359 = vadd.xlane.f32.xlu1 %v358_v24  ;;  %356 = vadd.xlane.f32.xlu0 %v355_v54 }
  0x46   :  { %365 = vadd.xlane.f32.xlu1 %v364_v4  ;;  %362 = vadd.xlane.f32.xlu0 %v361_v48 }
  0x57   :  { %401 = vrot.lane.b32.xlu1 %v5471_v26, %s5384_s2 }
  0x5b   :  { %403 = vrot.lane.b32.xlu1 %v5453_v17, %s5384_s2 }
  0x5c   :  { %399 = vrot.lane.b32.xlu0 %v5459_v21, %s5384_s2 }
  0x5f   :  { %405 = vrot.lane.b32.xlu1 %v5463_v22, %s5384_s2 }
  0x60   :  { %407 = vrot.lane.b32.xlu0 %v5508_v42, %s5384_s2 }
  0x63   :  { %409 = vrot.lane.b32.xlu1 %v5501_v38, %s5384_s2 }
  0x64   :  { %411 = vrot.lane.b32.xlu0 %v5550_v61, %s5384_s2 }
  0x67   :  { %413 = vrot.lane.b32.xlu1 %v5536_v55, %s5384_s2 }
  0x68   :  { %415 = vrot.lane.b32.xlu0 %v5585_v32, %s5384_s2 }
  0x6b   :  { %417 = vrot.lane.b32.xlu1 %v5559_v6, %s5384_s2 }
  0x6c   :  { %419 = vrot.lane.b32.xlu0 %v5607_v58, %s5384_s2 }
  0x6f   :  { %421 = vrot.lane.b32.xlu1 %v5590_v40, %s5384_s2 }
  0x70   :  { %423 = vrot.lane.b32.xlu0 %v5638_v43, %s5384_s2 }
  0x73   :  { %425 = vrot.lane.b32.xlu1 %v5625_v36, %s5384_s2 }
  0x74   :  { %427 = vrot.lane.b32.xlu0 %v5672_v29, %s5384_s2 }
  0x77   :  { %429 = vrot.lane.b32.xlu1 %v5667_v3, %s5384_s2 }
  0x78   :  { %431 = vrot.lane.b32.xlu0 %v5714_v56, %s5384_s2 }
  0x7b   :  { %433 = vrot.lane.b32.xlu1 %v5687_v49, %s5384_s2 }
  0x7c   :  { %435 = vrot.lane.b32.xlu0 %v5739_v46, %s5384_s2 }
  0x7f   :  { %437 = vrot.lane.b32.xlu1 %v5723_v9, %s5384_s2 }
  0x80   :  { %439 = vrot.lane.b32.xlu0 %v5776_v13, %s5384_s2 }
  0x83   :  { %441 = vrot.lane.b32.xlu1 %v5757_v19, %s5384_s2 }
  0x84   :  { %443 = vrot.lane.b32.xlu0 %v5802_v18, %s5384_s2 }
  0x87   :  { %445 = vrot.lane.b32.xlu1 %v5797_v20, %s5384_s2 }
  0x88   :  { %447 = vrot.lane.b32.xlu0 %v5824_v5, %s5384_s2 }
  0x8b   :  { %449 = vrot.lane.b32.xlu1 %v5819_v57, %s5384_s2 }
  0x8c   :  { %451 = vrot.lane.b32.xlu0 %v5871_v41, %s5384_s2 }
  0x8f   :  { %453 = vrot.lane.b32.xlu1 %v5858_v23, %s5384_s2 }
  0x90   :  { %455 = vrot.lane.b32.xlu0 %v234_v8, %s5384_s2 }
  0x93   :  { %v5980_v13 = vpop.xlane.xlu1 %278  ;;  %457 = vrot.lane.b32.xlu1 %v235_v28, %s5384_s2  ;;  %v5983_v17 = vpop.xlane.xlu0 %272 }
  0x94   :  { %459 = vrot.lane.b32.xlu0 %v236_v27, %s5384_s2 }
  0x97   :  { %v5986_v21 = vpop.xlane.xlu1 %281  ;;  %461 = vrot.lane.b32.xlu1 %v237_v51, %s5384_s2  ;;  %v5989_v22 = vpop.xlane.xlu0 %275 }
  0x9b   :  { %v5991_v26 = vpop.xlane.xlu1 %287  ;;  %v5993_v35 = vpop.xlane.xlu0 %284 }
  0x9f   :  { %v5995_v38 = vpop.xlane.xlu1 %293  ;;  %v5997_v8 = vpop.xlane.xlu0 %290 }
  0xa3   :  { %v5999_v42 = vpop.xlane.xlu1 %299  ;;  %v6001_v50 = vpop.xlane.xlu0 %296 }
  0xa7   :  { %v6003_v55 = vpop.xlane.xlu1 %305  ;;  %v6005_v61 = vpop.xlane.xlu0 %302 }
  0xab   :  { %v6007_v6 = vpop.xlane.xlu1 %311  ;;  %v6009_v9 = vpop.xlane.xlu0 %308 }
  0xaf   :  { %v6011_v32 = vpop.xlane.xlu1 %317  ;;  %v6013_v40 = vpop.xlane.xlu0 %314 }
  0xb3   :  { %v6015_v58 = vpop.xlane.xlu1 %323  ;;  %v6017_v29 = vpop.xlane.xlu0 %320 }
  0xb7   :  { %v6019_v36 = vpop.xlane.xlu1 %329  ;;  %v6021_v43 = vpop.xlane.xlu0 %326 }
  0xbb   :  { %v6023_v46 = vpop.xlane.xlu1 %335  ;;  %v6025_v3 = vpop.xlane.xlu0 %332 }
  0xbf   :  { %v6027_v49 = vpop.xlane.xlu1 %341  ;;  %v6029_v5 = vpop.xlane.xlu0 %338 }
  0xc3   :  { %v6031_v19 = vpop.xlane.xlu1 %347  ;;  %v6033_v56 = vpop.xlane.xlu0 %344 }
  0xc7   :  { %v6035_v18 = vpop.xlane.xlu1 %353  ;;  %v6037_v23 = vpop.xlane.xlu0 %350 }
  0xcb   :  { %v6039_v41 = vpop.xlane.xlu1 %359  ;;  %v6041_v20 = vpop.xlane.xlu0 %356 }
  0xcf   :  { %v6043_v57 = vpop.xlane.xlu1 %365  ;;  %v6045_v60 = vpop.xlane.xlu0 %362 }
  0xd3   :  { %v402_v28 = vpop.permute.xlu1 %401  ;;  %v400_v54 = vpop.permute.xlu0 %399 }
  0xd4   :  { %v498_v10 = vsel %vm270_vm0, %v402_v28, 0.0  ;;  %v495_v51 = vsel %vm270_vm0, %v400_v54, 0.0 }
  0xd5   :  { %499 = vadd.xlane.f32.xlu1 %v498_v10  ;;  %496 = vadd.xlane.f32.xlu0 %v495_v51 }
  0xd7   :  { %v404_v11 = vpop.permute.xlu1 %403  ;;  %v408_v24 = vpop.permute.xlu0 %407 }
  0xd8   :  { %v501_v27 = vsel %vm270_vm0, %v404_v11, 0.0  ;;  %v507_v52 = vsel %vm270_vm0, %v408_v24, 0.0 }
  0xd9   :  { %502 = vadd.xlane.f32.xlu0 %v501_v27 }
  0xdb   :  { %v406_v37 = vpop.permute.xlu1 %405  ;;  %v412_v4 = vpop.permute.xlu0 %411 }
  0xdc   :  { %v504_v16 = vsel %vm270_vm0, %v406_v37, 0.0  ;;  %v513_v10 = vsel %vm270_vm0, %v412_v4, 0.0 }
  0xdd   :  { %505 = vadd.xlane.f32.xlu0 %v504_v16 }
  0xdf   :  { %v410_v48 = vpop.permute.xlu1 %409  ;;  %v416_v28 = vpop.permute.xlu0 %415 }
  0xe0   :  { %v510_v63 = vsel %vm270_vm0, %v410_v48, 0.0  ;;  %v519_v37 = vsel %vm270_vm0, %v416_v28, 0.0 }
  0xe1   :  { %511 = vadd.xlane.f32.xlu1 %v510_v63  ;;  %508 = vadd.xlane.f32.xlu0 %v507_v52 }
  0xe3   :  { %v414_v54 = vpop.permute.xlu1 %413  ;;  %v420_v11 = vpop.permute.xlu0 %419 }
  0xe4   :  { %v516_v51 = vsel %vm270_vm0, %v414_v54, 0.0  ;;  %v525_v63 = vsel %vm270_vm0, %v420_v11, 0.0 }
  0xe5   :  { %517 = vadd.xlane.f32.xlu1 %v516_v51  ;;  %514 = vadd.xlane.f32.xlu0 %v513_v10 }
  0xe7   :  { %v418_v27 = vpop.permute.xlu1 %417  ;;  %v424_v2 = vpop.permute.xlu0 %423 }
  0xe8   :  { %v522_v16 = vsel %vm270_vm0, %v418_v27, 0.0  ;;  %v531_v54 = vsel %vm270_vm0, %v424_v2, 0.0 }
  0xe9   :  { %523 = vadd.xlane.f32.xlu1 %v522_v16  ;;  %520 = vadd.xlane.f32.xlu0 %v519_v37 }
  0xeb   :  { %v422_v24 = vpop.permute.xlu1 %421  ;;  %v428_v48 = vpop.permute.xlu0 %427 }
  0xec   :  { %v528_v52 = vsel %vm270_vm0, %v422_v24, 0.0  ;;  %v537_v27 = vsel %vm270_vm0, %v428_v48, 0.0 }
  0xed   :  { %529 = vadd.xlane.f32.xlu1 %v528_v52  ;;  %526 = vadd.xlane.f32.xlu0 %v525_v63 }
  0xef   :  { %v426_v4 = vpop.permute.xlu1 %425  ;;  %v432_v51 = vpop.permute.xlu0 %431 }
  0xf0   :  { %v534_v10 = vsel %vm270_vm0, %v426_v4, 0.0  ;;  %v543_v24 = vsel %vm270_vm0, %v432_v51, 0.0 }
  0xf1   :  { %535 = vadd.xlane.f32.xlu1 %v534_v10  ;;  %532 = vadd.xlane.f32.xlu0 %v531_v54 }
  0xf3   :  { %v430_v28 = vpop.permute.xlu1 %429  ;;  %v436_v16 = vpop.permute.xlu0 %435 }
  0xf4   :  { %v540_v37 = vsel %vm270_vm0, %v430_v28, 0.0  ;;  %v549_v4 = vsel %vm270_vm0, %v436_v16, 0.0 }
  0xf5   :  { %541 = vadd.xlane.f32.xlu1 %v540_v37  ;;  %538 = vadd.xlane.f32.xlu0 %v537_v27 }
  0xf7   :  { %v434_v11 = vpop.permute.xlu1 %433  ;;  %v440_v52 = vpop.permute.xlu0 %439 }
  0xf8   :  { %v546_v63 = vsel %vm270_vm0, %v434_v11, 0.0  ;;  %v555_v28 = vsel %vm270_vm0, %v440_v52, 0.0 }
  0xf9   :  { %547 = vadd.xlane.f32.xlu1 %v546_v63  ;;  %544 = vadd.xlane.f32.xlu0 %v543_v24 }
  0xfb   :  { %v438_v2 = vpop.permute.xlu1 %437  ;;  %v444_v10 = vpop.permute.xlu0 %443 }
  0xfc   :  { %v552_v54 = vsel %vm270_vm0, %v438_v2, 0.0  ;;  %v561_v11 = vsel %vm270_vm0, %v444_v10, 0.0 }
  0xfd   :  { %553 = vadd.xlane.f32.xlu1 %v552_v54  ;;  %550 = vadd.xlane.f32.xlu0 %v549_v4 }
  0xff   :  { %v442_v48 = vpop.permute.xlu1 %441  ;;  %v448_v37 = vpop.permute.xlu0 %447 }
 0x100   :  { %v558_v27 = vsel %vm270_vm0, %v442_v48, 0.0  ;;  %v567_v2 = vsel %vm270_vm0, %v448_v37, 0.0 }
 0x101   :  { %559 = vadd.xlane.f32.xlu1 %v558_v27  ;;  %556 = vadd.xlane.f32.xlu0 %v555_v28 }
 0x103   :  { %v446_v51 = vpop.permute.xlu1 %445  ;;  %v452_v63 = vpop.permute.xlu0 %451 }
 0x104   :  { %v564_v24 = vsel %vm270_vm0, %v446_v51, 0.0  ;;  %v573_v48 = vsel %vm270_vm0, %v452_v63, 0.0  ;;  %v7714_v63 = vunpack.c.l.bf16 %v5413_v1 }
 0x105   :  { %565 = vadd.xlane.f32.xlu1 %v564_v24  ;;  %562 = vadd.xlane.f32.xlu0 %v561_v11 }
 0x107   :  { %v450_v16 = vpop.permute.xlu1 %449  ;;  %v456_v52 = vpop.permute.xlu0 %455 }
 0x108   :  { %v570_v4 = vsel %vm270_vm0, %v450_v16, 0.0  ;;  %v579_v27 = vsel %vm270_vm0, %v456_v52, 0.0  ;;  %v7716_v52 = vunpack.c.l.bf16 %v5444_v15 }
 0x109   :  { %571 = vadd.xlane.f32.xlu1 %v570_v4  ;;  %568 = vadd.xlane.f32.xlu0 %v567_v2  ;;  %v7715_v2 = vunpack.c.h.bf16 %v5413_v1 }
 0x10b   :  { %v454_v54 = vpop.permute.xlu1 %453  ;;  %v460_v11 = vpop.permute.xlu0 %459  ;;  %v4923_v4 = vpack.i.bf16 %v7715_v2, %v7714_v63  ;;  %v7726_v2 = vunpack.c.l.bf16 %v5578_v30 }
 0x10c   :  { %v576_v28 = vsel %vm270_vm0, %v454_v54, 0.0  ;;  %v585_v24 = vsel %vm270_vm0, %v460_v11, 0.0  ;;  %v7717_v54 = vunpack.c.h.bf16 %v5444_v15  ;;  %v7721_v11 = vunpack.c.h.bf16 %v5488_v34 }
 0x10d   :  { %577 = vadd.xlane.f32.xlu1 %v576_v28  ;;  %574 = vadd.xlane.f32.xlu0 %v573_v48  ;;  %v7718_v28 = vunpack.c.l.bf16 %v5428_v7 }
 0x10e   :  { %v4928_v48 = vpack.i.bf16 %v7717_v54, %v7716_v52  ;;  %v7728_v52 = vunpack.c.l.bf16 %v5615_v0 }
 0x10f   :  { %v458_v10 = vpop.permute.xlu1 %457 }
 0x110   :  { %v582_v51 = vsel %vm270_vm0, %v458_v10, 0.0  ;;  %v7719_v10 = vunpack.c.h.bf16 %v5428_v7  ;;  %v7725_v7 = vunpack.c.h.bf16 %v5545_v59 }
 0x111   :  { %583 = vadd.xlane.f32.xlu1 %v582_v51  ;;  %580 = vadd.xlane.f32.xlu0 %v579_v27  ;;  %v7720_v51 = vunpack.c.l.bf16 %v5488_v34  ;;  %v7727_v34 = vunpack.c.h.bf16 %v5578_v30  ;;  %v7733_v30 = vunpack.c.l.bf16 %v5709_v12 }
 0x112   :  { %v4918_v27 = vpack.i.bf16 %v7719_v10, %v7718_v28  ;;  %v7732_v10 = vunpack.c.h.bf16 %v5680_v39 }
 0x113   :  { %v462_v37 = vpop.permute.xlu1 %461  ;;  %v4933_v1 = vpack.i.bf16 %v7721_v11, %v7720_v51  ;;  %v7734_v51 = vunpack.c.h.bf16 %v5709_v12  ;;  %v7735_v11 = vunpack.c.l.bf16 %v5748_v14  ;;  %v7740_v12 = vunpack.c.h.bf16 %v5810_v33 }
 0x114   :  { %v588_v16 = vsel %vm270_vm0, %v462_v37, 0.0  ;;  %v7722_v37 = vunpack.c.l.bf16 %v5516_v45 }
 0x115   :  { %589 = vadd.xlane.f32.xlu1 %v588_v16  ;;  %586 = vadd.xlane.f32.xlu0 %v585_v24  ;;  %v7723_v24 = vunpack.c.h.bf16 %v5516_v45  ;;  %v7724_v16 = vunpack.c.l.bf16 %v5545_v59  ;;  %v7729_v45 = vunpack.c.l.bf16 %v5634_v31  ;;  %v7731_v59 = vunpack.c.l.bf16 %v5680_v39 }
 0x116   :  { %v7738_v39 = vunpack.c.h.bf16 %v5765_v47 }
 0x117   :  { %v4938_v15 = vpack.i.bf16 %v7723_v24, %v7722_v37  ;;  %v4943_v63 = vpack.i.bf16 %v7725_v7, %v7724_v16  ;;  %v4953_v54 = vpack.i.bf16 %v7729_v45, %v7728_v52  ;;  %v7737_v37 = vunpack.c.l.bf16 %v5765_v47  ;;  %v7741_v7 = vld [vmem:[#allocation16_spill] sm:$0xff] }
 0x118   :  { %v7744_v47 = vunpack.c.h.bf16 %v5615_v0 }
 0x126   :  { %4924 = vrot.lane.b32.xlu1 %v4923_v4, %s5384_s2  ;;  %v4948_v4 = vpack.i.bf16 %v7727_v34, %v7726_v2 }
 0x12a   :  { %4929 = vrot.lane.b32.xlu1 %v4928_v48, %s5384_s2  ;;  %v7730_v48 = vunpack.c.h.bf16 %v5634_v31  ;;  %v7736_v31 = vunpack.c.h.bf16 %v5748_v14  ;;  %v7743_v14 = vunpack.c.h.bf16 %v7741_v7 }
 0x12b   :  { %4919 = vrot.lane.b32.xlu0 %v4918_v27, %s5384_s2  ;;  %v4963_v27 = vpack.i.bf16 %v7733_v30, %v7732_v10 }
 0x12c   :  { %v4958_v28 = vpack.i.bf16 %v7731_v59, %v7730_v48  ;;  %v4973_v24 = vpack.i.bf16 %v7737_v37, %v7736_v31  ;;  %v4988_v34 = vpack.i.bf16 %v4804_v25, %v7743_v14 }
 0x12e   :  { %4934 = vrot.lane.b32.xlu1 %v4933_v1, %s5384_s2  ;;  %v4968_v1 = vpack.i.bf16 %v7735_v11, %v7734_v51 }
 0x12f   :  { %4939 = vrot.lane.b32.xlu0 %v4938_v15, %s5384_s2  ;;  %v7739_v15 = vunpack.c.l.bf16 %v5810_v33 }
 0x131   :  { %v4978_v16 = vpack.i.bf16 %v7739_v15, %v7738_v39 }
 0x132   :  { %4944 = vrot.lane.b32.xlu1 %v4943_v63, %s5384_s2  ;;  %v7742_v63 = vunpack.c.l.bf16 %v7741_v7 }
 0x133   :  { %4949 = vrot.lane.b32.xlu0 %v4948_v4, %s5384_s2  ;;  %v7745_v4 = vunpack.c.h.bf16 %v5880_v44 }
 0x134   :  { %v4983_v2 = vpack.i.bf16 %v7742_v63, %v7740_v12 }
 0x135   :  { %v4993_v52 = vpack.i.bf16 %v7745_v4, %v7744_v47 }
 0x136   :  { %4954 = vrot.lane.b32.xlu1 %v4953_v54, %s5384_s2 }
 0x137   :  { %4959 = vrot.lane.b32.xlu0 %v4958_v28, %s5384_s2 }
 0x13a   :  { %4964 = vrot.lane.b32.xlu1 %v4963_v27, %s5384_s2 }
 0x13b   :  { %4969 = vrot.lane.b32.xlu0 %v4968_v1, %s5384_s2 }
 0x13e   :  { %4974 = vrot.lane.b32.xlu1 %v4973_v24, %s5384_s2 }
 0x13f   :  { %4979 = vrot.lane.b32.xlu0 %v4978_v16, %s5384_s2 }
 0x142   :  { %4984 = vrot.lane.b32.xlu1 %v4983_v2, %s5384_s2 }
 0x143   :  { %4989 = vrot.lane.b32.xlu0 %v4988_v34, %s5384_s2 }
 0x146   :  { %4994 = vrot.lane.b32.xlu1 %v4993_v52, %s5384_s2 }
 0x15e   :  { %v6159_v33 = vpop.xlane.xlu0 %496  ;;  %v6163_v54 = vpop.xlane.xlu1 %499 }
 0x162   :  { %v6161_v45 = vpop.xlane.xlu0 %502 }
 0x166   :  { %v6165_v48 = vpop.xlane.xlu0 %505 }
 0x16a   :  { %v6167_v25 = vpop.xlane.xlu1 %511  ;;  %v6169_v59 = vpop.xlane.xlu0 %508 }
 0x16e   :  { %v6171_v0 = vpop.xlane.xlu1 %517  ;;  %v6173_v44 = vpop.xlane.xlu0 %514 }
 0x16f   :  { %7746 = vst [vmem:[#allocation16_spill] sm:$0xff] %v6173_v44 }
 0x172   :  { %v6175_v28 = vpop.xlane.xlu1 %523  ;;  %v6177_v10 = vpop.xlane.xlu0 %520 }
 0x173   :  { %7747 = vst [vmem:[#allocation17_spill] sm:$0xff] %v6175_v28  ;;  %7748 = vst [vmem:[#allocation18_spill] sm:$0xff] %v6177_v10 }
 0x176   :  { %v6179_v30 = vpop.xlane.xlu1 %529  ;;  %v6181_v27 = vpop.xlane.xlu0 %526 }
 0x177   :  { %7749 = vst [vmem:[#allocation19_spill] sm:$0xff] %v6179_v30  ;;  %7750 = vst [vmem:[#allocation20_spill] sm:$0xff] %v6181_v27  ;;  %v7777_v27 = vld [vmem:[#allocation4_spill] sm:$0xff] }
 0x178   :  { %v7778_v30 = vunpack.c.h.bf16 %v7777_v27 }
 0x17a   :  { %v6183_v51 = vpop.xlane.xlu1 %535  ;;  %v6185_v11 = vpop.xlane.xlu0 %532 }
 0x17b   :  { %7751 = vst [vmem:[#allocation21_spill] sm:$0xff] %v6183_v51  ;;  %7752 = vst [vmem:[#allocation22_spill] sm:$0xff] %v6185_v11 }
 0x17e   :  { %v6187_v1 = vpop.xlane.xlu1 %541  ;;  %v6189_v31 = vpop.xlane.xlu0 %538 }
 0x17f   :  { %7753 = vst [vmem:[#allocation23_spill] sm:$0xff] %v6187_v1  ;;  %7754 = vst [vmem:[#allocation24_spill] sm:$0xff] %v6189_v31 }
 0x182   :  { %v6191_v37 = vpop.xlane.xlu1 %547  ;;  %v6193_v24 = vpop.xlane.xlu0 %544 }
 0x183   :  { %7755 = vst [vmem:[#allocation25_spill] sm:$0xff] %v6191_v37  ;;  %7756 = vst [vmem:[#allocation26_spill] sm:$0xff] %v6193_v24  ;;  %v7771_v37 = vld [vmem:[#allocation3_spill] sm:$0xff] }
 0x186   :  { %v6195_v39 = vpop.xlane.xlu1 %553  ;;  %v6197_v15 = vpop.xlane.xlu0 %550 }
 0x187   :  { %7757 = vst [vmem:[#allocation27_spill] sm:$0xff] %v6195_v39  ;;  %7758 = vst [vmem:[#allocation28_spill] sm:$0xff] %v6197_v15 }
 0x18a   :  { %v6199_v16 = vpop.xlane.xlu1 %559  ;;  %v6201_v12 = vpop.xlane.xlu0 %556 }
 0x18b   :  { %7759 = vst [vmem:[#allocation29_spill] sm:$0xff] %v6199_v16  ;;  %7760 = vst [vmem:[#allocation30_spill] sm:$0xff] %v6201_v12 }
 0x18e   :  { %v6203_v7 = vpop.xlane.xlu1 %565  ;;  %v6205_v63 = vpop.xlane.xlu0 %562 }
 0x18f   :  { %7761 = vst [vmem:[#allocation31_spill] sm:$0xff] %v6203_v7  ;;  %7762 = vst [vmem:[#allocation32_spill] sm:$0xff] %v6205_v63 }
 0x192   :  { %v6207_v2 = vpop.xlane.xlu1 %571  ;;  %v6209_v14 = vpop.xlane.xlu0 %568 }
 0x193   :  { %7763 = vst [vmem:[#allocation33_spill] sm:$0xff] %v6207_v2  ;;  %7764 = vst [vmem:[#allocation34_spill] sm:$0xff] %v6209_v14  ;;  %v7772_v14 = vunpack.c.h.bf16 %v7771_v37 }
 0x196   :  { %v6211_v34 = vpop.xlane.xlu1 %577  ;;  %v6213_v47 = vpop.xlane.xlu0 %574 }
 0x197   :  { %7765 = vst [vmem:[#allocation35_spill] sm:$0xff] %v6211_v34  ;;  %7766 = vst [vmem:[#allocation36_spill] sm:$0xff] %v6213_v47  ;;  %v7773_v34 = vunpack.c.l.bf16 %v7771_v37  ;;  %v7779_v37 = vunpack.c.l.bf16 %v7777_v27 }
 0x19a   :  { %v6215_v4 = vpop.xlane.xlu1 %583  ;;  %v6217_v52 = vpop.xlane.xlu0 %580 }
 0x19b   :  { %7767 = vst [vmem:[#allocation37_spill] sm:$0xff] %v6215_v4  ;;  %7768 = vst [vmem:[#allocation38_spill] sm:$0xff] %v6217_v52  ;;  %v7774_v4 = vld [vmem:[#allocation2_spill] sm:$0xff] }
 0x19c   :  { %v7775_v11 = vunpack.c.h.bf16 %v7774_v4 }
 0x19e   :  { %v6219_v15 = vpop.xlane.xlu1 %589  ;;  %v6221_v16 = vpop.xlane.xlu0 %586 }
 0x19f   :  { %7769 = vst [vmem:[#allocation39_spill] sm:$0xff] %v6219_v15  ;;  %7770 = vst [vmem:[#allocation40_spill] sm:$0xff] %v6221_v16  ;;  %v7776_v15 = vunpack.c.l.bf16 %v7774_v4  ;;  %v7783_v4 = vld [vmem:[#allocation6_spill] sm:$0xff] }
 0x1a2   :  { %v4925_v12 = vpop.permute.xlu1 %4924  ;;  %v4920_v7 = vpop.permute.xlu0 %4919 }
 0x1a3   :  { %v4922_v39 = vunpack.i.h.bf16 %v4920_v7  ;;  %v4921_v63 = vunpack.i.l.bf16 %v4920_v7  ;;  %v4927_v24 = vunpack.i.h.bf16 %v4925_v12  ;;  %v4926_v2 = vunpack.i.l.bf16 %v4925_v12 }
 0x1a5   :  { %v720_v31 = vmul.f32 %v4922_v39, %v7772_v14  ;;  %v719_v47 = vmul.f32 %v4921_v63, %v7773_v34  ;;  %v722_v52 = vmul.f32 %v4927_v24, %v7775_v11  ;;  %v721_v51 = vmul.f32 %v4926_v2, %v7776_v15 }
 0x1a6   :  { %v4930_v1 = vpop.permute.xlu1 %4929  ;;  %v4940_v15 = vpop.permute.xlu0 %4939 }
 0x1a7   :  { %785 = vrot.lane.b32.xlu1 %v720_v31, %s5384_s2  ;;  %783 = vrot.lane.b32.xlu0 %v719_v47, %s5384_s2  ;;  %v4932_v7 = vunpack.i.h.bf16 %v4930_v1  ;;  %v4931_v16 = vunpack.i.l.bf16 %v4930_v1  ;;  %v7780_v31 = vld [vmem:[#allocation5_spill] sm:$0xff]  ;;  %v4941_v27 = vunpack.i.l.bf16 %v4940_v15 }
 0x1a8   :  { %v7781_v14 = vunpack.c.h.bf16 %v7780_v31  ;;  %v7782_v1 = vunpack.c.l.bf16 %v7780_v31 }
 0x1a9   :  { %v724_v39 = vmul.f32 %v4932_v7, %v7778_v30  ;;  %v723_v63 = vmul.f32 %v4931_v16, %v7779_v37  ;;  %v4942_v30 = vunpack.i.h.bf16 %v4940_v15  ;;  %v7785_v7 = vunpack.c.l.bf16 %v7783_v4 }
 0x1aa   :  { %v4935_v12 = vpop.permute.xlu1 %4934  ;;  %v6245_v16 = vpop.permute.xlu0 %4949 }
 0x1ab   :  { %789 = vrot.lane.b32.xlu1 %v722_v52, %s5384_s2  ;;  %787 = vrot.lane.b32.xlu0 %v721_v51, %s5384_s2  ;;  %v4937_v11 = vunpack.i.h.bf16 %v4935_v12  ;;  %v4936_v24 = vunpack.i.l.bf16 %v4935_v12  ;;  %v7784_v51 = vunpack.c.h.bf16 %v7783_v4  ;;  %v727_v12 = vmul.f32 %v4941_v27, %v7785_v7  ;;  %v7791_v4 = vld [vmem:[#allocation8_spill] sm:$0xff] }
 0x1ad   :  { %v726_v34 = vmul.f32 %v4937_v11, %v7781_v14  ;;  %v725_v47 = vmul.f32 %v4936_v24, %v7782_v1  ;;  %v728_v52 = vmul.f32 %v4942_v30, %v7784_v51  ;;  %v7792_v51 = vunpack.c.l.bf16 %v7791_v4 }
 0x1ae   :  { %v4945_v2 = vpop.permute.xlu1 %4944  ;;  %v4960_v30 = vpop.permute.xlu0 %4959 }
 0x1af   :  { %793 = vrot.lane.b32.xlu1 %v724_v39, %s5384_s2  ;;  %791 = vrot.lane.b32.xlu0 %v723_v63, %s5384_s2  ;;  %v4947_v37 = vunpack.i.h.bf16 %v4945_v2  ;;  %v4946_v11 = vunpack.i.l.bf16 %v4945_v2  ;;  %v7786_v39 = vld [vmem:[#allocation7_spill] sm:$0xff] }
 0x1b0   :  { %v7787_v63 = vunpack.c.h.bf16 %v7786_v39  ;;  %v7788_v15 = vunpack.c.l.bf16 %v7786_v39  ;;  %v7793_v39 = vld [vmem:[#allocation11_spill] sm:$0xff] }
 0x1b2   :  { %v6253_v24 = vpop.permute.xlu1 %4954  ;;  %v730_v31 = vmul.f32 %v4947_v37, %v7787_v63  ;;  %v729_v14 = vmul.f32 %v4946_v11, %v7788_v15  ;;  %v4962_v37 = vunpack.i.h.bf16 %v4960_v30  ;;  %v4961_v11 = vunpack.i.l.bf16 %v4960_v30 }
 0x1b3   :  { %797 = vrot.lane.b32.xlu1 %v726_v34, %s5384_s2  ;;  %795 = vrot.lane.b32.xlu0 %v725_v47, %s5384_s2  ;;  %v4957_v1 = vunpack.i.h.bf16 %v6253_v24  ;;  %v4951_v34 = vunpack.i.l.bf16 %v6245_v16  ;;  %v7789_v47 = vld [vmem:[#allocation10_spill] sm:$0xff] }
 0x1b4   :  { %v7790_v27 = vunpack.c.l.bf16 %v7789_v47  ;;  %v7795_v15 = vunpack.c.h.bf16 %v7789_v47 }
 0x1b5   :  { %v731_v7 = vmul.f32 %v4951_v34, %v7792_v51  ;;  %v4970_v34 = vpop.permute.xlu0 %4969  ;;  %v7796_v51 = vld [vmem:[#allocation12_spill] sm:$0xff] }
 0x1b6   :  { %v735_v2 = vmul.f32 %v4957_v1, %v7790_v27  ;;  %v736_v10 = vmul.f32 %v4961_v11, %v7795_v15  ;;  %v4971_v47 = vunpack.i.l.bf16 %v4970_v34 }
 0x1b7   :  { %801 = vrot.lane.b32.xlu1 %v728_v52, %s5384_s2  ;;  %799 = vrot.lane.b32.xlu0 %v727_v12, %s5384_s2  ;;  %v4965_v52 = vpop.permute.xlu1 %4964  ;;  %v7794_v12 = vunpack.c.l.bf16 %v7793_v39 }
 0x1b8   :  { %v4967_v1 = vunpack.i.h.bf16 %v4965_v52  ;;  %v4966_v27 = vunpack.i.l.bf16 %v4965_v52 }
 0x1b9   :  { %v737_v63 = vmul.f32 %v4962_v37, %v7794_v12  ;;  %v4972_v37 = vunpack.i.h.bf16 %v4970_v34  ;;  %v7799_v12 = vld [vmem:[#allocation13_spill] sm:$0xff] }
 0x1bb   :  { %805 = vrot.lane.b32.xlu1 %v730_v31, %s5384_s2  ;;  %803 = vrot.lane.b32.xlu0 %v729_v14, %s5384_s2  ;;  %v7797_v31 = vunpack.c.l.bf16 %v7796_v51  ;;  %v7798_v14 = vunpack.c.h.bf16 %v7793_v39  ;;  %v4975_v11 = vpop.permute.xlu1 %4974  ;;  %v4980_v39 = vpop.permute.xlu0 %4979 }
 0x1bc   :  { %v4977_v44 = vunpack.i.h.bf16 %v4975_v11 }
 0x1bd   :  { %v739_v28 = vmul.f32 %v4967_v1, %v7797_v31  ;;  %v738_v30 = vmul.f32 %v4966_v27, %v7798_v14  ;;  %v4976_v1 = vunpack.i.l.bf16 %v4975_v11  ;;  %v7802_v27 = vld [vmem:[#allocation14_spill] sm:$0xff]  ;;  %v4982_v14 = vunpack.i.h.bf16 %v4980_v39 }
 0x1be   :  { %v7807_v11 = vunpack.c.h.bf16 %v7802_v27 }
 0x1bf   :  { %815 = vrot.lane.b32.xlu1 %v735_v2, %s5384_s2  ;;  %807 = vrot.lane.b32.xlu0 %v731_v7, %s5384_s2  ;;  %v7800_v2 = vunpack.c.l.bf16 %v7799_v12  ;;  %v7801_v7 = vunpack.c.h.bf16 %v7796_v51  ;;  %v4985_v51 = vpop.permute.xlu1 %4984 }
 0x1c1   :  { %v741_v15 = vmul.f32 %v4972_v37, %v7800_v2  ;;  %v740_v52 = vmul.f32 %v4971_v47, %v7801_v7  ;;  %v4981_v37 = vunpack.i.l.bf16 %v4980_v39  ;;  %v7805_v47 = vld [vmem:[#allocation15_spill] sm:$0xff]  ;;  %v4987_v7 = vunpack.i.h.bf16 %v4985_v51 }
 0x1c2   :  { %v7809_v39 = vunpack.c.h.bf16 %v7805_v47 }
 0x1c3   :  { %819 = vrot.lane.b32.xlu1 %v737_v63, %s5384_s2  ;;  %817 = vrot.lane.b32.xlu0 %v736_v10, %s5384_s2  ;;  %v7803_v63 = vunpack.c.l.bf16 %v7802_v27  ;;  %v7804_v10 = vunpack.c.h.bf16 %v7799_v12  ;;  %v4990_v12 = vpop.permute.xlu0 %4989  ;;  %v4952_v27 = vunpack.i.h.bf16 %v6245_v16 }
 0x1c5   :  { %v743_v31 = vmul.f32 %v4977_v44, %v7803_v63  ;;  %v742_v34 = vmul.f32 %v4976_v1, %v7804_v10  ;;  %v4986_v44 = vunpack.i.l.bf16 %v4985_v51  ;;  %v4991_v63 = vunpack.i.l.bf16 %v4990_v12 }
 0x1c6   :  { %v4992_v10 = vunpack.i.h.bf16 %v4990_v12  ;;  %v7811_v51 = vunpack.c.h.bf16 %v7791_v4 }
 0x1c7   :  { %821 = vrot.lane.b32.xlu0 %v738_v30, %s5384_s2  ;;  %823 = vrot.lane.b32.xlu1 %v739_v28, %s5384_s2  ;;  %v7806_v30 = vunpack.c.l.bf16 %v7805_v47  ;;  %v744_v28 = vmul.f32 %v4981_v37, %v7807_v11  ;;  %v4956_v37 = vunpack.i.l.bf16 %v6253_v24 }
 0x1c8   :  { %v732_v47 = vmul.f32 %v4952_v27, %v7811_v51 }
 0x1c9   :  { %v745_v2 = vmul.f32 %v4982_v14, %v7806_v30  ;;  %v4995_v14 = vpop.permute.xlu1 %4994  ;;  %v7812_v30 = vunpack.c.l.bf16 %v5900_v53 }
 0x1ca   :  { %v4997_v16 = vunpack.i.h.bf16 %v4995_v14  ;;  %v4996_v11 = vunpack.i.l.bf16 %v4995_v14  ;;  %v4582_v14 = vmul.f32 -1.442695, %v5983_v17  ;;  %v4587_v17 = vmul.f32 -1.442695, %v5991_v26 }
 0x1cb   :  { %825 = vrot.lane.b32.xlu0 %v740_v52, %s5384_s2  ;;  %827 = vrot.lane.b32.xlu1 %v741_v15, %s5384_s2  ;;  %v7808_v52 = vunpack.c.l.bf16 %v5866_v62  ;;  %v746_v15 = vmul.f32 %v4986_v44, %v7809_v39  ;;  %v7815_v44 = vunpack.c.h.bf16 %v5900_v53  ;;  %v4588_v26 = vmul.f32 -1.442695, %v5997_v8 }
 0x1cd   :  { %v747_v1 = vmul.f32 %v4987_v7, %v7808_v52  ;;  %v750_v24 = vmul.f32 %v4997_v16, %v7815_v44 }
 0x1cf   :  { %829 = vrot.lane.b32.xlu0 %v742_v34, %s5384_s2  ;;  %831 = vrot.lane.b32.xlu1 %v743_v31, %s5384_s2  ;;  %v7810_v34 = vunpack.c.h.bf16 %v5866_v62 }
 0x1d1   :  { %v748_v31 = vmul.f32 %v4991_v63, %v7810_v34 }
 0x1d3   :  { %833 = vrot.lane.b32.xlu0 %v744_v28, %s5384_s2  ;;  %835 = vrot.lane.b32.xlu1 %v745_v2, %s5384_s2  ;;  %v749_v2 = vmul.f32 %v4992_v10, %v7812_v30  ;;  %v7813_v28 = vld [vmem:[#allocation9_spill] sm:$0xff]  ;;  %v4583_v30 = vmul.f32 -1.442695, %v5989_v22  ;;  %v4586_v22 = vmul.f32 -1.442695, %v5993_v35 }
 0x1d4   :  { %v7814_v62 = vunpack.c.l.bf16 %v7813_v28  ;;  %v7816_v4 = vunpack.c.h.bf16 %v7813_v28 }
 0x1d6   :  { %v733_v7 = vmul.f32 %v4956_v37, %v7814_v62  ;;  %v734_v12 = vmul.f32 %v4996_v11, %v7816_v4 }
 0x1d7   :  { %837 = vrot.lane.b32.xlu0 %v746_v15, %s5384_s2  ;;  %839 = vrot.lane.b32.xlu1 %v747_v1, %s5384_s2 }
 0x1db   :  { %809 = vrot.lane.b32.xlu0 %v732_v47, %s5384_s2  ;;  %841 = vrot.lane.b32.xlu1 %v748_v31, %s5384_s2  ;;  %v4584_v31 = vmul.f32 -1.442695, %v5980_v13  ;;  %v4585_v47 = vmul.f32 -1.442695, %v5986_v21 }
 0x1dd   :  { %5000 = vpow2.f32 %v4584_v31 }
 0x1de   :  { %5002 = vpow2.f32 %v4582_v14  ;;  %v4591_v14 = vmul.f32 -1.442695, %v5999_v42 }
 0x1df   :  { %811 = vrot.lane.b32.xlu0 %v733_v7, %s5384_s2  ;;  %843 = vrot.lane.b32.xlu1 %v749_v2, %s5384_s2  ;;  %5004 = vpow2.f32 %v4585_v47 }
 0x1e0   :  { %5006 = vpow2.f32 %v4583_v30  ;;  %v4590_v30 = vmul.f32 -1.442695, %v6001_v50 }
 0x1e1   :  { %5008 = vpow2.f32 %v4587_v17 }
 0x1e2   :  { %5010 = vpow2.f32 %v4586_v22 }
 0x1e3   :  { %845 = vrot.lane.b32.xlu1 %v750_v24, %s5384_s2  ;;  %813 = vrot.lane.b32.xlu0 %v734_v12, %s5384_s2  ;;  %v4589_v12 = vmul.f32 -1.442695, %v5995_v38 }
 0x1e5   :  { %5012 = vpow2.f32 %v4589_v12 }
 0x1e6   :  { %5014 = vpow2.f32 %v4588_v26 }
 0x1ea   :  { %v5001_v7 = vpop.eup %5000 }
 0x1eb   :  { %v5003_v4 = vpop.eup %5002 }
 0x219   :  { %v786_v52 = vpop.permute.xlu1 %785  ;;  %v784_v1 = vpop.permute.xlu0 %783 }
 0x21a   :  { %v879_v39 = vsel %vm270_vm0, %v784_v1, 0.0  ;;  %v882_v15 = vsel %vm270_vm0, %v786_v52, 0.0 }
 0x21b   :  { %883 = vadd.xlane.f32.xlu1 %v882_v15  ;;  %880 = vadd.xlane.f32.xlu0 %v879_v39  ;;  %v1073_v39 = vadd.f32 1.0, %v5001_v7  ;;  %v5005_v15 = vpop.eup %5004  ;;  %v4595_v7 = vmul.f32 -1.442695, %v6007_v6  ;;  %v4596_v6 = vmul.f32 -1.442695, %v6013_v40 }
 0x21c   :  { %v5007_v31 = vpop.eup %5006  ;;  %v1074_v8 = vadd.f32 1.0, %v5005_v15  ;;  %v4601_v40 = vmul.f32 -1.442695, %v6019_v36 }
 0x21d   :  { %v790_v63 = vpop.permute.xlu1 %789  ;;  %v788_v53 = vpop.permute.xlu0 %787  ;;  %5016 = vrcp.f32 %v1073_v39 }
 0x21e   :  { %v885_v27 = vsel %vm270_vm0, %v788_v53, 0.0  ;;  %v1071_v53 = vadd.f32 1.0, %v5003_v4  ;;  %v888_v38 = vsel %vm270_vm0, %v790_v63, 0.0  ;;  %v4592_v63 = vmul.f32 -1.442695, %v6005_v61  ;;  %v5009_v50 = vpop.eup %5008 }
 0x21f   :  { %886 = vadd.xlane.f32.xlu0 %v885_v27  ;;  %v1076_v61 = vadd.f32 1.0, %v5009_v50  ;;  %v5011_v12 = vpop.eup %5010  ;;  %v4605_v50 = vmul.f32 -1.442695, %v6027_v49 }
 0x220   :  { %5018 = vrcp.f32 %v1071_v53  ;;  %v1075_v26 = vadd.f32 1.0, %v5011_v12 }
 0x221   :  { %v6330_v10 = vpop.permute.xlu1 %793  ;;  %v792_v34 = vpop.permute.xlu0 %791  ;;  %5020 = vpow2.f32 %v4591_v14 }
 0x222   :  { %v891_v42 = vsel %vm270_vm0, %v792_v34, 0.0  ;;  %5022 = vpow2.f32 %v4590_v30  ;;  %v894_v34 = vsel %vm270_vm0, %v6330_v10, 0.0  ;;  %v5013_v10 = vpop.eup %5012 }
 0x223   :  { %5024 = vrcp.f32 %v1074_v8  ;;  %v5015_v15 = vpop.eup %5014  ;;  %v4602_v8 = vmul.f32 -1.442695, %v6025_v3 }
 0x225   :  { %v6334_v37 = vpop.permute.xlu1 %797  ;;  %v6336_v51 = vpop.permute.xlu0 %795 }
 0x229   :  { %v6340_v2 = vpop.permute.xlu1 %801  ;;  %v6342_v16 = vpop.permute.xlu0 %799 }
 0x22d   :  { %v6344_v11 = vpop.permute.xlu1 %805  ;;  %v6346_v13 = vpop.permute.xlu0 %803 }
 0x231   :  { %v816_v28 = vpop.permute.xlu1 %815  ;;  %v6349_v62 = vpop.permute.xlu0 %807 }
 0x232   :  { %v927_v21 = vsel %vm270_vm0, %v816_v28, 0.0  ;;  %v1072_v28 = vadd.f32 1.0, %v5007_v31  ;;  %v900_v31 = vsel %vm270_vm0, %v6334_v37, 0.0 }
 0x233   :  { %928 = vadd.xlane.f32.xlu0 %v927_v21  ;;  %v4593_v21 = vmul.f32 -1.442695, %v6003_v55  ;;  %v4597_v55 = vmul.f32 -1.442695, %v6011_v32  ;;  %v897_v32 = vsel %vm270_vm0, %v6336_v51, 0.0  ;;  %v1078_v51 = vadd.f32 1.0, %v5013_v10 }
 0x234   :  { %5026 = vrcp.f32 %v1072_v28  ;;  %v903_v28 = vsel %vm270_vm0, %v6342_v16, 0.0 }
 0x235   :  { %v820_v44 = vpop.permute.xlu1 %819  ;;  %v818_v24 = vpop.permute.xlu0 %817  ;;  %5028 = vpow2.f32 %v4593_v21 }
 0x236   :  { %v933_v52 = vsel %vm270_vm0, %v820_v44, 0.0  ;;  %v930_v1 = vsel %vm270_vm0, %v818_v24, 0.0  ;;  %v4594_v24 = vmul.f32 -1.442695, %v6009_v9  ;;  %5030 = vpow2.f32 %v4592_v63 }
 0x237   :  { %934 = vadd.xlane.f32.xlu1 %v933_v52  ;;  %931 = vadd.xlane.f32.xlu0 %v930_v1  ;;  %5032 = vpow2.f32 %v4595_v7  ;;  %v4599_v9 = vmul.f32 -1.442695, %v6015_v58  ;;  %v4598_v1 = vmul.f32 -1.442695, %v6017_v29  ;;  %v4600_v58 = vmul.f32 -1.442695, %v6021_v43 }
 0x238   :  { %5034 = vpow2.f32 %v4594_v24 }
 0x239   :  { %v822_v35 = vpop.permute.xlu0 %821  ;;  %v824_v27 = vpop.permute.xlu1 %823  ;;  %5036 = vpow2.f32 %v4597_v55 }
 0x23a   :  { %v936_v47 = vsel %vm270_vm0, %v822_v35, 0.0  ;;  %v939_v17 = vsel %vm270_vm0, %v824_v27, 0.0  ;;  %5038 = vrcp.f32 %v1076_v61  ;;  %v6379_v35 = vpop.eup %5016 }
 0x23b   :  { %889 = vadd.xlane.f32.xlu0 %v888_v38  ;;  %937 = vadd.xlane.f32.xlu1 %v936_v47  ;;  %5040 = vpow2.f32 %v4596_v6  ;;  %v6382_v27 = vpop.eup %5018  ;;  %v1077_v38 = vadd.f32 1.0, %v5015_v15  ;;  %v4603_v47 = vmul.f32 -1.442695, %v6023_v46 }
 0x23c   :  { %5042 = vpow2.f32 %v4599_v9  ;;  %v5021_v14 = vpop.eup %5020 }
 0x23d   :  { %v826_v22 = vpop.permute.xlu0 %825  ;;  %v828_v4 = vpop.permute.xlu1 %827  ;;  %5044 = vpow2.f32 %v4598_v1  ;;  %v1080_v37 = vadd.f32 1.0, %v5021_v14 }
 0x23e   :  { %v942_v44 = vsel %vm270_vm0, %v826_v22, 0.0  ;;  %v945_v52 = vsel %vm270_vm0, %v828_v4, 0.0  ;;  %5046 = vrcp.f32 %v1075_v26  ;;  %v5023_v36 = vpop.eup %5022  ;;  %v906_v4 = vsel %vm270_vm0, %v6340_v2, 0.0 }
 0x23f   :  { %892 = vadd.xlane.f32.xlu0 %v891_v42  ;;  %940 = vadd.xlane.f32.xlu1 %v939_v17  ;;  %5048 = vpow2.f32 %v4601_v40  ;;  %v6388_v43 = vpop.eup %5024  ;;  %v1079_v42 = vadd.f32 1.0, %v5023_v36  ;;  %v909_v2 = vsel %vm270_vm0, %v6346_v13, 0.0  ;;  %v4607_v26 = vmul.f32 -1.442695, %v6031_v19 }
 0x240   :  { %5050 = vpow2.f32 %v4600_v58  ;;  %v912_v19 = vsel %vm270_vm0, %v6344_v11, 0.0  ;;  %v4609_v11 = vmul.f32 -1.442695, %v6035_v18 }
 0x241   :  { %v830_v39 = vpop.permute.xlu0 %829  ;;  %v832_v29 = vpop.permute.xlu1 %831  ;;  %5052 = vrcp.f32 %v1078_v51 }
 0x242   :  { %v948_v53 = vsel %vm270_vm0, %v830_v39, 0.0  ;;  %v951_v30 = vsel %vm270_vm0, %v832_v29, 0.0  ;;  %v6391_v17 = vpop.eup %5026  ;;  %5054 = vrcp.f32 %v1077_v38  ;;  %v4606_v38 = vmul.f32 -1.442695, %v6033_v56 }
 0x243   :  { %895 = vadd.xlane.f32.xlu0 %v894_v34  ;;  %943 = vadd.xlane.f32.xlu1 %v942_v44  ;;  %v5029_v21 = vpop.eup %5028  ;;  %5056 = vpow2.f32 %v4603_v47  ;;  %v4604_v44 = vmul.f32 -1.442695, %v6029_v5 }
 0x244   :  { %v5031_v22 = vpop.eup %5030  ;;  %5058 = vpow2.f32 %v4602_v8  ;;  %v1082_v16 = vadd.f32 1.0, %v5029_v21 }
 0x245   :  { %v834_v63 = vpop.permute.xlu0 %833  ;;  %v836_v46 = vpop.permute.xlu1 %835  ;;  %5060 = vrcp.f32 %v1080_v37  ;;  %v1081_v34 = vadd.f32 1.0, %v5031_v22 }
 0x246   :  { %v954_v3 = vsel %vm270_vm0, %v834_v63, 0.0  ;;  %v5033_v7 = vpop.eup %5032  ;;  %5062 = vrcp.f32 %v1079_v42  ;;  %v957_v6 = vsel %vm270_vm0, %v836_v46, 0.0  ;;  %v915_v42 = vsel %vm270_vm0, %v6349_v62, 0.0 }
 0x247   :  { %898 = vadd.xlane.f32.xlu0 %v897_v32  ;;  %946 = vadd.xlane.f32.xlu1 %v945_v52  ;;  %v5035_v24 = vpop.eup %5034  ;;  %v1084_v49 = vadd.f32 1.0, %v5033_v7  ;;  %5064 = vpow2.f32 %v4605_v50  ;;  %v4608_v63 = vmul.f32 -1.442695, %v6037_v23  ;;  %v4611_v62 = vmul.f32 -1.442695, %v6039_v41 }
 0x248   :  { %v5037_v55 = vpop.eup %5036  ;;  %v1083_v5 = vadd.f32 1.0, %v5035_v24  ;;  %5066 = vpow2.f32 %v4604_v44 }
 0x249   :  { %v840_v61 = vpop.permute.xlu1 %839  ;;  %v6400_v12 = vpop.eup %5038  ;;  %5068 = vrcp.f32 %v1082_v16  ;;  %v1086_v32 = vadd.f32 1.0, %v5037_v55 }
 0x24a   :  { %v5041_v52 = vpop.eup %5040  ;;  %v838_v9 = vpop.permute.xlu0 %837  ;;  %5070 = vrcp.f32 %v1081_v34  ;;  %v963_v8 = vsel %vm270_vm0, %v840_v61, 0.0 }
 0x24b   :  { %901 = vadd.xlane.f32.xlu0 %v900_v31  ;;  %949 = vadd.xlane.f32.xlu1 %v948_v53  ;;  %v5043_v1 = vpop.eup %5042  ;;  %5072 = vrcp.f32 %v1084_v49  ;;  %v1085_v15 = vadd.f32 1.0, %v5041_v52  ;;  %v960_v40 = vsel %vm270_vm0, %v838_v9, 0.0  ;;  %v5385_v53 = vmov 0  }
 0x24c   :  { %v5045_v10 = vpop.eup %5044  ;;  %4999 = vset.pattern.permute.xlu1 %v5385_v53  ;;  %4998 = vset.pattern.permute.xlu0 %v5385_v53  ;;  %5074 = vrcp.f32 %v1083_v5  ;;  %v1088_v29 = vadd.f32 1.0, %v5043_v1  ;;  %v4615_v9 = vmul.f32 -1.442695, %v6163_v54  ;;  %v4612_v54 = vmul.f32 -1.442695, %v6045_v60 }
 0x24d   :  { %v6406_v39 = vpop.eup %5046  ;;  %v842_v51 = vpop.permute.xlu1 %841  ;;  %5076 = vrcp.f32 %v1086_v32  ;;  %v1087_v31 = vadd.f32 1.0, %v5045_v10  ;;  %v4614_v32 = vmul.f32 -1.442695, %v6159_v33  ;;  %v4613_v10 = vmul.f32 -1.442695, %v6043_v57 }
 0x24e   :  { %v5049_v58 = vpop.eup %5048  ;;  %5078 = vpow2.f32 %v4607_v26  ;;  %v810_v36 = vpop.permute.xlu0 %809  ;;  %v4616_v33 = vmul.f32 -1.442695, %v6161_v45  ;;  %v4619_v60 = vmul.f32 -1.442695, %v6167_v25  ;;  %v4618_v45 = vmul.f32 -1.442695, %v6169_v59 }
 0x24f   :  { %904 = vadd.xlane.f32.xlu0 %v903_v28  ;;  %952 = vadd.xlane.f32.xlu1 %v951_v30  ;;  %v5051_v13 = vpop.eup %5050  ;;  %5080 = vrcp.f32 %v1085_v15  ;;  %v1090_v30 = vadd.f32 1.0, %v5049_v58  ;;  %v918_v16 = vsel %vm270_vm0, %v810_v36, 0.0  ;;  %v7818_v25 = vld [vmem:[#allocation17_spill] sm:$0xff] }
 0x250   :  { %v6411_v14 = vpop.eup %5052  ;;  %5082 = vrcp.f32 %v1088_v29  ;;  %v1089_v28 = vadd.f32 1.0, %v5051_v13 }
 0x251   :  { %v6414_v47 = vpop.eup %5054  ;;  %5084 = vrcp.f32 %v1087_v31  ;;  %v844_v46 = vpop.permute.xlu1 %843 }
 0x252   :  { %v5057_v37 = vpop.eup %5056  ;;  %5086 = vpow2.f32 %v4606_v38  ;;  %v812_v44 = vpop.permute.xlu0 %811  ;;  %v969_v61 = vsel %vm270_vm0, %v844_v46, 0.0 }
 0x253   :  { %907 = vadd.xlane.f32.xlu0 %v906_v4  ;;  %955 = vadd.xlane.f32.xlu1 %v954_v3  ;;  %v5059_v21 = vpop.eup %5058  ;;  %5088 = vrcp.f32 %v1090_v30  ;;  %v1092_v50 = vadd.f32 1.0, %v5057_v37  ;;  %v966_v3 = vsel %vm270_vm0, %v842_v51, 0.0  ;;  %v4610_v4 = vmul.f32 -1.442695, %v6041_v20 }
 0x254   :  { %v6420_v56 = vpop.eup %5060  ;;  %5090 = vrcp.f32 %v1089_v28  ;;  %v1091_v18 = vadd.f32 1.0, %v5059_v21  ;;  %v921_v20 = vsel %vm270_vm0, %v812_v44, 0.0  ;;  %v4617_v51 = vmul.f32 -1.442695, %v6165_v48  ;;  %v7817_v48 = vld [vmem:[#allocation16_spill] sm:$0xff] }
 0x255   :  { %v6423_v22 = vpop.eup %5062  ;;  %5092 = vpow2.f32 %v4609_v11  ;;  %v846_v41 = vpop.permute.xlu1 %845  ;;  %v4621_v30 = vmul.f32 -1.442695, %v6171_v0  ;;  %v4620_v37 = vmul.f32 -1.442695, %v7817_v48  ;;  %v4623_v21 = vmul.f32 -1.442695, %v7818_v25 }
 0x256   :  { %v5065_v7 = vpop.eup %5064  ;;  %5094 = vpow2.f32 %v4608_v63  ;;  %v814_v52 = vpop.permute.xlu0 %813  ;;  %v972_v26 = vsel %vm270_vm0, %v846_v41, 0.0  ;;  %v7819_v63 = vld [vmem:[#allocation18_spill] sm:$0xff] }
 0x257   :  { %910 = vadd.xlane.f32.xlu0 %v909_v2  ;;  %958 = vadd.xlane.f32.xlu1 %v957_v6  ;;  %v5067_v24 = vpop.eup %5066  ;;  %5096 = vrcp.f32 %v1092_v50  ;;  %v1094_v34 = vadd.f32 1.0, %v5065_v7  ;;  %v924_v15 = vsel %vm270_vm0, %v814_v52, 0.0  ;;  %v4622_v46 = vmul.f32 -1.442695, %v7819_v63  ;;  %v7820_v7 = vld [vmem:[#allocation19_spill] sm:$0xff] }
 0x258   :  { %v6428_v23 = vpop.eup %5068  ;;  %5098 = vrcp.f32 %v1091_v18  ;;  %v1093_v6 = vadd.f32 1.0, %v5067_v24  ;;  %v4625_v18 = vmul.f32 -1.442695, %v7820_v7  ;;  %v7828_v7 = vld [vmem:[#allocation25_spill] sm:$0xff] }
 0x259   :  { %v6431_v55 = vpop.eup %5070  ;;  %5100 = vpow2.f32 %v4611_v62 }
 0x25a   :  { %v6434_v49 = vpop.eup %5072  ;;  %5102 = vpow2.f32 %v4610_v4 }
 0x25b   :  { %913 = vadd.xlane.f32.xlu0 %v912_v19  ;;  %961 = vadd.xlane.f32.xlu1 %v960_v40  ;;  %v6436_v5 = vpop.eup %5074  ;;  %5104 = vrcp.f32 %v1094_v34 }
 0x25c   :  { %v6440_v1 = vpop.eup %5076  ;;  %5106 = vrcp.f32 %v1093_v6 }
 0x25d   :  { %v5079_v2 = vpop.eup %5078  ;;  %5108 = vpow2.f32 %v4615_v9 }
 0x25e   :  { %v6446_v40 = vpop.eup %5080  ;;  %v1096_v29 = vadd.f32 1.0, %v5079_v2  ;;  %5110 = vpow2.f32 %v4614_v32  ;;  %v7822_v32 = vld [vmem:[#allocation21_spill] sm:$0xff] }
 0x25f   :  { %916 = vadd.xlane.f32.xlu0 %v915_v42  ;;  %964 = vadd.xlane.f32.xlu1 %v963_v8  ;;  %v6449_v53 = vpop.eup %5082  ;;  %5112 = vpow2.f32 %v4613_v10  ;;  %v4627_v2 = vmul.f32 -1.442695, %v7822_v32 }
 0x260   :  { %v6452_v58 = vpop.eup %5084  ;;  %5114 = vpow2.f32 %v4612_v54 }
 0x261   :  { %v5087_v57 = vpop.eup %5086  ;;  %5116 = vpow2.f32 %v4616_v33 }
 0x262   :  { %v6455_v13 = vpop.eup %5088  ;;  %5118 = vrcp.f32 %v1096_v29  ;;  %v1095_v38 = vadd.f32 1.0, %v5087_v57  ;;  %v7824_v57 = vld [vmem:[#allocation23_spill] sm:$0xff] }
 0x263   :  { %967 = vadd.xlane.f32.xlu1 %v966_v3  ;;  %919 = vadd.xlane.f32.xlu0 %v918_v16  ;;  %v6458_v31 = vpop.eup %5090  ;;  %5120 = vpow2.f32 %v4617_v51  ;;  %v7821_v16 = vld [vmem:[#allocation20_spill] sm:$0xff]  ;;  %v4629_v51 = vmul.f32 -1.442695, %v7824_v57 }
 0x264   :  { %v5093_v19 = vpop.eup %5092  ;;  %5122 = vpow2.f32 %v4619_v60  ;;  %v4624_v4 = vmul.f32 -1.442695, %v7821_v16  ;;  %v7830_v16 = vld [vmem:[#allocation26_spill] sm:$0xff] }
 0x265   :  { %v5095_v36 = vpop.eup %5094  ;;  %5124 = vpow2.f32 %v4618_v45  ;;  %v1098_v59 = vadd.f32 1.0, %v5093_v19 }
 0x266   :  { %v6462_v8 = vpop.eup %5096  ;;  %5126 = vrcp.f32 %v1095_v38  ;;  %v1097_v0 = vadd.f32 1.0, %v5095_v36 }
 0x267   :  { %970 = vadd.xlane.f32.xlu1 %v969_v61  ;;  %922 = vadd.xlane.f32.xlu0 %v921_v20  ;;  %v6465_v28 = vpop.eup %5098  ;;  %5128 = vpow2.f32 %v4621_v30 }
 0x268   :  { %v5101_v11 = vpop.eup %5100  ;;  %5130 = vpow2.f32 %v4620_v37  ;;  %v7825_v37 = vld [vmem:[#allocation24_spill] sm:$0xff] }
 0x269   :  { %v5103_v42 = vpop.eup %5102  ;;  %5132 = vpow2.f32 %v4623_v21  ;;  %v1100_v24 = vadd.f32 1.0, %v5101_v11  ;;  %v4628_v25 = vmul.f32 -1.442695, %v7825_v37 }
 0x26a   :  { %v6469_v50 = vpop.eup %5104  ;;  %5134 = vrcp.f32 %v1098_v59  ;;  %v1099_v61 = vadd.f32 1.0, %v5103_v42 }
 0x26b   :  { %973 = vadd.xlane.f32.xlu1 %v972_v26  ;;  %925 = vadd.xlane.f32.xlu0 %v924_v15  ;;  %v6471_v3 = vpop.eup %5106  ;;  %5136 = vpow2.f32 %v4622_v46  ;;  %v7823_v26 = vld [vmem:[#allocation22_spill] sm:$0xff] }
 0x26c   :  { %v5109_v44 = vpop.eup %5108  ;;  %5138 = vrcp.f32 %v1097_v0  ;;  %v4626_v15 = vmul.f32 -1.442695, %v7823_v26 }
 0x26d   :  { %v5111_v62 = vpop.eup %5110  ;;  %v1264_v41 = vadd.f32 1.0, %v5109_v44  ;;  %5140 = vpow2.f32 %v4625_v18  ;;  %v4631_v18 = vmul.f32 -1.442695, %v7828_v7 }
 0x26e   :  { %v6475_v34 = vpop.eup %5112  ;;  %5142 = vrcp.f32 %v1100_v24  ;;  %v1263_v9 = vadd.f32 1.0, %v5111_v62 }
 0x26f   :  { %v6477_v6 = vpop.eup %5114  ;;  %5144 = vpow2.f32 %v4624_v4  ;;  %v4630_v4 = vmul.f32 -1.442695, %v7830_v16 }
 0x270   :  { %v5117_v52 = vpop.eup %5116  ;;  %5146 = vrcp.f32 %v1099_v61 }
 0x271   :  { %v6479_v20 = vpop.eup %5118  ;;  %5148 = vrcp.f32 %v1264_v41  ;;  %v1265_v33 = vadd.f32 1.0, %v5117_v52 }
 0x272   :  { %v5121_v10 = vpop.eup %5120  ;;  %5150 = vrcp.f32 %v1263_v9  ;;  %v7832_v9 = vld [vmem:[#allocation27_spill] sm:$0xff] }
 0x273   :  { %v5123_v54 = vpop.eup %5122  ;;  %v1266_v45 = vadd.f32 1.0, %v5121_v10  ;;  %5152 = vpow2.f32 %v4627_v2  ;;  %v4633_v32 = vmul.f32 -1.442695, %v7832_v9 }
 0x274   :  { %v5125_v29 = vpop.eup %5124  ;;  %v1268_v38 = vadd.f32 1.0, %v5123_v54  ;;  %5154 = vpow2.f32 %v4626_v15  ;;  %v7833_v15 = vld [vmem:[#allocation28_spill] sm:$0xff] }
 0x275   :  { %v6484_v60 = vpop.eup %5126  ;;  %5156 = vrcp.f32 %v1265_v33  ;;  %v1267_v30 = vadd.f32 1.0, %v5125_v29  ;;  %v4632_v54 = vmul.f32 -1.442695, %v7833_v15  ;;  %v7834_v29 = vld [vmem:[#allocation29_spill] sm:$0xff]  ;;  %v7841_v15 = vld [vmem:[#allocation36_spill] sm:$0xff] }
 0x276   :  { %v5129_v19 = vpop.eup %5128  ;;  %5158 = vpow2.f32 %v4629_v51  ;;  %v4635_v57 = vmul.f32 -1.442695, %v7834_v29  ;;  %v7842_v29 = vld [vmem:[#allocation37_spill] sm:$0xff] }
 0x277   :  { %v5131_v36 = vpop.eup %5130  ;;  %5160 = vrcp.f32 %v1266_v45  ;;  %v1270_v11 = vadd.f32 1.0, %v5129_v19  ;;  %v7835_v45 = vld [vmem:[#allocation30_spill] sm:$0xff] }
 0x278   :  { %v5133_v48 = vpop.eup %5132  ;;  %5162 = vrcp.f32 %v1268_v38  ;;  %v1269_v42 = vadd.f32 1.0, %v5131_v36  ;;  %v4634_v19 = vmul.f32 -1.442695, %v7835_v45 }
 0x279   :  { %v6487_v21 = vpop.eup %5134  ;;  %5164 = vrcp.f32 %v1267_v30  ;;  %v1272_v46 = vadd.f32 1.0, %v5133_v48 }
 0x27a   :  { %7826 = vst [vmem:[#allocation3_spill] sm:$0xff] %v6487_v21  ;;  %v5137_v59 = vpop.eup %5136  ;;  %5166 = vpow2.f32 %v4628_v25  ;;  %v7836_v25 = vld [vmem:[#allocation31_spill] sm:$0xff] }
 0x27b   :  { %v6489_v63 = vpop.eup %5138  ;;  %5168 = vrcp.f32 %v1270_v11  ;;  %v1271_v24 = vadd.f32 1.0, %v5137_v59  ;;  %v4637_v11 = vmul.f32 -1.442695, %v7836_v25 }
 0x27c   :  { %7827 = vst [vmem:[#allocation2_spill] sm:$0xff] %v6489_v63  ;;  %v5141_v0 = vpop.eup %5140  ;;  %5170 = vrcp.f32 %v1269_v42 }
 0x27d   :  { %v6492_v44 = vpop.eup %5142  ;;  %5172 = vrcp.f32 %v1272_v46  ;;  %v1274_v41 = vadd.f32 1.0, %v5141_v0  ;;  %v7837_v0 = vld [vmem:[#allocation32_spill] sm:$0xff] }
 0x27e   :  { %7829 = vst [vmem:[#allocation4_spill] sm:$0xff] %v6492_v44  ;;  %v5145_v62 = vpop.eup %5144  ;;  %5174 = vpow2.f32 %v4631_v18  ;;  %v4636_v7 = vmul.f32 -1.442695, %v7837_v0 }
 0x27f   :  { %v6495_v61 = vpop.eup %5146  ;;  %5176 = vrcp.f32 %v1271_v24  ;;  %v1273_v10 = vadd.f32 1.0, %v5145_v62  ;;  %v7838_v24 = vld [vmem:[#allocation33_spill] sm:$0xff] }
 0x280   :  { %7831 = vst [vmem:[#allocation5_spill] sm:$0xff] %v6495_v61  ;;  %v6497_v52 = vpop.eup %5148  ;;  %5178 = vpow2.f32 %v4630_v4  ;;  %v4639_v62 = vmul.f32 -1.442695, %v7838_v24  ;;  %v7839_v4 = vld [vmem:[#allocation34_spill] sm:$0xff] }
 0x281   :  { %v6500_v2 = vpop.eup %5150  ;;  %5180 = vrcp.f32 %v1274_v41  ;;  %v4638_v41 = vmul.f32 -1.442695, %v7839_v4 }
 0x282   :  { %v5153_v26 = vpop.eup %5152  ;;  %5182 = vpow2.f32 %v4633_v32  ;;  %v7840_v32 = vld [vmem:[#allocation35_spill] sm:$0xff] }
 0x283   :  { %v5155_v33 = vpop.eup %5154  ;;  %5184 = vrcp.f32 %v1273_v10  ;;  %v1276_v36 = vadd.f32 1.0, %v5153_v26  ;;  %v4641_v10 = vmul.f32 -1.442695, %v7840_v32 }
 0x284   :  { %v6504_v51 = vpop.eup %5156  ;;  %v1275_v48 = vadd.f32 1.0, %v5155_v33  ;;  %5186 = vpow2.f32 %v4632_v54  ;;  %v4640_v54 = vmul.f32 -1.442695, %v7841_v15 }
 0x285   :  { %v5159_v38 = vpop.eup %5158  ;;  %5188 = vpow2.f32 %v4635_v57  ;;  %v4643_v57 = vmul.f32 -1.442695, %v7842_v29 }
 0x286   :  { %v6507_v30 = vpop.eup %5160  ;;  %v1278_v42 = vadd.f32 1.0, %v5159_v38  ;;  %5190 = vpow2.f32 %v4634_v19  ;;  %v7843_v19 = vld [vmem:[#allocation38_spill] sm:$0xff] }
 0x287   :  { %v6509_v37 = vpop.eup %5162  ;;  %5192 = vrcp.f32 %v1276_v36  ;;  %v4642_v38 = vmul.f32 -1.442695, %v7843_v19 }
 0x288   :  { %v6512_v59 = vpop.eup %5164  ;;  %5194 = vrcp.f32 %v1275_v48  ;;  %v7844_v48 = vld [vmem:[#allocation39_spill] sm:$0xff] }
 0x289   :  { %v5167_v46 = vpop.eup %5166  ;;  %5196 = vpow2.f32 %v4637_v11  ;;  %v4645_v25 = vmul.f32 -1.442695, %v7844_v48 }
 0x28a   :  { %v6515_v18 = vpop.eup %5168  ;;  %5198 = vrcp.f32 %v1278_v42  ;;  %v7845_v42 = vld [vmem:[#allocation40_spill] sm:$0xff]  ;;  %v1277_v24 = vadd.f32 1.0, %v5167_v46 }
 0x28b   :  { %v6518_v16 = vpop.eup %5170  ;;  %5200 = vpow2.f32 %v4636_v7  ;;  %v4644_v0 = vmul.f32 -1.442695, %v7845_v42 }
 0x28c   :  { %v6521_v9 = vpop.eup %5172  ;;  %5202 = vpow2.f32 %v4639_v62 }
 0x28d   :  { %v5175_v26 = vpop.eup %5174  ;;  %5204 = vpow2.f32 %v4638_v41 }
 0x28e   :  { %v6525_v33 = vpop.eup %5176  ;;  %5206 = vpow2.f32 %v4641_v10  ;;  %v1280_v4 = vadd.f32 1.0, %v5175_v26 }
 0x28f   :  { %v5179_v45 = vpop.eup %5178  ;;  %5208 = vpow2.f32 %v4640_v54 }
 0x290   :  { %v6529_v36 = vpop.eup %5180  ;;  %5210 = vpow2.f32 %v4643_v57  ;;  %v1279_v41 = vadd.f32 1.0, %v5179_v45 }
 0x291   :  { %v5183_v11 = vpop.eup %5182  ;;  %5212 = vpow2.f32 %v4642_v38 }
 0x292   :  { %v6533_v7 = vpop.eup %5184  ;;  %5214 = vpow2.f32 %v4645_v25  ;;  %v1282_v29 = vadd.f32 1.0, %v5183_v11 }
 0x293   :  { %v5187_v62 = vpop.eup %5186  ;;  %5216 = vpow2.f32 %v4644_v0 }
 0x294   :  { %v5189_v32 = vpop.eup %5188  ;;  %5218 = vrcp.f32 %v1277_v24  ;;  %v1281_v19 = vadd.f32 1.0, %v5187_v62 }
 0x295   :  { %v5191_v15 = vpop.eup %5190  ;;  %5220 = vrcp.f32 %v1280_v4  ;;  %v1284_v48 = vadd.f32 1.0, %v5189_v32 }
 0x296   :  { %v6535_v10 = vpop.eup %5192  ;;  %5222 = vrcp.f32 %v1279_v41  ;;  %v1283_v38 = vadd.f32 1.0, %v5191_v15 }
 0x297   :  { %v6537_v54 = vpop.eup %5194  ;;  %5224 = vrcp.f32 %v1282_v29 }
 0x298   :  { %v5197_v42 = vpop.eup %5196  ;;  %5226 = vrcp.f32 %v1281_v19 }
 0x299   :  { %v6539_v46 = vpop.eup %5198  ;;  %5228 = vrcp.f32 %v1284_v48  ;;  %v1286_v24 = vadd.f32 1.0, %v5197_v42 }
 0x29a   :  { %v5201_v45 = vpop.eup %5200 }
 0x29b   :  { %v5203_v0 = vpop.eup %5202  ;;  %v1285_v4 = vadd.f32 1.0, %v5201_v45 }
 0x29c   :  { %v5205_v62 = vpop.eup %5204  ;;  %v1288_v44 = vadd.f32 1.0, %v5203_v0 }
 0x29d   :  { %v5207_v61 = vpop.eup %5206  ;;  %v1287_v21 = vadd.f32 1.0, %v5205_v62  ;;  %v1102_v62 = vadd.f32 1.0, %v6475_v34 }
 0x29e   :  { %v5209_v41 = vpop.eup %5208  ;;  %v1290_v15 = vadd.f32 1.0, %v5207_v61 }
 0x29f   :  { %v5211_v63 = vpop.eup %5210  ;;  %v1289_v48 = vadd.f32 1.0, %v5209_v41 }
 0x2a0   :  { %v5213_v19 = vpop.eup %5212 }
 0x2a1   :  { %v1291_v45 = vadd.f32 1.0, %v5213_v19 }
 0x2a4   :  { %v884_v26 = vpop.xlane.xlu1 %883  ;;  %v881_v57 = vpop.xlane.xlu0 %880 }
 0x2a5   :  { %v4647_v25 = vmul.f32 -1.442695, %v884_v26  ;;  %v4646_v11 = vmul.f32 -1.442695, %v881_v57  ;;  %v5215_v26 = vpop.eup %5214  ;;  %v1292_v57 = vadd.f32 1.0, %v5211_v63 }
 0x2a6   :  { %v5217_v42 = vpop.eup %5216 }
 0x2a7   :  { %5230 = vpow2.f32 %v4647_v25  ;;  %v5219_v25 = vpop.eup %5218 }
 0x2a8   :  { %5232 = vpow2.f32 %v4646_v11  ;;  %v887_v32 = vpop.xlane.xlu0 %886  ;;  %v5221_v11 = vpop.eup %5220 }
 0x2a9   :  { %5234 = vrcp.f32 %v1283_v38  ;;  %v4648_v29 = vmul.f32 -1.442695, %v887_v32  ;;  %v1294_v38 = vadd.f32 1.0, %v5215_v26  ;;  %v5223_v0 = vpop.eup %5222  ;;  %v1293_v32 = vadd.f32 1.0, %v5217_v42 }
 0x2aa   :  { %5236 = vrcp.f32 %v1286_v24  ;;  %v5225_v24 = vpop.eup %5224 }
 0x2ab   :  { %5238 = vpow2.f32 %v4648_v29  ;;  %v5227_v61 = vpop.eup %5226 }
 0x2ac   :  { %5240 = vrcp.f32 %v1285_v4  ;;  %v1101_v4 = vadd.f32 1.0, %v6477_v6  ;;  %v5229_v41 = vpop.eup %5228 }
 0x2ad   :  { %5242 = vrcp.f32 %v1288_v44 }
 0x2ae   :  { %5244 = vrcp.f32 %v1287_v21 }
 0x2af   :  { %5246 = vrcp.f32 %v1290_v15 }
 0x2b0   :  { %5248 = vrcp.f32 %v1289_v48  ;;  %v6545_v48 = vmul.f32 %v6497_v52, %v6391_v17  ;;  %v6565_v52 = vmul.f32 %v6512_v59, %v6406_v39  ;;  %v6585_v39 = vmul.f32 %v6529_v36, %v6428_v23 }
 0x2b1   :  { %5250 = vrcp.f32 %v1292_v57  ;;  %v6549_v57 = vmul.f32 %v6500_v2, %v6382_v27  ;;  %v6569_v27 = vmul.f32 %v6515_v18, %v6411_v14  ;;  %v6577_v2 = vmul.f32 %v6521_v9, %v6420_v56 }
 0x2b2   :  { %5252 = vrcp.f32 %v1291_v45  ;;  %v6553_v45 = vmul.f32 %v6504_v51, %v6379_v35  ;;  %v6573_v35 = vmul.f32 %v6518_v16, %v6414_v47  ;;  %v7683_v51 = vlaneseq }
 0x2b3   :  { %5254 = vrcp.f32 %v1294_v38  ;;  %v6557_v38 = vmul.f32 %v6507_v30, %v6388_v43  ;;  %v6589_v47 = vmul.f32 %v6533_v7, %v6431_v55  ;;  %v6601_v23 = vmul.f32 %v6539_v46, %v6440_v1 }
 0x2b4   :  { %v5231_v63 = vpop.eup %5230  ;;  %5256 = vrcp.f32 %v1293_v32  ;;  %v6561_v32 = vmul.f32 %v6509_v37, %v6400_v12  ;;  %v6581_v12 = vmul.f32 %v6525_v33, %v6423_v22  ;;  %v6593_v37 = vmul.f32 %v6535_v10, %v6434_v49 }
 0x2b5   :  { %v5233_v21 = vpop.eup %5232  ;;  %5258 = vrcp.f32 %v1102_v62  ;;  %v1488_v44 = vadd.f32 1.0, %v5231_v63  ;;  %v6597_v22 = vmul.f32 %v6537_v54, %v6436_v5  ;;  %7846 = vst [vmem:[#allocation6_spill] sm:$0xff] %v6601_v23  ;;  %v6604_v18 = vmul.f32 %v5219_v25, %v6446_v40  ;;  %v7850_v62 = vld [vmem:[#allocation2_spill] sm:$0xff] }
 0x2b6   :  { %v5235_v29 = vpop.eup %5234  ;;  %5260 = vrcp.f32 %v1101_v4  ;;  %v1487_v19 = vadd.f32 1.0, %v5233_v21  ;;  %v6607_v55 = vmul.f32 %v5221_v11, %v6449_v53  ;;  %v6610_v49 = vmul.f32 %v5223_v0, %v6452_v58  ;;  %v7849_v0 = vld [vmem:[#allocation3_spill] sm:$0xff]  ;;  %v7851_v4 = vld [vmem:[#allocation4_spill] sm:$0xff] }
 0x2b7   :  { %v5237_v15 = vpop.eup %5236  ;;  %5262 = vrcp.f32 %v1488_v44  ;;  %7847 = vst [vmem:[#allocation7_spill] sm:$0xff] %v6604_v18  ;;  %v6613_v9 = vmul.f32 %v5225_v24, %v6455_v13  ;;  %v6616_v5 = vmul.f32 %v5227_v61, %v6458_v31  ;;  %v6619_v1 = vmul.f32 %v5229_v41, %v6462_v8 }
 0x2b8   :  { %v5239_v26 = vpop.eup %5238  ;;  %5264 = vrcp.f32 %v1487_v19  ;;  %v6622_v40 = vmul.f32 %v5235_v29, %v6465_v28  ;;  %v6625_v7 = vshrl.u32 %v7683_v51, 7  ;;  %v5386_v58 = vmov 1966171168  }
 0x2b9   :  { %v5241_v34 = vpop.eup %5240  ;;  %v1489_v6 = vadd.f32 1.0, %v5239_v26  ;;  %v2708_v10 = vunpack.c.l.s4 %v5386_v58  ;;  %v6628_v54 = vmul.f32 %v5237_v15, %v6469_v50 }
 0x2ba   :  { %v5243_v42 = vpop.eup %5242  ;;  %7848 = vst [vmem:[#allocation10_spill] sm:$0xff] %v6625_v7  ;;  %v6631_v31 = vmul.f32 %v5241_v34, %v6471_v3  ;;  %v7852_v3 = vld [vmem:[#allocation5_spill] sm:$0xff]  ;;  %v6656_v19 = vsub.s32 0, %v6625_v7  ;;  %v6681_v58 = vsub.s32 7, %v6625_v7 }
 0x2bb   :  { %v5245_v17 = vpop.eup %5244  ;;  %5266 = vrcp.f32 %v1489_v6  ;;  %v6634_v28 = vmul.f32 %v5243_v42, %v6479_v20  ;;  %v2709_v15 = vunpack.c.0.s8 %v2708_v10 }
 0x2bc   :  { %v5247_v43 = vpop.eup %5246  ;;  %v929_v14 = vpop.xlane.xlu0 %928  ;;  %v6637_v11 = vmul.f32 %v5245_v17, %v6484_v60  ;;  %v6660_v17 = vsub.s32 1, %v6625_v7 }
 0x2bd   :  { %v5249_v30 = vpop.eup %5248  ;;  %v4662_v56 = vmul.f32 -1.442695, %v929_v14  ;;  %v6640_v24 = vmul.f32 %v5247_v43, %v7849_v0  ;;  %v6664_v14 = vsub.s32 2, %v6625_v7  ;;  %v6684_v10 = vsub.s32 %v2709_v15, %v6625_v7 }
 0x2be   :  { %v5251_v59 = vpop.eup %5250  ;;  %v6643_v61 = vmul.f32 %v5249_v30, %v7850_v62  ;;  %v6667_v30 = vsub.s32 3, %v6625_v7 }
 0x2bf   :  { %v5253_v16 = vpop.eup %5252  ;;  %5268 = vpow2.f32 %v4662_v56  ;;  %v6646_v41 = vmul.f32 %v5251_v59, %v7851_v4  ;;  %v6670_v56 = vsub.s32 4, %v6625_v7 }
 0x2c0   :  { %v5255_v33 = vpop.eup %5254  ;;  %v935_v53 = vpop.xlane.xlu1 %934  ;;  %v6649_v63 = vmul.f32 %v5253_v16, %v7852_v3  ;;  %v6676_v16 = vsub.s32 6, %v6625_v7 }
 0x2c1   :  { %v932_v36 = vpop.xlane.xlu0 %931  ;;  %v5257_v13 = vpop.eup %5256  ;;  %v4664_v46 = vmul.f32 -1.442695, %v935_v53 }
 0x2c2   :  { %v4663_v8 = vmul.f32 -1.442695, %v932_v36  ;;  %v5259_v25 = vpop.eup %5258 }
 0x2c3   :  { %v5261_v50 = vpop.eup %5260  ;;  %v6651_v21 = vmul.f32 %v5259_v25, %v5255_v33  ;;  %5270 = vpow2.f32 %v4664_v46 }
 0x2c4   :  { %v5263_v20 = vpop.eup %5262  ;;  %v6653_v44 = vmul.f32 %v5261_v50, %v5257_v13  ;;  %5272 = vpow2.f32 %v4663_v8  ;;  %v938_v60 = vpop.xlane.xlu1 %937 }
 0x2c5   :  { %7853 = vst [vmem:[#allocation8_spill] sm:$0xff] %v6651_v21  ;;  %v890_v29 = vpop.xlane.xlu0 %889  ;;  %v5265_v26 = vpop.eup %5264  ;;  %v1584_v34 = vmul.f32 %v5263_v20, %v6545_v48  ;;  %v4665_v6 = vmul.f32 -1.442695, %v938_v60  ;;  %v6673_v48 = vsub.s32 5, %v6625_v7 }
 0x2c6   :  { %7854 = vst [vmem:[#allocation11_spill] sm:$0xff] %v6653_v44  ;;  %v4649_v42 = vmul.f32 -1.442695, %v890_v29  ;;  %v1583_v43 = vmul.f32 %v5265_v26, %v6549_v57 }
 0x2c7   :  { %v1616_v59 = vmul.f32 20.0, %v1584_v34  ;;  %5274 = vpow2.f32 %v4665_v6 }
 0x2c8   :  { %v5267_v33 = vpop.eup %5266  ;;  %v6678_v53 = vmul.f32 20.0, %v1583_v43  ;;  %5276 = vpow2.f32 %v4649_v42  ;;  %v941_v57 = vpop.xlane.xlu1 %940 }
 0x2c9   :  { %v893_v36 = vpop.xlane.xlu0 %892  ;;  %v1585_v13 = vmul.f32 %v5267_v33, %v6553_v45  ;;  %v4666_v46 = vmul.f32 -1.442695, %v941_v57  ;;  %v1714_v25 = vrot.slane %v1616_v59, %v6656_v19  ;;  %v1718_v0 = vrot.slane %v1616_v59, %v6660_v17 }
 0x2ca   :  { %v4650_v8 = vmul.f32 -1.442695, %v893_v36  ;;  %v1722_v62 = vrot.slane %v1616_v59, %v6664_v14  ;;  %v1726_v50 = vrot.slane %v1616_v59, %v6667_v30  ;;  %v1730_v4 = vrot.slane %v1616_v59, %v6670_v56 }
 0x2cb   :  { %v6692_v3 = vmul.f32 20.0, %v1585_v13  ;;  %5278 = vpow2.f32 %v4666_v46  ;;  %v1734_v20 = vrot.slane %v1616_v59, %v6673_v48  ;;  %v1738_v60 = vrot.slane %v1616_v59, %v6676_v16 }
 0x2cc   :  { %v5269_v45 = vpop.eup %5268  ;;  %5280 = vpow2.f32 %v4650_v8  ;;  %v944_v29 = vpop.xlane.xlu1 %943  ;;  %v1742_v26 = vrot.slane %v1616_v59, %v6681_v58  ;;  %v2752_v34 = vcombine.low %v1714_v25, %v1718_v0  ;;  %v2753_v6 = vcombine.low %v1722_v62, %v1726_v50 }
 0x2cd   :  { %v896_v15 = vpop.xlane.xlu0 %895  ;;  %v1503_v42 = vadd.f32 1.0, %v5269_v45  ;;  %v4667_v43 = vmul.f32 -1.442695, %v944_v29  ;;  %v2754_v57 = vcombine.low %v1730_v4, %v1734_v20  ;;  %v1682_v51 = vrot.slane %v6678_v53, %v6656_v19 }
 0x2ce   :  { %v4651_v33 = vmul.f32 -1.442695, %v896_v15  ;;  %v2755_v36 = vcombine.low %v1738_v60, %v1742_v26  ;;  %v2762_v13 = vrot.slane %v2752_v34, %v6684_v10  ;;  %v2769_v46 = vrot.slane %v2753_v6, %v6684_v10 }
 0x2cf   :  { %5282 = vrcp.f32 %v1503_v42  ;;  %v2776_v8 = vrot.slane %v2754_v57, %v6684_v10  ;;  %v1686_v59 = vrot.slane %v6678_v53, %v6660_v17  ;;  %v1690_v25 = vrot.slane %v6678_v53, %v6664_v14 }
 0x2d0   :  { %v5271_v0 = vpop.eup %5270  ;;  %5284 = vpow2.f32 %v4667_v43  ;;  %v947_v62 = vpop.xlane.xlu1 %946  ;;  %v2783_v4 = vrot.slane %v2755_v36, %v6684_v10  ;;  %v2784_v20 = vcombine.low %v2762_v13, %v2769_v46  ;;  %v1694_v60 = vrot.slane %v6678_v53, %v6667_v30 }
 0x2d1   :  { %v899_v50 = vpop.xlane.xlu0 %898  ;;  %v5273_v45 = vpop.eup %5272  ;;  %v1505_v29 = vadd.f32 1.0, %v5271_v0  ;;  %5286 = vpow2.f32 %v4651_v33  ;;  %v4668_v15 = vmul.f32 -1.442695, %v947_v62  ;;  %v1698_v43 = vrot.slane %v6678_v53, %v6670_v56 }
 0x2d2   :  { %v4652_v26 = vmul.f32 -1.442695, %v899_v50  ;;  %v1504_v34 = vadd.f32 1.0, %v5273_v45  ;;  %v2785_v6 = vcombine.low %v2776_v8, %v2783_v4  ;;  %v2792_v42 = vrot.slane %v2784_v20, %v6684_v10 }
 0x2d3   :  { %5288 = vrcp.f32 %v1505_v29  ;;  %v1702_v57 = vrot.slane %v6678_v53, %v6673_v48  ;;  %v1706_v36 = vrot.slane %v6678_v53, %v6676_v16  ;;  %v1710_v13 = vrot.slane %v6678_v53, %v6681_v58 }
 0x2d4   :  { %v5275_v33 = vpop.eup %5274  ;;  %5290 = vrcp.f32 %v1504_v34  ;;  %v950_v46 = vpop.xlane.xlu1 %949  ;;  %v2799_v8 = vrot.slane %v2785_v6, %v6684_v10  ;;  %v2703_v62 = vcombine.low %v1682_v51, %v1686_v59  ;;  %v2704_v50 = vcombine.low %v1690_v25, %v1694_v60 }
 0x2d5   :  { %v902_v0 = vpop.xlane.xlu0 %901  ;;  %v5277_v4 = vpop.eup %5276  ;;  %v1506_v20 = vadd.f32 1.0, %v5275_v33  ;;  %5292 = vpow2.f32 %v4668_v15  ;;  %v4669_v45 = vmul.f32 -1.442695, %v950_v46  ;;  %v2705_v21 = vcombine.low %v1698_v43, %v1702_v57 }
 0x2d6   :  { %v4653_v29 = vmul.f32 -1.442695, %v902_v0  ;;  %v1490_v7 = vadd.f32 1.0, %v5277_v4  ;;  %5294 = vpow2.f32 %v4652_v26  ;;  %v2800_v23 = vcombine.low %v2792_v42, %v2799_v8 }
 0x2d7   :  { %5296 = vrcp.f32 %v1506_v20  ;;  %v2706_v18 = vcombine.low %v1706_v36, %v1710_v13  ;;  %v2713_v53 = vrot.slane %v2703_v62, %v6684_v10  ;;  %v2720_v34 = vrot.slane %v2704_v50, %v6684_v10 }
 0x2d8   :  { %v5279_v44 = vpop.eup %5278  ;;  %5298 = vrcp.f32 %v1490_v7  ;;  %4275 = vperm.xlu1 %4999, %v2800_v23   ;;  %v2727_v51 = vrot.slane %v2705_v21, %v6684_v10  ;;  %v953_v59 = vpop.xlane.xlu1 %952  ;;  %v1746_v60 = vrot.slane %v6692_v3, %v6656_v19  ;;  %v1750_v15 = vrot.slane %v6692_v3, %v6660_v17 }
 0x2d9   :  { %v905_v25 = vpop.xlane.xlu0 %904  ;;  %v5281_v26 = vpop.eup %5280  ;;  %v1507_v6 = vadd.f32 1.0, %v5279_v44  ;;  %5300 = vpow2.f32 %v4669_v45  ;;  %v2734_v42 = vrot.slane %v2706_v18, %v6684_v10  ;;  %v2735_v43 = vcombine.low %v2713_v53, %v2720_v34 }
 0x2da   :  { %v1491_v57 = vadd.f32 1.0, %v5281_v26  ;;  %5302 = vpow2.f32 %v4653_v29  ;;  %v4670_v7 = vmul.f32 -1.442695, %v953_v59  ;;  %v4654_v23 = vmul.f32 -1.442695, %v905_v25 }
 0x2db   :  { %5304 = vrcp.f32 %v1507_v6  ;;  %v2736_v21 = vcombine.low %v2727_v51, %v2734_v42  ;;  %v2743_v36 = vrot.slane %v2735_v43, %v6684_v10  ;;  %v1754_v13 = vrot.slane %v6692_v3, %v6664_v14 }
 0x2dc   :  { %v5283_v33 = vpop.eup %5282  ;;  %5306 = vrcp.f32 %v1491_v57  ;;  %v1758_v44 = vrot.slane %v6692_v3, %v6667_v30  ;;  %v1762_v18 = vrot.slane %v6692_v3, %v6670_v56  ;;  %v1766_v46 = vrot.slane %v6692_v3, %v6673_v48  ;;  %v956_v0 = vpop.xlane.xlu1 %955 }
 0x2dd   :  { %v908_v8 = vpop.xlane.xlu0 %907  ;;  %v5285_v62 = vpop.eup %5284  ;;  %v1599_v50 = vmul.f32 %v5283_v33, %v6610_v49  ;;  %v2750_v4 = vrot.slane %v2736_v21, %v6684_v10  ;;  %5308 = vpow2.f32 %v4670_v7  ;;  %v1770_v20 = vrot.slane %v6692_v3, %v6676_v16 }
 0x2de   :  { %v5287_v45 = vpop.eup %5286  ;;  %v1508_v29 = vadd.f32 1.0, %v5285_v62  ;;  %5310 = vpow2.f32 %v4654_v23  ;;  %v1774_v53 = vrot.slane %v6692_v3, %v6681_v58  ;;  %v2801_v34 = vcombine.low %v1746_v60, %v1750_v15 }
 0x2df   :  { %v6742_v51 = vmul.f32 20.0, %v1599_v50  ;;  %v1492_v59 = vadd.f32 1.0, %v5287_v45  ;;  %v2751_v25 = vcombine.low %v2743_v36, %v2750_v4  ;;  %v2802_v26 = vcombine.low %v1754_v13, %v1758_v44 }
 0x2e0   :  { %v5289_v6 = vpop.eup %5288  ;;  %5312 = vrcp.f32 %v1508_v29  ;;  %v2803_v49 = vcombine.low %v1762_v18, %v1766_v46  ;;  %v2804_v42 = vcombine.low %v1770_v20, %v1774_v53  ;;  %v2811_v43 = vrot.slane %v2801_v34, %v6684_v10  ;;  %v959_v57 = vpop.xlane.xlu1 %958 }
 0x2e1   :  { %v911_v7 = vpop.xlane.xlu0 %910  ;;  %v5291_v21 = vpop.eup %5290  ;;  %v1601_v23 = vmul.f32 %v5289_v6, %v6616_v5  ;;  %5314 = vrcp.f32 %v1492_v59  ;;  %4272 = vperm.xlu0 %4998, %v2751_v25   ;;  %v2818_v3 = vrot.slane %v2802_v26, %v6684_v10  ;;  %v4671_v60 = vmul.f32 -1.442695, %v956_v0 }
 0x2e2   :  { %v5293_v15 = vpop.eup %5292  ;;  %v1600_v36 = vmul.f32 %v5291_v21, %v6607_v55  ;;  %v2825_v13 = vrot.slane %v2803_v49, %v6684_v10  ;;  %v2832_v33 = vrot.slane %v2804_v42, %v6684_v10  ;;  %v4655_v44 = vmul.f32 -1.442695, %v908_v8 }
 0x2e3   :  { %v5295_v18 = vpop.eup %5294  ;;  %v6750_v46 = vmul.f32 20.0, %v1601_v23  ;;  %v1509_v62 = vadd.f32 1.0, %v5293_v15  ;;  %v2833_v50 = vcombine.low %v2811_v43, %v2818_v3  ;;  %5316 = vpow2.f32 %v4671_v60 }
 0x2e4   :  { %v5297_v5 = vpop.eup %5296  ;;  %v6752_v4 = vmul.f32 20.0, %v1600_v36  ;;  %v1493_v20 = vadd.f32 1.0, %v5295_v18  ;;  %v2834_v45 = vcombine.low %v2825_v13, %v2832_v33  ;;  %5318 = vpow2.f32 %v4655_v44  ;;  %v962_v0 = vpop.xlane.xlu1 %961 }
 0x2e5   :  { %v914_v29 = vpop.xlane.xlu0 %913  ;;  %v5299_v55 = vpop.eup %5298  ;;  %v1602_v53 = vmul.f32 %v5297_v5, %v6613_v9  ;;  %5320 = vrcp.f32 %v1509_v62  ;;  %v2841_v8 = vrot.slane %v2833_v50, %v6684_v10  ;;  %v4672_v34 = vmul.f32 -1.442695, %v959_v57 }
 0x2e6   :  { %v5301_v59 = vpop.eup %5300  ;;  %v1586_v25 = vmul.f32 %v5299_v55, %v6557_v38  ;;  %5322 = vrcp.f32 %v1493_v20  ;;  %v2848_v26 = vrot.slane %v2834_v45, %v6684_v10  ;;  %v4656_v6 = vmul.f32 -1.442695, %v911_v7 }
 0x2e7   :  { %v5303_v49 = vpop.eup %5302  ;;  %v6758_v42 = vmul.f32 20.0, %v1602_v53  ;;  %v1510_v43 = vadd.f32 1.0, %v5301_v59  ;;  %5324 = vpow2.f32 %v4672_v34  ;;  %v4673_v21 = vmul.f32 -1.442695, %v962_v0 }
 0x2e8   :  { %v5305_v23 = vpop.eup %5304  ;;  %v6760_v3 = vmul.f32 20.0, %v1586_v25  ;;  %v1494_v9 = vadd.f32 1.0, %v5303_v49  ;;  %v2849_v60 = vcombine.low %v2841_v8, %v2848_v26  ;;  %5326 = vpow2.f32 %v4656_v6  ;;  %v965_v57 = vpop.xlane.xlu1 %964 }
 0x2e9   :  { %v917_v15 = vpop.xlane.xlu0 %916  ;;  %v5307_v36 = vpop.eup %5306  ;;  %v1603_v38 = vmul.f32 %v5305_v23, %v6622_v40  ;;  %5328 = vrcp.f32 %v1510_v43  ;;  %v4657_v13 = vmul.f32 -1.442695, %v914_v29  ;;  %v4674_v7 = vmul.f32 -1.442695, %v965_v57 }
 0x2ea   :  { %v5309_v33 = vpop.eup %5308  ;;  %v1587_v44 = vmul.f32 %v5307_v36, %v6565_v52  ;;  %5330 = vrcp.f32 %v1494_v9  ;;  %4278 = vperm.xlu1 %4999, %v2849_v60   ;;  %v4658_v18 = vmul.f32 -1.442695, %v917_v15  ;;  %v1778_v62 = vrot.slane %v6760_v3, %v6656_v19 }
 0x2eb   :  { %v5311_v50 = vpop.eup %5310  ;;  %v6766_v5 = vmul.f32 20.0, %v1603_v38  ;;  %v1511_v20 = vadd.f32 1.0, %v5309_v33  ;;  %5332 = vpow2.f32 %v4673_v21  ;;  %v1782_v40 = vrot.slane %v6760_v3, %v6660_v17 }
 0x2ec   :  { %v6770_v45 = vmul.f32 20.0, %v1587_v44  ;;  %v1495_v0 = vadd.f32 1.0, %v5311_v50  ;;  %5334 = vpow2.f32 %v4657_v13  ;;  %v968_v29 = vpop.xlane.xlu1 %967  ;;  %v1786_v55 = vrot.slane %v6760_v3, %v6664_v14 }
 0x2ed   :  { %v920_v52 = vpop.xlane.xlu0 %919  ;;  %v5313_v53 = vpop.eup %5312  ;;  %5336 = vrcp.f32 %v1511_v20  ;;  %v4675_v8 = vmul.f32 -1.442695, %v968_v29  ;;  %v1790_v59 = vrot.slane %v6760_v3, %v6667_v30  ;;  %v1794_v6 = vrot.slane %v6760_v3, %v6670_v56 }
 0x2ee   :  { %v4659_v34 = vmul.f32 -1.442695, %v920_v52  ;;  %v5315_v25 = vpop.eup %5314  ;;  %v1604_v26 = vmul.f32 %v5313_v53, %v6619_v1  ;;  %5338 = vrcp.f32 %v1495_v0  ;;  %v1798_v49 = vrot.slane %v6760_v3, %v6673_v48 }
 0x2ef   :  { %v1588_v43 = vmul.f32 %v5315_v25, %v6561_v32  ;;  %5340 = vpow2.f32 %v4674_v7  ;;  %v1802_v21 = vrot.slane %v6760_v3, %v6676_v16  ;;  %v1806_v23 = vrot.slane %v6760_v3, %v6681_v58 }
 0x2f0   :  { %v5317_v9 = vpop.eup %5316  ;;  %v6786_v60 = vmul.f32 20.0, %v1604_v26  ;;  %5342 = vpow2.f32 %v4658_v18  ;;  %v971_v1 = vpop.xlane.xlu1 %970  ;;  %v2850_v15 = vcombine.low %v1778_v62, %v1782_v40  ;;  %v2851_v36 = vcombine.low %v1786_v55, %v1790_v59 }
 0x2f1   :  { %v923_v57 = vpop.xlane.xlu0 %922  ;;  %v5319_v38 = vpop.eup %5318  ;;  %v6788_v13 = vmul.f32 20.0, %v1588_v43  ;;  %v1512_v33 = vadd.f32 1.0, %v5317_v9  ;;  %5344 = vpow2.f32 %v4675_v8  ;;  %v4676_v32 = vmul.f32 -1.442695, %v971_v1 }
 0x2f2   :  { %v5321_v7 = vpop.eup %5320  ;;  %v1496_v44 = vadd.f32 1.0, %v5319_v38  ;;  %5346 = vpow2.f32 %v4659_v34  ;;  %v4660_v50 = vmul.f32 -1.442695, %v923_v57  ;;  %v2852_v20 = vcombine.low %v1794_v6, %v1798_v49 }
 0x2f3   :  { %v5323_v3 = vpop.eup %5322  ;;  %v1605_v0 = vmul.f32 %v5321_v7, %v6631_v31  ;;  %5348 = vrcp.f32 %v1512_v33  ;;  %v2853_v18 = vcombine.low %v1802_v21, %v1806_v23  ;;  %v2860_v29 = vrot.slane %v2850_v15, %v6684_v10 }
 0x2f4   :  { %v5325_v62 = vpop.eup %5324  ;;  %v1589_v40 = vmul.f32 %v5323_v3, %v6573_v35  ;;  %5350 = vrcp.f32 %v1496_v44  ;;  %v974_v52 = vpop.xlane.xlu1 %973  ;;  %v2867_v53 = vrot.slane %v2851_v36, %v6684_v10  ;;  %v2874_v8 = vrot.slane %v2852_v20, %v6684_v10 }
 0x2f5   :  { %v926_v55 = vpop.xlane.xlu0 %925  ;;  %v5327_v34 = vpop.eup %5326  ;;  %v6795_v59 = vmul.f32 20.0, %v1605_v0  ;;  %v1513_v25 = vadd.f32 1.0, %v5325_v62  ;;  %5352 = vpow2.f32 %v4676_v32  ;;  %v4677_v31 = vmul.f32 -1.442695, %v974_v52 }
 0x2f6   :  { %v5329_v26 = vpop.eup %5328  ;;  %v6797_v6 = vmul.f32 20.0, %v1589_v40  ;;  %v1497_v49 = vadd.f32 1.0, %v5327_v34  ;;  %5354 = vpow2.f32 %v4660_v50  ;;  %v4661_v43 = vmul.f32 -1.442695, %v926_v55 }
 0x2f7   :  { %v5331_v35 = vpop.eup %5330  ;;  %v1606_v21 = vmul.f32 %v5329_v26, %v6628_v54  ;;  %5356 = vrcp.f32 %v1513_v25  ;;  %v2881_v23 = vrot.slane %v2853_v18, %v6684_v10  ;;  %v2882_v9 = vcombine.low %v2860_v29, %v2867_v53 }
 0x2f8   :  { %v5333_v1 = vpop.eup %5332  ;;  %v1590_v57 = vmul.f32 %v5331_v35, %v6569_v27  ;;  %5358 = vrcp.f32 %v1497_v49  ;;  %v1810_v15 = vrot.slane %v6770_v45, %v6656_v19  ;;  %v1814_v36 = vrot.slane %v6770_v45, %v6660_v17 }
 0x2f9   :  { %v5335_v38 = vpop.eup %5334  ;;  %v6806_v33 = vmul.f32 20.0, %v1606_v21  ;;  %v1514_v32 = vadd.f32 1.0, %v5333_v1  ;;  %5360 = vpow2.f32 %v4677_v31  ;;  %v2883_v54 = vcombine.low %v2874_v8, %v2881_v23 }
 0x2fa   :  { %v5337_v7 = vpop.eup %5336  ;;  %v6808_v44 = vmul.f32 20.0, %v1590_v57  ;;  %v1498_v50 = vadd.f32 1.0, %v5335_v38  ;;  %5362 = vpow2.f32 %v4661_v43  ;;  %v2890_v27 = vrot.slane %v2882_v9, %v6684_v10 }
 0x2fb   :  { %v5339_v20 = vpop.eup %5338  ;;  %v1607_v3 = vmul.f32 %v5337_v7, %v6637_v11  ;;  %5364 = vrcp.f32 %v1514_v32  ;;  %v2897_v0 = vrot.slane %v2883_v54, %v6684_v10  ;;  %v1818_v18 = vrot.slane %v6770_v45, %v6664_v14 }
 0x2fc   :  { %v5341_v29 = vpop.eup %5340  ;;  %v1591_v62 = vmul.f32 %v5339_v20, %v6581_v12  ;;  %5366 = vrcp.f32 %v1498_v50  ;;  %v1822_v40 = vrot.slane %v6770_v45, %v6667_v30  ;;  %v1826_v52 = vrot.slane %v6770_v45, %v6670_v56 }
 0x2fd   :  { %v5343_v55 = vpop.eup %5342  ;;  %v6820_v53 = vmul.f32 20.0, %v1607_v3  ;;  %v1515_v11 = vadd.f32 1.0, %v5341_v29  ;;  %v2898_v8 = vcombine.low %v2890_v27, %v2897_v0  ;;  %v1830_v34 = vrot.slane %v6770_v45, %v6673_v48 }
 0x2fe   :  { %v5345_v25 = vpop.eup %5344  ;;  %v6824_v31 = vmul.f32 20.0, %v1591_v62  ;;  %v1499_v26 = vadd.f32 1.0, %v5343_v55  ;;  %v1834_v12 = vrot.slane %v6770_v45, %v6676_v16  ;;  %v1838_v49 = vrot.slane %v6770_v45, %v6681_v58 }
 0x2ff   :  { %v5347_v43 = vpop.eup %5346  ;;  %5368 = vrcp.f32 %v1515_v11  ;;  %v1516_v35 = vadd.f32 1.0, %v5345_v25  ;;  %4281 = vperm.xlu1 %4999, %v2898_v8   ;;  %v2899_v21 = vcombine.low %v1810_v15, %v1814_v36  ;;  %v2900_v23 = vcombine.low %v1818_v18, %v1822_v40 }
 0x300   :  { %v5349_v9 = vpop.eup %5348  ;;  %5370 = vrcp.f32 %v1499_v26  ;;  %v1500_v1 = vadd.f32 1.0, %v5347_v43  ;;  %v2901_v57 = vcombine.low %v1826_v52, %v1830_v34  ;;  %v2902_v38 = vcombine.low %v1834_v12, %v1838_v49 }
 0x301   :  { %v5351_v32 = vpop.eup %5350  ;;  %v1608_v54 = vmul.f32 %v5349_v9, %v6634_v28  ;;  %5372 = vrcp.f32 %v1516_v35  ;;  %v2909_v7 = vrot.slane %v2899_v21, %v6684_v10  ;;  %v2916_v50 = vrot.slane %v2900_v23, %v6684_v10 }
 0x302   :  { %v5353_v45 = vpop.eup %5352  ;;  %v1592_v27 = vmul.f32 %v5351_v32, %v6577_v2  ;;  %5374 = vrcp.f32 %v1500_v1  ;;  %v2923_v15 = vrot.slane %v2901_v57, %v6684_v10  ;;  %v2930_v36 = vrot.slane %v2902_v38, %v6684_v10 }
 0x303   :  { %v5355_v20 = vpop.eup %5354  ;;  %v6836_v3 = vmul.f32 20.0, %v1608_v54  ;;  %v1517_v0 = vadd.f32 1.0, %v5353_v45  ;;  %v2931_v18 = vcombine.low %v2909_v7, %v2916_v50  ;;  %v1842_v28 = vrot.slane %v6788_v13, %v6656_v19 }
 0x304   :  { %v5357_v29 = vpop.eup %5356  ;;  %v6840_v62 = vmul.f32 20.0, %v1592_v27  ;;  %v1501_v40 = vadd.f32 1.0, %v5355_v20  ;;  %v2932_v52 = vcombine.low %v2923_v15, %v2930_v36  ;;  %v1846_v2 = vrot.slane %v6788_v13, %v6660_v17 }
 0x305   :  { %v5359_v55 = vpop.eup %5358  ;;  %v1609_v11 = vmul.f32 %v5357_v29, %v6643_v61  ;;  %5376 = vrcp.f32 %v1517_v0  ;;  %v2939_v8 = vrot.slane %v2931_v18, %v6684_v10  ;;  %v1850_v34 = vrot.slane %v6788_v13, %v6664_v14 }
 0x306   :  { %v5361_v25 = vpop.eup %5360  ;;  %v1593_v26 = vmul.f32 %v5359_v55, %v6589_v47  ;;  %5378 = vrcp.f32 %v1501_v40  ;;  %v2946_v12 = vrot.slane %v2932_v52, %v6684_v10  ;;  %v1854_v49 = vrot.slane %v6788_v13, %v6667_v30 }
 0x307   :  { %v5363_v43 = vpop.eup %5362  ;;  %v6852_v35 = vmul.f32 20.0, %v1609_v11  ;;  %v1518_v21 = vadd.f32 1.0, %v5361_v25  ;;  %v1858_v61 = vrot.slane %v6788_v13, %v6670_v56  ;;  %v1862_v23 = vrot.slane %v6788_v13, %v6673_v48 }
 0x308   :  { %v5365_v9 = vpop.eup %5364  ;;  %v6858_v1 = vmul.f32 20.0, %v1593_v26  ;;  %v1502_v47 = vadd.f32 1.0, %v5363_v43  ;;  %v2947_v57 = vcombine.low %v2939_v8, %v2946_v12  ;;  %v1866_v38 = vrot.slane %v6788_v13, %v6676_v16 }
 0x309   :  { %v5367_v32 = vpop.eup %5366  ;;  %v1610_v54 = vmul.f32 %v5365_v9, %v6640_v24  ;;  %5380 = vrcp.f32 %v1518_v21  ;;  %v1870_v7 = vrot.slane %v6788_v13, %v6681_v58  ;;  %v2948_v50 = vcombine.low %v1842_v28, %v1846_v2 }
 0x30a   :  { %v1594_v45 = vmul.f32 %v5367_v32, %v6585_v39  ;;  %5382 = vrcp.f32 %v1502_v47  ;;  %4284 = vperm.xlu1 %4999, %v2947_v57   ;;  %v2949_v27 = vcombine.low %v1850_v34, %v1854_v49  ;;  %v2950_v15 = vcombine.low %v1858_v61, %v1862_v23 }
 0x30b   :  { %v6866_v36 = vmul.f32 20.0, %v1610_v54  ;;  %v2951_v20 = vcombine.low %v1866_v38, %v1870_v7  ;;  %v2958_v0 = vrot.slane %v2948_v50, %v6684_v10  ;;  %v1874_v18 = vrot.slane %v6797_v6, %v6656_v19 }
 0x30c   :  { %v5369_v24 = vpop.eup %5368  ;;  %v6871_v29 = vmul.f32 20.0, %v1594_v45  ;;  %v2965_v13 = vrot.slane %v2949_v27, %v6684_v10  ;;  %v2972_v28 = vrot.slane %v2950_v15, %v6684_v10  ;;  %v1878_v39 = vrot.slane %v6797_v6, %v6660_v17  ;;  %v7855_v15 = vld [vmem:[#allocation11_spill] sm:$0xff] }
 0x30d   :  { %v5371_v40 = vpop.eup %5370  ;;  %v1611_v52 = vmul.f32 %v5369_v24, %v6649_v63  ;;  %v2979_v2 = vrot.slane %v2951_v20, %v6684_v10  ;;  %v1882_v55 = vrot.slane %v6797_v6, %v6664_v14  ;;  %v1886_v11 = vrot.slane %v6797_v6, %v6667_v30 }
 0x30e   :  { %v5373_v8 = vpop.eup %5372  ;;  %v1595_v34 = vmul.f32 %v5371_v40, %v6597_v22  ;;  %v2980_v25 = vcombine.low %v2958_v0, %v2965_v13  ;;  %v1890_v26 = vrot.slane %v6797_v6, %v6670_v56  ;;  %v1894_v12 = vrot.slane %v6797_v6, %v6673_v48  ;;  %v7856_v13 = vld [vmem:[#allocation7_spill] sm:$0xff] }
 0x30f   :  { %v5375_v49 = vpop.eup %5374  ;;  %v6888_v63 = vmul.f32 20.0, %v1611_v52  ;;  %v1612_v43 = vmul.f32 %v5373_v8, %v6646_v41  ;;  %v2981_v21 = vcombine.low %v2972_v28, %v2979_v2  ;;  %v1898_v61 = vrot.slane %v6797_v6, %v6676_v16 }
 0x310   :  { %v6893_v23 = vmul.f32 20.0, %v1595_v34  ;;  %v1596_v22 = vmul.f32 %v5375_v49, %v6593_v37  ;;  %v2988_v9 = vrot.slane %v2980_v25, %v6684_v10  ;;  %v1902_v47 = vrot.slane %v6797_v6, %v6681_v58 }
 0x311   :  { %v6899_v57 = vmul.f32 20.0, %v1612_v43  ;;  %v2995_v38 = vrot.slane %v2981_v21, %v6684_v10  ;;  %v2997_v32 = vcombine.low %v1874_v18, %v1878_v39  ;;  %v2998_v54 = vcombine.low %v1882_v55, %v1886_v11  ;;  %v7857_v43 = vld [vmem:[#allocation8_spill] sm:$0xff] }
 0x312   :  { %v5377_v41 = vpop.eup %5376  ;;  %v6902_v7 = vmul.f32 20.0, %v1596_v22  ;;  %v2999_v50 = vcombine.low %v1890_v26, %v1894_v12  ;;  %v3000_v45 = vcombine.low %v1898_v61, %v1902_v47  ;;  %v1906_v27 = vrot.slane %v6808_v44, %v6656_v19  ;;  %v7858_v47 = vld [vmem:[#allocation6_spill] sm:$0xff] }
 0x313   :  { %v5379_v37 = vpop.eup %5378  ;;  %v1613_v20 = vmul.f32 %v5377_v41, %v7855_v15  ;;  %v2996_v0 = vcombine.low %v2988_v9, %v2995_v38  ;;  %v3007_v6 = vrot.slane %v2997_v32, %v6684_v10  ;;  %v3014_v24 = vrot.slane %v2998_v54, %v6684_v10 }
 0x314   :  { %v1597_v28 = vmul.f32 %v5379_v37, %v7856_v13  ;;  %v3021_v18 = vrot.slane %v2999_v50, %v6684_v10  ;;  %v3028_v39 = vrot.slane %v3000_v45, %v6684_v10  ;;  %v1910_v40 = vrot.slane %v6808_v44, %v6660_v17 }
 0x315   :  { %v6914_v52 = vmul.f32 20.0, %v1613_v20  ;;  %4287 = vperm.xlu1 %4999, %v2996_v0   ;;  %v3029_v2 = vcombine.low %v3007_v6, %v3014_v24  ;;  %v1914_v55 = vrot.slane %v6808_v44, %v6664_v14  ;;  %v1918_v11 = vrot.slane %v6808_v44, %v6667_v30 }
 0x316   :  { %v5381_v8 = vpop.eup %5380  ;;  %v6920_v34 = vmul.f32 20.0, %v1597_v28  ;;  %v3030_v25 = vcombine.low %v3021_v18, %v3028_v39  ;;  %v1922_v26 = vrot.slane %v6808_v44, %v6670_v56  ;;  %v1926_v12 = vrot.slane %v6808_v44, %v6673_v48 }
 0x317   :  { %v5383_v49 = vpop.eup %5382  ;;  %v1614_v21 = vmul.f32 %v5381_v8, %v7857_v43  ;;  %v3037_v61 = vrot.slane %v3029_v2, %v6684_v10  ;;  %v1930_v22 = vrot.slane %v6808_v44, %v6676_v16  ;;  %v1934_v9 = vrot.slane %v6808_v44, %v6681_v58 }
 0x318   :  { %v1598_v38 = vmul.f32 %v5383_v49, %v7858_v47  ;;  %v3044_v32 = vrot.slane %v3030_v25, %v6684_v10  ;;  %v3046_v54 = vcombine.low %v1906_v27, %v1910_v40  ;;  %v3047_v41 = vcombine.low %v1914_v55, %v1918_v11 }
 0x319   :  { %v6934_v50 = vmul.f32 20.0, %v1614_v21  ;;  %v3048_v45 = vcombine.low %v1922_v26, %v1926_v12  ;;  %v3049_v37 = vcombine.low %v1930_v22, %v1934_v9  ;;  %v1938_v15 = vrot.slane %v6824_v31, %v6656_v19 }
 0x31a   :  { %v6938_v20 = vmul.f32 20.0, %v1598_v38  ;;  %v3045_v0 = vcombine.low %v3037_v61, %v3044_v32  ;;  %v3056_v6 = vrot.slane %v3046_v54, %v6684_v10  ;;  %v3063_v44 = vrot.slane %v3047_v41, %v6684_v10 }
 0x31b   :  { %v3070_v24 = vrot.slane %v3048_v45, %v6684_v10  ;;  %v3077_v13 = vrot.slane %v3049_v37, %v6684_v10  ;;  %v1942_v27 = vrot.slane %v6824_v31, %v6660_v17  ;;  %v1946_v28 = vrot.slane %v6824_v31, %v6664_v14 }
 0x31c   :  { %4290 = vperm.xlu1 %4999, %v3045_v0   ;;  %v3078_v18 = vcombine.low %v3056_v6, %v3063_v44  ;;  %v1950_v39 = vrot.slane %v6824_v31, %v6667_v30  ;;  %v1954_v40 = vrot.slane %v6824_v31, %v6670_v56  ;;  %v1958_v2 = vrot.slane %v6824_v31, %v6673_v48 }
 0x31d   :  { %v3079_v55 = vcombine.low %v3070_v24, %v3077_v13  ;;  %v1962_v11 = vrot.slane %v6824_v31, %v6676_v16  ;;  %v1966_v8 = vrot.slane %v6824_v31, %v6681_v58  ;;  %v3095_v25 = vcombine.low %v1938_v15, %v1942_v27 }
 0x31e   :  { %v3086_v26 = vrot.slane %v3078_v18, %v6684_v10  ;;  %v3096_v12 = vcombine.low %v1946_v28, %v1950_v39  ;;  %v3097_v49 = vcombine.low %v1954_v40, %v1958_v2  ;;  %v1970_v43 = vrot.slane %v6840_v62, %v6656_v19 }
 0x31f   :  { %v3093_v21 = vrot.slane %v3079_v55, %v6684_v10  ;;  %v3098_v61 = vcombine.low %v1962_v11, %v1966_v8  ;;  %v3105_v22 = vrot.slane %v3095_v25, %v6684_v10  ;;  %v1974_v9 = vrot.slane %v6840_v62, %v6660_v17 }
 0x320   :  { %v3112_v47 = vrot.slane %v3096_v12, %v6684_v10  ;;  %v3119_v31 = vrot.slane %v3097_v49, %v6684_v10  ;;  %v1978_v38 = vrot.slane %v6840_v62, %v6664_v14  ;;  %v1982_v32 = vrot.slane %v6840_v62, %v6667_v30 }
 0x321   :  { %v3094_v54 = vcombine.low %v3086_v26, %v3093_v21  ;;  %v3126_v41 = vrot.slane %v3098_v61, %v6684_v10  ;;  %v1986_v45 = vrot.slane %v6840_v62, %v6670_v56  ;;  %v1990_v37 = vrot.slane %v6840_v62, %v6673_v48 }
 0x322   :  { %v3127_v15 = vcombine.low %v3105_v22, %v3112_v47  ;;  %v1994_v0 = vrot.slane %v6840_v62, %v6676_v16  ;;  %v1998_v6 = vrot.slane %v6840_v62, %v6681_v58  ;;  %v3144_v44 = vcombine.low %v1970_v43, %v1974_v9 }
 0x323   :  { %4293 = vperm.xlu1 %4999, %v3094_v54   ;;  %v3128_v24 = vcombine.low %v3119_v31, %v3126_v41  ;;  %v3145_v13 = vcombine.low %v1978_v38, %v1982_v32  ;;  %v3146_v27 = vcombine.low %v1986_v45, %v1990_v37  ;;  %v2194_v28 = vrot.slane %v6742_v51, %v6656_v19 }
 0x324   :  { %v3135_v18 = vrot.slane %v3127_v15, %v6684_v10  ;;  %v3147_v39 = vcombine.low %v1994_v0, %v1998_v6  ;;  %v3154_v40 = vrot.slane %v3144_v44, %v6684_v10  ;;  %v2198_v2 = vrot.slane %v6742_v51, %v6660_v17 }
 0x325   :  { %v3142_v55 = vrot.slane %v3128_v24, %v6684_v10  ;;  %v3161_v62 = vrot.slane %v3145_v13, %v6684_v10  ;;  %v3168_v11 = vrot.slane %v3146_v27, %v6684_v10  ;;  %v2202_v8 = vrot.slane %v6742_v51, %v6664_v14 }
 0x326   :  { %v3175_v25 = vrot.slane %v3147_v39, %v6684_v10  ;;  %v2206_v26 = vrot.slane %v6742_v51, %v6667_v30  ;;  %v2210_v12 = vrot.slane %v6742_v51, %v6670_v56  ;;  %v2214_v49 = vrot.slane %v6742_v51, %v6673_v48 }
 0x327   :  { %v3143_v43 = vcombine.low %v3135_v18, %v3142_v55  ;;  %v3176_v21 = vcombine.low %v3154_v40, %v3161_v62  ;;  %v2218_v61 = vrot.slane %v6742_v51, %v6676_v16  ;;  %v2222_v22 = vrot.slane %v6742_v51, %v6681_v58 }
 0x328   :  { %v3177_v9 = vcombine.low %v3168_v11, %v3175_v25  ;;  %v3487_v47 = vcombine.low %v2194_v28, %v2198_v2  ;;  %v3488_v31 = vcombine.low %v2202_v8, %v2206_v26  ;;  %v3489_v38 = vcombine.low %v2210_v12, %v2214_v49 }
 0x329   :  { %4296 = vperm.xlu1 %4999, %v3143_v43   ;;  %v3184_v32 = vrot.slane %v3176_v21, %v6684_v10  ;;  %v3490_v54 = vcombine.low %v2218_v61, %v2222_v22  ;;  %v2002_v41 = vrot.slane %v6858_v1, %v6656_v19  ;;  %v2006_v45 = vrot.slane %v6858_v1, %v6660_v17 }
 0x32a   :  { %v3191_v37 = vrot.slane %v3177_v9, %v6684_v10  ;;  %v3497_v15 = vrot.slane %v3487_v47, %v6684_v10  ;;  %v3504_v51 = vrot.slane %v3488_v31, %v6684_v10  ;;  %v3511_v0 = vrot.slane %v3489_v38, %v6684_v10 }
 0x32b   :  { %v3518_v6 = vrot.slane %v3490_v54, %v6684_v10  ;;  %v2010_v44 = vrot.slane %v6858_v1, %v6664_v14  ;;  %v2014_v24 = vrot.slane %v6858_v1, %v6667_v30  ;;  %v2018_v13 = vrot.slane %v6858_v1, %v6670_v56 }
 0x32c   :  { %v3192_v27 = vcombine.low %v3184_v32, %v3191_v37  ;;  %v3519_v28 = vcombine.low %v3497_v15, %v3504_v51  ;;  %v2022_v18 = vrot.slane %v6858_v1, %v6673_v48  ;;  %v2026_v39 = vrot.slane %v6858_v1, %v6676_v16 }
 0x32d   :  { %v3520_v40 = vcombine.low %v3511_v0, %v3518_v6  ;;  %v2030_v2 = vrot.slane %v6858_v1, %v6681_v58  ;;  %v3193_v55 = vcombine.low %v2002_v41, %v2006_v45  ;;  %v3194_v62 = vcombine.low %v2010_v44, %v2014_v24 }
 0x32e   :  { %4299 = vperm.xlu0 %4998, %v3192_v27   ;;  %v3527_v11 = vrot.slane %v3519_v28, %v6684_v10  ;;  %v3195_v8 = vcombine.low %v2018_v13, %v2022_v18  ;;  %v2258_v25 = vrot.slane %v6750_v46, %v6656_v19  ;;  %v2262_v26 = vrot.slane %v6750_v46, %v6660_v17 }
 0x32f   :  { %v3534_v12 = vrot.slane %v3520_v40, %v6684_v10  ;;  %v3196_v49 = vcombine.low %v2026_v39, %v2030_v2  ;;  %v3203_v43 = vrot.slane %v3193_v55, %v6684_v10  ;;  %v3210_v21 = vrot.slane %v3194_v62, %v6684_v10 }
 0x330   :  { %v3217_v1 = vrot.slane %v3195_v8, %v6684_v10  ;;  %v2266_v61 = vrot.slane %v6750_v46, %v6664_v14  ;;  %v2270_v22 = vrot.slane %v6750_v46, %v6667_v30  ;;  %v2274_v9 = vrot.slane %v6750_v46, %v6670_v56 }
 0x331   :  { %v3535_v47 = vcombine.low %v3527_v11, %v3534_v12  ;;  %v3224_v31 = vrot.slane %v3196_v49, %v6684_v10  ;;  %v3225_v38 = vcombine.low %v3203_v43, %v3210_v21  ;;  %v2278_v32 = vrot.slane %v6750_v46, %v6673_v48 }
 0x332   :  { %v2282_v54 = vrot.slane %v6750_v46, %v6676_v16  ;;  %v2286_v41 = vrot.slane %v6750_v46, %v6681_v58  ;;  %v3585_v45 = vcombine.low %v2258_v25, %v2262_v26  ;;  %v3586_v37 = vcombine.low %v2266_v61, %v2270_v22 }
 0x333   :  { %4320 = vperm.xlu0 %4998, %v3535_v47   ;;  %v3226_v15 = vcombine.low %v3217_v1, %v3224_v31  ;;  %v3233_v51 = vrot.slane %v3225_v38, %v6684_v10  ;;  %v3587_v0 = vcombine.low %v2274_v9, %v2278_v32  ;;  %v2226_v6 = vrot.slane %v6752_v4, %v6656_v19 }
 0x334   :  { %v3588_v44 = vcombine.low %v2282_v54, %v2286_v41  ;;  %v3595_v24 = vrot.slane %v3585_v45, %v6684_v10  ;;  %v3602_v13 = vrot.slane %v3586_v37, %v6684_v10  ;;  %v2230_v27 = vrot.slane %v6752_v4, %v6660_v17 }
 0x335   :  { %v3240_v46 = vrot.slane %v3226_v15, %v6684_v10  ;;  %v3609_v28 = vrot.slane %v3587_v0, %v6684_v10  ;;  %v2234_v18 = vrot.slane %v6752_v4, %v6664_v14  ;;  %v2238_v39 = vrot.slane %v6752_v4, %v6667_v30 }
 0x336   :  { %v3616_v40 = vrot.slane %v3588_v44, %v6684_v10  ;;  %v3617_v2 = vcombine.low %v3595_v24, %v3602_v13  ;;  %v2242_v55 = vrot.slane %v6752_v4, %v6670_v56  ;;  %v2246_v62 = vrot.slane %v6752_v4, %v6673_v48 }
 0x337   :  { %v3241_v11 = vcombine.low %v3233_v51, %v3240_v46  ;;  %v2250_v8 = vrot.slane %v6752_v4, %v6676_v16  ;;  %v2254_v25 = vrot.slane %v6752_v4, %v6681_v58  ;;  %v3536_v26 = vcombine.low %v2226_v6, %v2230_v27 }
 0x338   :  { %v3618_v12 = vcombine.low %v3609_v28, %v3616_v40  ;;  %v3625_v49 = vrot.slane %v3617_v2, %v6684_v10  ;;  %v3537_v43 = vcombine.low %v2234_v18, %v2238_v39  ;;  %v3538_v21 = vcombine.low %v2242_v55, %v2246_v62 }
 0x339   :  { %4302 = vperm.xlu1 %4999, %v3241_v11   ;;  %v3539_v1 = vcombine.low %v2250_v8, %v2254_v25  ;;  %v3546_v61 = vrot.slane %v3536_v26, %v6684_v10  ;;  %v2322_v22 = vrot.slane %v6766_v5, %v6656_v19  ;;  %v2326_v9 = vrot.slane %v6766_v5, %v6660_v17 }
 0x33a   :  { %v3632_v47 = vrot.slane %v3618_v12, %v6684_v10  ;;  %v3553_v4 = vrot.slane %v3537_v43, %v6684_v10  ;;  %v3560_v31 = vrot.slane %v3538_v21, %v6684_v10  ;;  %v2330_v38 = vrot.slane %v6766_v5, %v6664_v14 }
 0x33b   :  { %v3567_v32 = vrot.slane %v3539_v1, %v6684_v10  ;;  %v2334_v54 = vrot.slane %v6766_v5, %v6667_v30  ;;  %v2338_v41 = vrot.slane %v6766_v5, %v6670_v56  ;;  %v2342_v45 = vrot.slane %v6766_v5, %v6673_v48 }
 0x33c   :  { %v3633_v37 = vcombine.low %v3625_v49, %v3632_v47  ;;  %v3568_v15 = vcombine.low %v3546_v61, %v3553_v4  ;;  %v2346_v51 = vrot.slane %v6766_v5, %v6676_v16  ;;  %v2350_v0 = vrot.slane %v6766_v5, %v6681_v58 }
 0x33d   :  { %v3569_v6 = vcombine.low %v3560_v31, %v3567_v32  ;;  %v3683_v44 = vcombine.low %v2322_v22, %v2326_v9  ;;  %v3684_v24 = vcombine.low %v2330_v38, %v2334_v54  ;;  %v3685_v13 = vcombine.low %v2338_v41, %v2342_v45 }
 0x33e   :  { %4326 = vperm.xlu0 %4998, %v3633_v37   ;;  %v3576_v27 = vrot.slane %v3568_v15, %v6684_v10  ;;  %v3686_v46 = vcombine.low %v2346_v51, %v2350_v0  ;;  %v2290_v28 = vrot.slane %v6758_v42, %v6656_v19  ;;  %v2294_v18 = vrot.slane %v6758_v42, %v6660_v17 }
 0x33f   :  { %v3583_v39 = vrot.slane %v3569_v6, %v6684_v10  ;;  %v3693_v40 = vrot.slane %v3683_v44, %v6684_v10  ;;  %v3700_v5 = vrot.slane %v3684_v24, %v6684_v10  ;;  %v3707_v2 = vrot.slane %v3685_v13, %v6684_v10 }
 0x340   :  { %v3714_v55 = vrot.slane %v3686_v46, %v6684_v10  ;;  %v2298_v62 = vrot.slane %v6758_v42, %v6664_v14  ;;  %v2302_v11 = vrot.slane %v6758_v42, %v6667_v30  ;;  %v2306_v8 = vrot.slane %v6758_v42, %v6670_v56 }
 0x341   :  { %v3584_v25 = vcombine.low %v3576_v27, %v3583_v39  ;;  %v3715_v26 = vcombine.low %v3693_v40, %v3700_v5  ;;  %v2310_v12 = vrot.slane %v6758_v42, %v6673_v48  ;;  %v2314_v49 = vrot.slane %v6758_v42, %v6676_v16 }
 0x342   :  { %v3716_v43 = vcombine.low %v3707_v2, %v3714_v55  ;;  %v2318_v21 = vrot.slane %v6758_v42, %v6681_v58  ;;  %v3634_v1 = vcombine.low %v2290_v28, %v2294_v18  ;;  %v3635_v61 = vcombine.low %v2298_v62, %v2302_v11 }
 0x343   :  { %4323 = vperm.xlu1 %4999, %v3584_v25   ;;  %v3723_v22 = vrot.slane %v3715_v26, %v6684_v10  ;;  %v3636_v9 = vcombine.low %v2306_v8, %v2310_v12  ;;  %v2386_v47 = vrot.slane %v6795_v59, %v6656_v19  ;;  %v2390_v4 = vrot.slane %v6795_v59, %v6660_v17 }
 0x344   :  { %v3730_v31 = vrot.slane %v3716_v43, %v6684_v10  ;;  %v3637_v38 = vcombine.low %v2314_v49, %v2318_v21  ;;  %v3644_v32 = vrot.slane %v3634_v1, %v6684_v10  ;;  %v3651_v54 = vrot.slane %v3635_v61, %v6684_v10 }
 0x345   :  { %v3658_v42 = vrot.slane %v3636_v9, %v6684_v10  ;;  %v2394_v41 = vrot.slane %v6795_v59, %v6664_v14  ;;  %v2398_v45 = vrot.slane %v6795_v59, %v6667_v30  ;;  %v2402_v37 = vrot.slane %v6795_v59, %v6670_v56 }
 0x346   :  { %v3731_v15 = vcombine.low %v3723_v22, %v3730_v31  ;;  %v3665_v51 = vrot.slane %v3637_v38, %v6684_v10  ;;  %v3666_v0 = vcombine.low %v3644_v32, %v3651_v54  ;;  %v2406_v6 = vrot.slane %v6795_v59, %v6673_v48 }
 0x347   :  { %v2410_v44 = vrot.slane %v6795_v59, %v6676_v16  ;;  %v2414_v24 = vrot.slane %v6795_v59, %v6681_v58  ;;  %v3781_v13 = vcombine.low %v2386_v47, %v2390_v4  ;;  %v3782_v27 = vcombine.low %v2394_v41, %v2398_v45 }
 0x348   :  { %4332 = vperm.xlu0 %4998, %v3731_v15   ;;  %v3667_v46 = vcombine.low %v3658_v42, %v3665_v51  ;;  %v3674_v28 = vrot.slane %v3666_v0, %v6684_v10  ;;  %v3783_v18 = vcombine.low %v2402_v37, %v2406_v6  ;;  %v2354_v39 = vrot.slane %v6786_v60, %v6656_v19 }
 0x349   :  { %v3784_v40 = vcombine.low %v2410_v44, %v2414_v24  ;;  %v3791_v5 = vrot.slane %v3781_v13, %v6684_v10  ;;  %v3798_v2 = vrot.slane %v3782_v27, %v6684_v10  ;;  %v2358_v55 = vrot.slane %v6786_v60, %v6660_v17 }
 0x34a   :  { %v3681_v59 = vrot.slane %v3667_v46, %v6684_v10  ;;  %v3805_v62 = vrot.slane %v3783_v18, %v6684_v10  ;;  %v2362_v11 = vrot.slane %v6786_v60, %v6664_v14  ;;  %v2366_v8 = vrot.slane %v6786_v60, %v6667_v30 }
 0x34b   :  { %v3812_v25 = vrot.slane %v3784_v40, %v6684_v10  ;;  %v3813_v26 = vcombine.low %v3791_v5, %v3798_v2  ;;  %v2370_v12 = vrot.slane %v6786_v60, %v6670_v56  ;;  %v2374_v49 = vrot.slane %v6786_v60, %v6673_v48 }
 0x34c   :  { %v3682_v43 = vcombine.low %v3674_v28, %v3681_v59  ;;  %v2378_v21 = vrot.slane %v6786_v60, %v6676_v16  ;;  %v2382_v1 = vrot.slane %v6786_v60, %v6681_v58  ;;  %v3732_v61 = vcombine.low %v2354_v39, %v2358_v55 }
 0x34d   :  { %v3814_v22 = vcombine.low %v3805_v62, %v3812_v25  ;;  %v3821_v9 = vrot.slane %v3813_v26, %v6684_v10  ;;  %v3733_v47 = vcombine.low %v2362_v11, %v2366_v8  ;;  %v3734_v4 = vcombine.low %v2370_v12, %v2374_v49 }
 0x34e   :  { %4329 = vperm.xlu1 %4999, %v3682_v43   ;;  %v3735_v31 = vcombine.low %v2378_v21, %v2382_v1  ;;  %v3742_v38 = vrot.slane %v3732_v61, %v6684_v10  ;;  %v2450_v32 = vrot.slane %v6820_v53, %v6656_v19  ;;  %v2454_v54 = vrot.slane %v6820_v53, %v6660_v17 }
 0x34f   :  { %v3828_v42 = vrot.slane %v3814_v22, %v6684_v10  ;;  %v3749_v60 = vrot.slane %v3733_v47, %v6684_v10  ;;  %v3756_v41 = vrot.slane %v3734_v4, %v6684_v10  ;;  %v2458_v45 = vrot.slane %v6820_v53, %v6664_v14 }
 0x350   :  { %v3763_v37 = vrot.slane %v3735_v31, %v6684_v10  ;;  %v2462_v15 = vrot.slane %v6820_v53, %v6667_v30  ;;  %v2466_v51 = vrot.slane %v6820_v53, %v6670_v56  ;;  %v2470_v0 = vrot.slane %v6820_v53, %v6673_v48 }
 0x351   :  { %v3829_v6 = vcombine.low %v3821_v9, %v3828_v42  ;;  %v3764_v44 = vcombine.low %v3742_v38, %v3749_v60  ;;  %v2474_v24 = vrot.slane %v6820_v53, %v6676_v16  ;;  %v2478_v13 = vrot.slane %v6820_v53, %v6681_v58 }
 0x352   :  { %v3765_v27 = vcombine.low %v3756_v41, %v3763_v37  ;;  %v3879_v46 = vcombine.low %v2450_v32, %v2454_v54  ;;  %v3880_v28 = vcombine.low %v2458_v45, %v2462_v15  ;;  %v3881_v18 = vcombine.low %v2466_v51, %v2470_v0 }
 0x353   :  { %4338 = vperm.xlu0 %4998, %v3829_v6   ;;  %v3772_v39 = vrot.slane %v3764_v44, %v6684_v10  ;;  %v3882_v40 = vcombine.low %v2474_v24, %v2478_v13  ;;  %v2418_v5 = vrot.slane %v6806_v33, %v6656_v19  ;;  %v2422_v2 = vrot.slane %v6806_v33, %v6660_v17 }
 0x354   :  { %v3779_v55 = vrot.slane %v3765_v27, %v6684_v10  ;;  %v3889_v59 = vrot.slane %v3879_v46, %v6684_v10  ;;  %v3896_v53 = vrot.slane %v3880_v28, %v6684_v10  ;;  %v3903_v62 = vrot.slane %v3881_v18, %v6684_v10 }
 0x355   :  { %v3910_v11 = vrot.slane %v3882_v40, %v6684_v10  ;;  %v2426_v8 = vrot.slane %v6806_v33, %v6664_v14  ;;  %v2430_v25 = vrot.slane %v6806_v33, %v6667_v30  ;;  %v2434_v26 = vrot.slane %v6806_v33, %v6670_v56 }
 0x356   :  { %v3780_v12 = vcombine.low %v3772_v39, %v3779_v55  ;;  %v3911_v49 = vcombine.low %v3889_v59, %v3896_v53  ;;  %v2438_v43 = vrot.slane %v6806_v33, %v6673_v48  ;;  %v2442_v21 = vrot.slane %v6806_v33, %v6676_v16 }
 0x357   :  { %v3912_v1 = vcombine.low %v3903_v62, %v3910_v11  ;;  %v2446_v61 = vrot.slane %v6806_v33, %v6681_v58  ;;  %v3830_v22 = vcombine.low %v2418_v5, %v2422_v2  ;;  %v3831_v9 = vcombine.low %v2426_v8, %v2430_v25 }
 0x358   :  { %4335 = vperm.xlu1 %4999, %v3780_v12   ;;  %v3919_v47 = vrot.slane %v3911_v49, %v6684_v10  ;;  %v3832_v4 = vcombine.low %v2434_v26, %v2438_v43  ;;  %v2514_v31 = vrot.slane %v6852_v35, %v6656_v19  ;;  %v2518_v38 = vrot.slane %v6852_v35, %v6660_v17 }
 0x359   :  { %v3926_v32 = vrot.slane %v3912_v1, %v6684_v10  ;;  %v3833_v54 = vcombine.low %v2442_v21, %v2446_v61  ;;  %v3840_v42 = vrot.slane %v3830_v22, %v6684_v10  ;;  %v3847_v60 = vrot.slane %v3831_v9, %v6684_v10 }
 0x35a   :  { %v3854_v33 = vrot.slane %v3832_v4, %v6684_v10  ;;  %v2522_v41 = vrot.slane %v6852_v35, %v6664_v14  ;;  %v2526_v45 = vrot.slane %v6852_v35, %v6667_v30  ;;  %v2530_v37 = vrot.slane %v6852_v35, %v6670_v56 }
 0x35b   :  { %v3927_v15 = vcombine.low %v3919_v47, %v3926_v32  ;;  %v3861_v51 = vrot.slane %v3833_v54, %v6684_v10  ;;  %v3862_v0 = vcombine.low %v3840_v42, %v3847_v60  ;;  %v2534_v6 = vrot.slane %v6852_v35, %v6673_v48 }
 0x35c   :  { %v2538_v44 = vrot.slane %v6852_v35, %v6676_v16  ;;  %v2542_v24 = vrot.slane %v6852_v35, %v6681_v58  ;;  %v3977_v13 = vcombine.low %v2514_v31, %v2518_v38  ;;  %v3978_v27 = vcombine.low %v2522_v41, %v2526_v45 }
 0x35d   :  { %4344 = vperm.xlu0 %4998, %v3927_v15   ;;  %v3863_v46 = vcombine.low %v3854_v33, %v3861_v51  ;;  %v3870_v28 = vrot.slane %v3862_v0, %v6684_v10  ;;  %v3979_v18 = vcombine.low %v2530_v37, %v2534_v6  ;;  %v2482_v39 = vrot.slane %v6836_v3, %v6656_v19 }
 0x35e   :  { %v3980_v40 = vcombine.low %v2538_v44, %v2542_v24  ;;  %v3987_v5 = vrot.slane %v3977_v13, %v6684_v10  ;;  %v3994_v2 = vrot.slane %v3978_v27, %v6684_v10  ;;  %v2486_v55 = vrot.slane %v6836_v3, %v6660_v17 }
 0x35f   :  { %v3877_v35 = vrot.slane %v3863_v46, %v6684_v10  ;;  %v4001_v59 = vrot.slane %v3979_v18, %v6684_v10  ;;  %v2490_v53 = vrot.slane %v6836_v3, %v6664_v14  ;;  %v2494_v62 = vrot.slane %v6836_v3, %v6667_v30 }
 0x360   :  { %v4008_v11 = vrot.slane %v3980_v40, %v6684_v10  ;;  %v4009_v8 = vcombine.low %v3987_v5, %v3994_v2  ;;  %v2498_v25 = vrot.slane %v6836_v3, %v6670_v56  ;;  %v2502_v26 = vrot.slane %v6836_v3, %v6673_v48 }
 0x361   :  { %v3878_v12 = vcombine.low %v3870_v28, %v3877_v35  ;;  %v2506_v49 = vrot.slane %v6836_v3, %v6676_v16  ;;  %v2510_v43 = vrot.slane %v6836_v3, %v6681_v58  ;;  %v3928_v21 = vcombine.low %v2482_v39, %v2486_v55 }
 0x362   :  { %v4010_v1 = vcombine.low %v4001_v59, %v4008_v11  ;;  %v4017_v61 = vrot.slane %v4009_v8, %v6684_v10  ;;  %v3929_v22 = vcombine.low %v2490_v53, %v2494_v62  ;;  %v3930_v9 = vcombine.low %v2498_v25, %v2502_v26 }
 0x363   :  { %4341 = vperm.xlu1 %4999, %v3878_v12   ;;  %v3931_v47 = vcombine.low %v2506_v49, %v2510_v43  ;;  %v3938_v4 = vrot.slane %v3928_v21, %v6684_v10  ;;  %v2546_v31 = vrot.slane %v6866_v36, %v6656_v19  ;;  %v2550_v38 = vrot.slane %v6866_v36, %v6660_v17 }
 0x364   :  { %v4024_v32 = vrot.slane %v4010_v1, %v6684_v10  ;;  %v3945_v3 = vrot.slane %v3929_v22, %v6684_v10  ;;  %v3952_v54 = vrot.slane %v3930_v9, %v6684_v10  ;;  %v2554_v42 = vrot.slane %v6866_v36, %v6664_v14 }
 0x365   :  { %v3959_v60 = vrot.slane %v3931_v47, %v6684_v10  ;;  %v2558_v33 = vrot.slane %v6866_v36, %v6667_v30  ;;  %v2562_v41 = vrot.slane %v6866_v36, %v6670_v56  ;;  %v2566_v45 = vrot.slane %v6866_v36, %v6673_v48 }
 0x366   :  { %v4025_v37 = vcombine.low %v4017_v61, %v4024_v32  ;;  %v3960_v15 = vcombine.low %v3938_v4, %v3945_v3  ;;  %v2570_v51 = vrot.slane %v6866_v36, %v6676_v16  ;;  %v2574_v0 = vrot.slane %v6866_v36, %v6681_v58 }
 0x367   :  { %v3961_v6 = vcombine.low %v3952_v54, %v3959_v60  ;;  %v4026_v44 = vcombine.low %v2546_v31, %v2550_v38  ;;  %v4027_v24 = vcombine.low %v2554_v42, %v2558_v33  ;;  %v4028_v13 = vcombine.low %v2562_v41, %v2566_v45 }
 0x368   :  { %4350 = vperm.xlu0 %4998, %v4025_v37   ;;  %v3968_v27 = vrot.slane %v3960_v15, %v6684_v10  ;;  %v4029_v46 = vcombine.low %v2570_v51, %v2574_v0  ;;  %v2034_v28 = vrot.slane %v6871_v29, %v6656_v19  ;;  %v2038_v18 = vrot.slane %v6871_v29, %v6660_v17 }
 0x369   :  { %v3975_v39 = vrot.slane %v3961_v6, %v6684_v10  ;;  %v4036_v40 = vrot.slane %v4026_v44, %v6684_v10  ;;  %v4043_v36 = vrot.slane %v4027_v24, %v6684_v10  ;;  %v4050_v5 = vrot.slane %v4028_v13, %v6684_v10 }
 0x36a   :  { %v4057_v2 = vrot.slane %v4029_v46, %v6684_v10  ;;  %v2042_v55 = vrot.slane %v6871_v29, %v6664_v14  ;;  %v2046_v35 = vrot.slane %v6871_v29, %v6667_v30  ;;  %v2050_v59 = vrot.slane %v6871_v29, %v6670_v56 }
 0x36b   :  { %v3976_v53 = vcombine.low %v3968_v27, %v3975_v39  ;;  %v4058_v62 = vcombine.low %v4036_v40, %v4043_v36  ;;  %v2054_v11 = vrot.slane %v6871_v29, %v6673_v48  ;;  %v2058_v8 = vrot.slane %v6871_v29, %v6676_v16 }
 0x36c   :  { %v4059_v25 = vcombine.low %v4050_v5, %v4057_v2  ;;  %v2062_v26 = vrot.slane %v6871_v29, %v6681_v58  ;;  %v3242_v12 = vcombine.low %v2034_v28, %v2038_v18  ;;  %v3243_v49 = vcombine.low %v2042_v55, %v2046_v35 }
 0x36d   :  { %4347 = vperm.xlu1 %4999, %v3976_v53   ;;  %v4066_v43 = vrot.slane %v4058_v62, %v6684_v10  ;;  %v3244_v21 = vcombine.low %v2050_v59, %v2054_v11  ;;  %v2578_v1 = vrot.slane %v6888_v63, %v6656_v19  ;;  %v2582_v61 = vrot.slane %v6888_v63, %v6660_v17 }
 0x36e   :  { %v4073_v22 = vrot.slane %v4059_v25, %v6684_v10  ;;  %v3245_v9 = vcombine.low %v2058_v8, %v2062_v26  ;;  %v3252_v47 = vrot.slane %v3242_v12, %v6684_v10  ;;  %v3259_v4 = vrot.slane %v3243_v49, %v6684_v10 }
 0x36f   :  { %v3266_v29 = vrot.slane %v3244_v21, %v6684_v10  ;;  %v2586_v31 = vrot.slane %v6888_v63, %v6664_v14  ;;  %v2590_v38 = vrot.slane %v6888_v63, %v6667_v30  ;;  %v2594_v32 = vrot.slane %v6888_v63, %v6670_v56 }
 0x370   :  { %v4074_v3 = vcombine.low %v4066_v43, %v4073_v22  ;;  %v3273_v54 = vrot.slane %v3245_v9, %v6684_v10  ;;  %v3274_v42 = vcombine.low %v3252_v47, %v3259_v4  ;;  %v2598_v60 = vrot.slane %v6888_v63, %v6673_v48 }
 0x371   :  { %v2602_v33 = vrot.slane %v6888_v63, %v6676_v16  ;;  %v2606_v41 = vrot.slane %v6888_v63, %v6681_v58  ;;  %v4075_v45 = vcombine.low %v2578_v1, %v2582_v61  ;;  %v4076_v37 = vcombine.low %v2586_v31, %v2590_v38 }
 0x372   :  { %4353 = vperm.xlu0 %4998, %v4074_v3   ;;  %v3275_v15 = vcombine.low %v3266_v29, %v3273_v54  ;;  %v3282_v51 = vrot.slane %v3274_v42, %v6684_v10  ;;  %v4077_v0 = vcombine.low %v2594_v32, %v2598_v60  ;;  %v2066_v6 = vrot.slane %v6893_v23, %v6656_v19 }
 0x373   :  { %v4078_v44 = vcombine.low %v2602_v33, %v2606_v41  ;;  %v4085_v24 = vrot.slane %v4075_v45, %v6684_v10  ;;  %v4092_v13 = vrot.slane %v4076_v37, %v6684_v10  ;;  %v2070_v27 = vrot.slane %v6893_v23, %v6660_v17 }
 0x374   :  { %v3289_v63 = vrot.slane %v3275_v15, %v6684_v10  ;;  %v4099_v46 = vrot.slane %v4077_v0, %v6684_v10  ;;  %v2074_v28 = vrot.slane %v6893_v23, %v6664_v14  ;;  %v2078_v18 = vrot.slane %v6893_v23, %v6667_v30 }
 0x375   :  { %v4106_v39 = vrot.slane %v4078_v44, %v6684_v10  ;;  %v4107_v40 = vcombine.low %v4085_v24, %v4092_v13  ;;  %v2082_v36 = vrot.slane %v6893_v23, %v6670_v56  ;;  %v2086_v5 = vrot.slane %v6893_v23, %v6673_v48 }
 0x376   :  { %v3290_v2 = vcombine.low %v3282_v51, %v3289_v63  ;;  %v2090_v55 = vrot.slane %v6893_v23, %v6676_v16  ;;  %v2094_v35 = vrot.slane %v6893_v23, %v6681_v58  ;;  %v3291_v59 = vcombine.low %v2066_v6, %v2070_v27 }
 0x377   :  { %v4108_v53 = vcombine.low %v4099_v46, %v4106_v39  ;;  %v4115_v62 = vrot.slane %v4107_v40, %v6684_v10  ;;  %v3292_v11 = vcombine.low %v2074_v28, %v2078_v18  ;;  %v3293_v8 = vcombine.low %v2082_v36, %v2086_v5 }
 0x378   :  { %4305 = vperm.xlu1 %4999, %v3290_v2   ;;  %v3294_v25 = vcombine.low %v2090_v55, %v2094_v35  ;;  %v3301_v26 = vrot.slane %v3291_v59, %v6684_v10  ;;  %v2610_v12 = vrot.slane %v6899_v57, %v6656_v19  ;;  %v2614_v49 = vrot.slane %v6899_v57, %v6660_v17 }
 0x379   :  { %v4122_v43 = vrot.slane %v4108_v53, %v6684_v10  ;;  %v3308_v23 = vrot.slane %v3292_v11, %v6684_v10  ;;  %v3315_v21 = vrot.slane %v3293_v8, %v6684_v10  ;;  %v2618_v1 = vrot.slane %v6899_v57, %v6664_v14 }
 0x37a   :  { %v3322_v61 = vrot.slane %v3294_v25, %v6684_v10  ;;  %v2622_v22 = vrot.slane %v6899_v57, %v6667_v30  ;;  %v2626_v9 = vrot.slane %v6899_v57, %v6670_v56  ;;  %v2630_v47 = vrot.slane %v6899_v57, %v6673_v48 }
 0x37b   :  { %v4123_v4 = vcombine.low %v4115_v62, %v4122_v43  ;;  %v3323_v29 = vcombine.low %v3301_v26, %v3308_v23  ;;  %v2634_v31 = vrot.slane %v6899_v57, %v6676_v16  ;;  %v2638_v38 = vrot.slane %v6899_v57, %v6681_v58 }
 0x37c   :  { %v3324_v32 = vcombine.low %v3315_v21, %v3322_v61  ;;  %v4124_v3 = vcombine.low %v2610_v12, %v2614_v49  ;;  %v4125_v54 = vcombine.low %v2618_v1, %v2622_v22  ;;  %v4126_v42 = vcombine.low %v2626_v9, %v2630_v47 }
 0x37d   :  { %4356 = vperm.xlu0 %4998, %v4123_v4   ;;  %v3331_v60 = vrot.slane %v3323_v29, %v6684_v10  ;;  %v4127_v33 = vcombine.low %v2634_v31, %v2638_v38  ;;  %v2098_v41 = vrot.slane %v6902_v7, %v6656_v19  ;;  %v2102_v45 = vrot.slane %v6902_v7, %v6660_v17 }
 0x37e   :  { %v3338_v37 = vrot.slane %v3324_v32, %v6684_v10  ;;  %v4134_v15 = vrot.slane %v4124_v3, %v6684_v10  ;;  %v4141_v57 = vrot.slane %v4125_v54, %v6684_v10  ;;  %v4148_v51 = vrot.slane %v4126_v42, %v6684_v10 }
 0x37f   :  { %v4155_v0 = vrot.slane %v4127_v33, %v6684_v10  ;;  %v2106_v6 = vrot.slane %v6902_v7, %v6664_v14  ;;  %v2110_v44 = vrot.slane %v6902_v7, %v6667_v30  ;;  %v2114_v24 = vrot.slane %v6902_v7, %v6670_v56 }
 0x380   :  { %v3339_v13 = vcombine.low %v3331_v60, %v3338_v37  ;;  %v4156_v27 = vcombine.low %v4134_v15, %v4141_v57  ;;  %v2118_v63 = vrot.slane %v6902_v7, %v6673_v48  ;;  %v2122_v46 = vrot.slane %v6902_v7, %v6676_v16 }
 0x381   :  { %v4157_v28 = vcombine.low %v4148_v51, %v4155_v0  ;;  %v2126_v18 = vrot.slane %v6902_v7, %v6681_v58  ;;  %v3340_v39 = vcombine.low %v2098_v41, %v2102_v45  ;;  %v3341_v40 = vcombine.low %v2106_v6, %v2110_v44 }
 0x382   :  { %4308 = vperm.xlu1 %4999, %v3339_v13   ;;  %v4164_v36 = vrot.slane %v4156_v27, %v6684_v10  ;;  %v3342_v5 = vcombine.low %v2114_v24, %v2118_v63  ;;  %v2642_v2 = vrot.slane %v6914_v52, %v6656_v19  ;;  %v2646_v55 = vrot.slane %v6914_v52, %v6660_v17 }
 0x383   :  { %v4171_v35 = vrot.slane %v4157_v28, %v6684_v10  ;;  %v3343_v59 = vcombine.low %v2122_v46, %v2126_v18  ;;  %v3350_v53 = vrot.slane %v3340_v39, %v6684_v10  ;;  %v3357_v62 = vrot.slane %v3341_v40, %v6684_v10 }
 0x384   :  { %v3364_v7 = vrot.slane %v3342_v5, %v6684_v10  ;;  %v2650_v11 = vrot.slane %v6914_v52, %v6664_v14  ;;  %v2654_v8 = vrot.slane %v6914_v52, %v6667_v30  ;;  %v2658_v25 = vrot.slane %v6914_v52, %v6670_v56 }
 0x385   :  { %v4172_v26 = vcombine.low %v4164_v36, %v4171_v35  ;;  %v3371_v12 = vrot.slane %v3343_v59, %v6684_v10  ;;  %v3372_v49 = vcombine.low %v3350_v53, %v3357_v62  ;;  %v2662_v43 = vrot.slane %v6914_v52, %v6673_v48 }
 0x386   :  { %v2666_v23 = vrot.slane %v6914_v52, %v6676_v16  ;;  %v2670_v21 = vrot.slane %v6914_v52, %v6681_v58  ;;  %v4173_v1 = vcombine.low %v2642_v2, %v2646_v55  ;;  %v4174_v61 = vcombine.low %v2650_v11, %v2654_v8 }
 0x387   :  { %4359 = vperm.xlu0 %4998, %v4172_v26   ;;  %v3373_v22 = vcombine.low %v3364_v7, %v3371_v12  ;;  %v3380_v9 = vrot.slane %v3372_v49, %v6684_v10  ;;  %v4175_v47 = vcombine.low %v2658_v25, %v2662_v43  ;;  %v2130_v4 = vrot.slane %v6920_v34, %v6656_v19 }
 0x388   :  { %v4176_v29 = vcombine.low %v2666_v23, %v2670_v21  ;;  %v4183_v31 = vrot.slane %v4173_v1, %v6684_v10  ;;  %v4190_v38 = vrot.slane %v4174_v61, %v6684_v10  ;;  %v2134_v32 = vrot.slane %v6920_v34, %v6660_v17 }
 0x389   :  { %v3387_v52 = vrot.slane %v3373_v22, %v6684_v10  ;;  %v4197_v3 = vrot.slane %v4175_v47, %v6684_v10  ;;  %v2138_v54 = vrot.slane %v6920_v34, %v6664_v14  ;;  %v2142_v42 = vrot.slane %v6920_v34, %v6667_v30 }
 0x38a   :  { %v4204_v60 = vrot.slane %v4176_v29, %v6684_v10  ;;  %v4205_v33 = vcombine.low %v4183_v31, %v4190_v38  ;;  %v2146_v41 = vrot.slane %v6920_v34, %v6670_v56  ;;  %v2150_v45 = vrot.slane %v6920_v34, %v6673_v48 }
 0x38b   :  { %v3388_v37 = vcombine.low %v3380_v9, %v3387_v52  ;;  %v2154_v15 = vrot.slane %v6920_v34, %v6676_v16  ;;  %v2158_v57 = vrot.slane %v6920_v34, %v6681_v58  ;;  %v3389_v51 = vcombine.low %v2130_v4, %v2134_v32 }
 0x38c   :  { %v4206_v0 = vcombine.low %v4197_v3, %v4204_v60  ;;  %v4213_v6 = vrot.slane %v4205_v33, %v6684_v10  ;;  %v3390_v44 = vcombine.low %v2138_v54, %v2142_v42  ;;  %v3391_v24 = vcombine.low %v2146_v41, %v2150_v45  ;;  %v4276_v45 = vpop.permute.xlu1 %4275 }
 0x38d   :  { %4311 = vperm.xlu1 %4999, %v3388_v37   ;;  %v3392_v13 = vcombine.low %v2154_v15, %v2158_v57  ;;  %v3399_v27 = vrot.slane %v3389_v51, %v6684_v10  ;;  %v2674_v63 = vrot.slane %v6934_v50, %v6656_v19  ;;  %v2678_v46 = vrot.slane %v6934_v50, %v6660_v17 }
 0x38e   :  { %v4220_v28 = vrot.slane %v4206_v0, %v6684_v10  ;;  %v3406_v34 = vrot.slane %v3390_v44, %v6684_v10  ;;  %v3413_v18 = vrot.slane %v3391_v24, %v6684_v10  ;;  %v2682_v39 = vrot.slane %v6934_v50, %v6664_v14  ;;  %v4273_v0 = vpop.permute.xlu0 %4272 }
 0x38f   :  { %v3420_v40 = vrot.slane %v3392_v13, %v6684_v10  ;;  %v2686_v36 = vrot.slane %v6934_v50, %v6667_v30  ;;  %v2690_v5 = vrot.slane %v6934_v50, %v6670_v56  ;;  %v2694_v2 = vrot.slane %v6934_v50, %v6673_v48 }
 0x390   :  { %v4221_v55 = vcombine.low %v4213_v6, %v4220_v28  ;;  %v3421_v35 = vcombine.low %v3399_v27, %v3406_v34  ;;  %v2698_v59 = vrot.slane %v6934_v50, %v6676_v16  ;;  %v2702_v53 = vrot.slane %v6934_v50, %v6681_v58  ;;  %v7472_v37 = vpop.permute.xlu1 %4278 }
 0x391   :  { %v3422_v62 = vcombine.low %v3413_v18, %v3420_v40  ;;  %v4222_v7 = vcombine.low %v2674_v63, %v2678_v46  ;;  %v4223_v11 = vcombine.low %v2682_v39, %v2686_v36  ;;  %v4224_v8 = vcombine.low %v2690_v5, %v2694_v2 }
 0x392   :  { %4362 = vperm.xlu0 %4998, %v4221_v55   ;;  %v3429_v25 = vrot.slane %v3421_v35, %v6684_v10  ;;  %v4225_v26 = vcombine.low %v2698_v59, %v2702_v53  ;;  %v2162_v12 = vrot.slane %v6938_v20, %v6656_v19  ;;  %v2166_v49 = vrot.slane %v6938_v20, %v6660_v17 }
 0x393   :  { %v3436_v43 = vrot.slane %v3422_v62, %v6684_v10  ;;  %v4232_v23 = vrot.slane %v4222_v7, %v6684_v10  ;;  %v4239_v50 = vrot.slane %v4223_v11, %v6684_v10  ;;  %v4246_v21 = vrot.slane %v4224_v8, %v6684_v10  ;;  %v7860_v11 = vld [vmem:[#allocation10_spill] sm:$0xff] }
 0x394   :  { %v4253_v1 = vrot.slane %v4225_v26, %v6684_v10  ;;  %v2170_v61 = vrot.slane %v6938_v20, %v6664_v14  ;;  %v2174_v22 = vrot.slane %v6938_v20, %v6667_v30  ;;  %v2178_v19 = vrot.slane %v6938_v20, %v6670_v56  ;;  %v7474_v15 = vpop.permute.xlu1 %4281 }
 0x395   :  { %v3437_v17 = vcombine.low %v3429_v25, %v3436_v43  ;;  %v4254_v9 = vcombine.low %v4232_v23, %v4239_v50  ;;  %v2182_v47 = vrot.slane %v6938_v20, %v6673_v48  ;;  %v2186_v4 = vrot.slane %v6938_v20, %v6676_v16 }
 0x396   :  { %v4255_v29 = vcombine.low %v4246_v21, %v4253_v1  ;;  %v2190_v31 = vrot.slane %v6938_v20, %v6681_v58  ;;  %v3438_v38 = vcombine.low %v2162_v12, %v2166_v49  ;;  %v3439_v14 = vcombine.low %v2170_v61, %v2174_v22 }
 0x397   :  { %4314 = vperm.xlu1 %4999, %v3437_v17   ;;  %v4262_v30 = vrot.slane %v4254_v9, %v6684_v10  ;;  %v3440_v32 = vcombine.low %v2178_v19, %v2182_v47  ;;  %v7859_v5 = vlaneseq }
 0x398   :  { %v4269_v56 = vrot.slane %v4255_v29, %v6684_v10  ;;  %v3441_v52 = vcombine.low %v2186_v4, %v2190_v31  ;;  %v3448_v3 = vrot.slane %v3438_v38, %v6684_v10  ;;  %v3455_v48 = vrot.slane %v3439_v14, %v6684_v10  ;;  %v7476_v57 = vpop.permute.xlu1 %4284 }
 0x399   :  { %v3462_v54 = vrot.slane %v3440_v32, %v6684_v10  ;;  %v7495_v2 = vand.u32 127, %v7859_v5  ;;  %vm4575_vm0 = vcmp.lt.s32.totalorder %v7859_v5, 256 }
 0x39a   :  { %v4270_v16 = vcombine.low %v4262_v30, %v4269_v56  ;;  %v3469_v42 = vrot.slane %v3441_v52, %v6684_v10  ;;  %v3470_v60 = vcombine.low %v3448_v3, %v3455_v48 }
 0x39b   :  { %v4373_v59 = vadd.s32 4294967288, %v7495_v2  ;;  %v4380_v53 = vadd.s32 4294967280, %v7495_v2  ;;  %v4387_v25 = vadd.s32 4294967272, %v7495_v2  ;;  %v4371_v26 = vsub.s32 %v7495_v2, %v7860_v11 }
 0x39c   :  { %4365 = vperm.xlu0 %4998, %v4270_v16   ;;  %v3471_v58 = vcombine.low %v3462_v54, %v3469_v42  ;;  %v3478_v20 = vrot.slane %v3470_v60, %v6684_v10  ;;  %v7478_v51 = vpop.permute.xlu1 %4287  ;;  %v4394_v12 = vadd.s32 4294967264, %v7495_v2  ;;  %v4401_v50 = vadd.s32 4294967256, %v7495_v2 }
 0x39d   :  { %v4376_v8 = vsub.s32 %v4373_v59, %v7860_v11  ;;  %v4383_v43 = vsub.s32 %v4380_v53, %v7860_v11  ;;  %v4390_v23 = vsub.s32 %v4387_v25, %v7860_v11  ;;  %v4372_v4 = vrot.slane %v4273_v0, %v4371_v26 }
 0x39e   :  { %v3485_v33 = vrot.slane %v3471_v58, %v6684_v10  ;;  %v4397_v19 = vsub.s32 %v4394_v12, %v7860_v11  ;;  %v4408_v29 = vadd.s32 4294967248, %v7495_v2  ;;  %v4404_v38 = vsub.s32 %v4401_v50, %v7860_v11 }
 0x39f   :  { %v4377_v47 = vrot.slane %v4276_v45, %v4376_v8  ;;  %v4384_v31 = vrot.slane %v7472_v37, %v4383_v43  ;;  %v4415_v14 = vadd.s32 4294967240, %v7495_v2  ;;  %v4391_v30 = vrot.slane %v7474_v15, %v4390_v23 }
 0x3a0   :  { %v3486_v41 = vcombine.low %v3478_v20, %v3485_v33  ;;  %v7480_v6 = vpop.permute.xlu1 %4290  ;;  %v4398_v52 = vrot.slane %v7476_v57, %v4397_v19  ;;  %v4411_v16 = vsub.s32 %v4408_v29, %v7860_v11  ;;  %v4422_v42 = vadd.s32 4294967232, %v7495_v2 }
 0x3a1   :  { %v4379_v54 = vsel %vm4378_vm1, %v4377_v47, %v4372_v4  ;;  %v4418_v33 = vsub.s32 %v4415_v14, %v7860_v11  ;;  %v4457_v53 = vadd.s32 4294967192, %v7495_v2 }
 0x3a2   :  { %4317 = vperm.xlu1 %4999, %v3486_v41   ;;  %v4386_v20 = vsel %vm4385_vm2, %v4384_v31, %v4379_v54  ;;  %v4429_v41 = vadd.s32 4294967224, %v7495_v2  ;;  %v4412_v59 = vrot.slane %v7480_v6, %v4411_v16 }
 0x3a3   :  { %v4393_v45 = vsel %vm4392_vm3, %v4391_v30, %v4386_v20 }
 0x3a4   :  { %v7484_v24 = vpop.permute.xlu1 %4293  ;;  %v4400_v57 = vsel %vm4399_vm4, %v4398_v52, %v4393_v45 }
 0x3a5   :  { %v4419_v50 = vrot.slane %v7484_v24, %v4418_v33 }
 0x3a8   :  { %v7486_v27 = vpop.permute.xlu1 %4296 }
 0x3a9   :  { %v7482_v44 = vpop.permute.xlu0 %4299 }
 0x3ae   :  { %v4321_v13 = vpop.permute.xlu0 %4320 }
 0x3af   :  { %v4481_v21 = vrot.slane %v4321_v13, %v4371_v26 }
 0x3b4   :  { %v7488_v63 = vpop.permute.xlu1 %4302 }
 0x3b9   :  { %v4327_v46 = vpop.permute.xlu0 %4326 }
 0x3ba   :  { %v4490_v1 = vrot.slane %v4327_v46, %v4383_v43  ;;  %v4443_v46 = vadd.s32 4294967208, %v7495_v2  ;;  %v4471_v43 = vadd.s32 4294967176, %v7495_v2 }
 0x3bc   :  { %v4446_v6 = vsub.s32 %v4443_v46, %v7860_v11  ;;  %v4474_v29 = vsub.s32 %v4471_v43, %v7860_v11 }
 0x3be   :  { %v4324_v28 = vpop.permute.xlu1 %4323 }
 0x3bf   :  { %v4485_v49 = vrot.slane %v4324_v28, %v4376_v8  ;;  %v4405_v28 = vrot.slane %v7478_v51, %v4404_v38  ;;  %v4464_v51 = vadd.s32 4294967184, %v7495_v2 }
 0x3c1   :  { %v4486_v17 = vsel %vm4378_vm1, %v4485_v49, %v4481_v21 }
 0x3c2   :  { %v4491_v32 = vsel %vm4385_vm2, %v4490_v1, %v4486_v17  ;;  %v4460_v17 = vsub.s32 %v4457_v53, %v7860_v11 }
 0x3c3   :  { %v4333_v34 = vpop.permute.xlu0 %4332 }
 0x3c4   :  { %v4500_v56 = vrot.slane %v4333_v34, %v4397_v19  ;;  %v4425_v34 = vsub.s32 %v4422_v42, %v7860_v11 }
 0x3c6   :  { %v4426_v19 = vrot.slane %v7486_v27, %v4425_v34 }
 0x3c9   :  { %v4330_v18 = vpop.permute.xlu1 %4329 }
 0x3ca   :  { %v4495_v9 = vrot.slane %v4330_v18, %v4390_v23  ;;  %v4436_v18 = vadd.s32 4294967216, %v7495_v2  ;;  %v4407_v23 = vsel %vm4406_vm5, %v4405_v28, %v4400_v57 }
 0x3cb   :  { %v4414_v1 = vsel %vm4413_vm6, %v4412_v59, %v4407_v23 }
 0x3cc   :  { %v4496_v3 = vsel %vm4392_vm3, %v4495_v9, %v4491_v32  ;;  %v4439_v21 = vsub.s32 %v4436_v18, %v7860_v11  ;;  %v4421_v27 = vsel %vm4420_vm7, %v4419_v50, %v4414_v1 }
 0x3cd   :  { %v4501_v37 = vsel %vm4399_vm4, %v4500_v56, %v4496_v3  ;;  %v4428_v30 = vsel %vm4427_vm8, %v4426_v19, %v4421_v27 }
 0x3ce   :  { %v7490_v39 = vpop.permute.xlu0 %4338  ;;  %v4440_v31 = vrot.slane %v7488_v63, %v4439_v21 }
 0x3cf   :  { %v4510_v15 = vrot.slane %v7490_v39, %v4411_v16  ;;  %v4432_v39 = vsub.s32 %v4429_v41, %v7860_v11 }
 0x3d1   :  { %v4433_v24 = vrot.slane %v7482_v44, %v4432_v39 }
 0x3d3   :  { %v4336_v40 = vpop.permute.xlu1 %4335  ;;  %v4435_v63 = vsel %vm4434_vm9, %v4433_v24, %v4428_v30 }
 0x3d4   :  { %v4505_v48 = vrot.slane %v4336_v40, %v4404_v38  ;;  %v4450_v40 = vadd.s32 4294967200, %v7495_v2  ;;  %v4467_v2 = vsub.s32 %v4464_v51, %v7860_v11 }
 0x3d6   :  { %v4506_v0 = vsel %vm4406_vm5, %v4505_v48, %v4501_v37  ;;  %v4442_v48 = vsel %vm4441_vm10, %v4440_v31, %v4435_v63 }
 0x3d8   :  { %v7492_v36 = vpop.permute.xlu0 %4344 }
 0x3d9   :  { %v4520_v8 = vrot.slane %v7492_v36, %v4425_v34  ;;  %v4453_v36 = vsub.s32 %v4450_v40, %v7860_v11 }
 0x3de   :  { %v7497_v55 = vpop.permute.xlu1 %4341 }
 0x3df   :  { %v4515_v13 = vrot.slane %v7497_v55, %v4418_v33  ;;  %v4511_v55 = vsel %vm4413_vm6, %v4510_v15, %v4506_v0 }
 0x3e1   :  { %v4516_v12 = vsel %vm4420_vm7, %v4515_v13, %v4511_v55 }
 0x3e3   :  { %v7499_v35 = vpop.permute.xlu0 %4350 }
 0x3e4   :  { %v4530_v9 = vrot.slane %v7499_v35, %v4439_v21 }
 0x3e8   :  { %v7503_v62 = vpop.permute.xlu1 %4347 }
 0x3e9   :  { %v4525_v49 = vrot.slane %v7503_v62, %v4432_v39  ;;  %v4521_v62 = vsel %vm4427_vm8, %v4520_v8, %v4516_v12 }
 0x3eb   :  { %v4526_v47 = vsel %vm4434_vm9, %v4525_v49, %v4521_v62 }
 0x3ed   :  { %v7505_v7 = vpop.permute.xlu0 %4353 }
 0x3ee   :  { %v4535_v4 = vrot.slane %v7505_v7, %v4446_v6  ;;  %v4531_v7 = vsel %vm4441_vm10, %v4530_v9, %v4526_v47 }
 0x3f0   :  { %v4536_v52 = vsel %vm4448_vm11, %v4535_v4, %v4531_v7 }
 0x3f3   :  { %v7515_v61 = vpop.permute.xlu1 %4305 }
 0x3f4   :  { %v4447_v32 = vrot.slane %v7515_v61, %v4446_v6 }
 0x3f6   :  { %v4449_v16 = vsel %vm4448_vm11, %v4447_v32, %v4442_v48 }
 0x3f8   :  { %v7517_v22 = vpop.permute.xlu0 %4356 }
 0x3f9   :  { %v4540_v38 = vrot.slane %v7517_v22, %v4453_v36 }
 0x3fb   :  { %v4541_v54 = vsel %vm4455_vm12, %v4540_v38, %v4536_v52 }
 0x3fd   :  { %v7532_v60 = vpop.permute.xlu1 %4308 }
 0x3fe   :  { %v4454_v11 = vrot.slane %v7532_v60, %v4453_v36 }
 0x400   :  { %v4456_v60 = vsel %vm4455_vm12, %v4454_v11, %v4449_v16 }
 0x402   :  { %v7534_v58 = vpop.permute.xlu0 %4359 }
 0x403   :  { %v4545_v44 = vrot.slane %v7534_v58, %v4460_v17 }
 0x405   :  { %v4546_v42 = vsel %vm4462_vm13, %v4545_v44, %v4541_v54 }
 0x408   :  { %v4312_v25 = vpop.permute.xlu1 %4311 }
 0x409   :  { %v4461_v22 = vrot.slane %v4312_v25, %v4460_v17 }
 0x40b   :  { %v4463_v33 = vsel %vm4462_vm13, %v4461_v22, %v4456_v60 }
 0x40d   :  { %v4363_v26 = vpop.permute.xlu0 %4362 }
 0x40e   :  { %v4550_v56 = vrot.slane %v4363_v26, %v4467_v2 }
 0x410   :  { %v4551_v58 = vsel %vm4469_vm14, %v4550_v56, %v4546_v42 }
 0x412   :  { %v4315_v14 = vpop.permute.xlu1 %4314 }
 0x413   :  { %v4468_v61 = vrot.slane %v4315_v14, %v4467_v2 }
 0x415   :  { %v4470_v37 = vsel %vm4469_vm14, %v4468_v61, %v4463_v33 }
 0x417   :  { %v4366_v35 = vpop.permute.xlu0 %4365 }
 0x418   :  { %v4555_v3 = vrot.slane %v4366_v35, %v4474_v29 }
 0x41a   :  { %v4556_v45 = vsel %vm4476_vm15, %v4555_v3, %v4551_v58 }
 0x41d   :  { %v4318_v20 = vpop.permute.xlu1 %4317 }
 0x41e   :  { %v4475_v41 = vrot.slane %v4318_v20, %v4474_v29 }
 0x420   :  { %v4477_v15 = vsel %vm4476_vm15, %v4475_v41, %v4470_v37 }
 0x421   :  { %v4557_v57 = vcombine.low %v4477_v15, %v4556_v45 }
 0x423   :  { %v4564_v0 = vrot.slane %v4557_v57, %v6684_v10 }
 0x425   :  { %v4571_v13 = vrot.slane %v4564_v0, %v6684_v10 }
 0x427   :  { %4577 = vst.msk [vmem:[%s7601_s3] sm:$0x3] %vm4575_vm0, %v4571_v13 }

</bundles_post_ra>
